<compile_context>
chip_gen: v7x
topology: tpu7x:2x2x1
jax: 0.10.0
libtpu: 0.0.40
codegen_flags: <defaults>
</compile_context>

<pallas_src>
import functools
import math

import jax
import jax.numpy as jnp
import numpy as np
from jax.experimental import pallas as pl
from jax.experimental.pallas import tpu as pltpu

# ---------------- model config (small, synthetic BERT) ----------------
BATCH = 2
SEQ = 8
HIDDEN = 64            # bert_dim
NUM_HEADS = 2
HEAD_DIM = HIDDEN // NUM_HEADS
FFN = 4 * HIDDEN
NUM_LAYERS = 2
VOCAB = 50
MAX_POS = 16
TYPE_VOCAB = 2
LEXICON_DIM = 2
NUM_LABELS = 3
ATTN_HIDDEN = 64       # feature_attention hidden width
CLS_HIDDEN = 512       # classifier hidden width
LN_EPS_BERT = 1e-12    # HF BertLayerNorm eps
LN_EPS_CLS = 1e-5      # nn.LayerNorm default eps


# ---------------- in-kernel helpers (all math in f32) ----------------
def _erf(x):
    # Abramowitz & Stegun 7.1.26 (|err| <= 1.5e-7); avoids relying on a lax.erf lowering rule.
    a1, a2, a3, a4, a5 = 0.254829592, -0.284496736, 1.421413741, -1.453152027, 1.061405429
    p = 0.3275911
    ax = jnp.abs(x)
    t = 1.0 / (1.0 + p * ax)
    poly = ((((a5 * t + a4) * t + a3) * t + a2) * t + a1) * t
    y = 1.0 - poly * jnp.exp(-(ax * ax))
    return jnp.where(x >= 0.0, y, -y)


def _gelu(x):
    # matches torch nn.GELU() (erf formulation)
    return 0.5 * x * (1.0 + _erf(x * (1.0 / math.sqrt(2.0))))


def _softmax_fast(x):
    # attention softmax: reciprocal on the EUP (approx vrcp), off the VALU
    m = jnp.max(x, axis=-1, keepdims=True)
    e = jnp.exp(x - m)
    return e * pl.reciprocal(jnp.sum(e, axis=-1, keepdims=True), approx=True)


def _softmax_exact(x):
    # head softmax (2-way gating): exact division for tight parity with the reference
    m = jnp.max(x, axis=-1, keepdims=True)
    e = jnp.exp(x - m)
    return e / jnp.sum(e, axis=-1, keepdims=True)


def _layernorm(x, g, b, eps):
    mu = jnp.mean(x, axis=-1, keepdims=True)
    xc = x - mu
    var = jnp.mean(xc * xc, axis=-1, keepdims=True)
    return xc * jax.lax.rsqrt(var + eps) * g + b


# ---------------- single fused kernel: whole forward pass for one batch element ------------
def _fused_forward_kernel(
    # per-batch inputs
    ids_ref, tt_ref, mask_ref, lex_ref,
    # embedding tables + embedding LN
    word_emb_ref, pos_emb_ref, type_emb_ref, emb_ln_g_ref, emb_ln_b_ref,
    # stacked encoder-layer weights [NUM_LAYERS, ...]
    wqkv_ref, bqkv_ref, wo_ref, bo_ref, ln1_g_ref, ln1_b_ref,
    w1_ref, b1_ref, w2_ref, b2_ref, ln2_g_ref, ln2_b_ref,
    # feature-attention head
    wa1b_ref, wa1l_ref, ba1_ref, wa2_ref, ba2_ref,
    # classifier head
    wc1b_ref, wc1l_ref, bc1_ref, cls_ln_g_ref, cls_ln_b_ref, wc2_ref, bc2_ref,
    # output
    o_ref,
    *, seq, hidden, num_heads, num_layers, vocab, type_vocab):
    bf16 = jnp.bfloat16

    # ---- embedding lookup (in-kernel, one-hot matmul against resident tables) ----
    ids = ids_ref[0]                                            # (S, 1) int32
    tt = tt_ref[0]                                              # (S, 1) int32
    word_oh = jnp.where(
        jax.lax.broadcasted_iota(jnp.int32, (seq, vocab), 1) == ids, 1.0, 0.0)
    type_oh = jnp.where(
        jax.lax.broadcasted_iota(jnp.int32, (seq, type_vocab), 1) == tt, 1.0, 0.0)
    emb = (jnp.dot(word_oh, word_emb_ref[...], preferred_element_type=jnp.float32)
           + pos_emb_ref[0:seq, :]
           + jnp.dot(type_oh, type_emb_ref[...], preferred_element_type=jnp.float32))
    x = _layernorm(emb, emb_ln_g_ref[...], emb_ln_b_ref[...], LN_EPS_BERT)   # (S, H) f32

    # BERT additive mask bias, built & broadcast ONCE (hoisted out of layer/head loops)
    neg = (1.0 - mask_ref[...]) * (-1e9)                        # (1, 1, S)
    mask_bias = jnp.broadcast_to(neg, (num_heads, seq, seq))    # (NH, S, S)

    # ---- encoder layers (unrolled; neutral at L=2) ----
    # TODO(synk): stream per-layer weights via a layer grid axis once num_layers/hidden grow.
    for l in range(num_layers):
        x16 = x.astype(bf16)
        # per-head-batched QKV projection: (3*NH, S, H) @ (3*NH, H, HD) -> (3*NH, S, HD)
        xb = jnp.broadcast_to(x16[None], (3 * num_heads, seq, hidden))
        qkv = jnp.einsum("jsd,jdf->jsf", xb, wqkv_ref[l],
                         preferred_element_type=jnp.float32) + bqkv_ref[l]
        q = qkv[0:num_heads]                                    # (NH, S, HD) (scale folded in)
        k = qkv[num_heads:2 * num_heads]
        v = qkv[2 * num_heads:3 * num_heads]

        s = jnp.einsum("hqd,hkd->hqk", q.astype(bf16), k.astype(bf16),
                       preferred_element_type=jnp.float32) + mask_bias
        p = _softmax_fast(s)
        ctx = jnp.einsum("hqk,hkd->hqd", p.astype(bf16), v.astype(bf16),
                         preferred_element_type=jnp.float32)    # (NH, S, HD) f32

        # head-merge + output projection as a sum of per-head 2D matmuls (no concat/reshape)
        wo_l = wo_ref[l]                                        # (NH, HD, H) bf16
        attn = bo_ref[l]                                        # (1, H)
        for h in range(num_heads):
            attn = attn + jnp.dot(ctx[h].astype(bf16), wo_l[h],
                                  preferred_element_type=jnp.float32)
        x = _layernorm(x + attn, ln1_g_ref[l], ln1_b_ref[l], LN_EPS_BERT)

        # FFN with GELU epilogue + residual + LN
        h1 = _gelu(jnp.dot(x.astype(bf16), w1_ref[l],
                           preferred_element_type=jnp.float32) + b1_ref[l])
        ffn = jnp.dot(h1.astype(bf16), w2_ref[l],
                      preferred_element_type=jnp.float32) + b2_ref[l]
        x = _layernorm(x + ffn, ln2_g_ref[l], ln2_b_ref[l], LN_EPS_BERT)

    # ---- classification head ----
    cls = x[0:1, :]                                             # (1, H) CLS token row
    lex = lex_ref[0]                                            # (1, L)

    # feature_attention: Linear(D+L, 64) -> Tanh -> Linear(64, 2) -> Softmax
    # concat([cls, lex]) @ W == cls @ W[:D] + lex @ W[D:]
    ha = jnp.tanh(jnp.dot(cls.astype(jnp.bfloat16), wa1b_ref[...],
                          preferred_element_type=jnp.float32)
                  + jnp.dot(lex.astype(jnp.bfloat16), wa1l_ref[...],
                            preferred_element_type=jnp.float32)
                  + ba1_ref[...])
    a = jnp.dot(ha, wa2_ref[...], preferred_element_type=jnp.float32) + ba2_ref[...]
    a = _softmax_exact(a)       # Softmax inside feature_attention Sequential
    a = _softmax_exact(a)       # self.softmax applied again in forward (double softmax)

    wb = cls * a[:, 0:1]        # weighted bert embedding
    wl = lex * a[:, 1:2]        # weighted lexicon features

    # classifier: Linear(D+L, 512) -> GELU -> Dropout(identity) -> LayerNorm(512) -> Linear(512, 3)
    z = (jnp.dot(wb.astype(jnp.bfloat16), wc1b_ref[...], preferred_element_type=jnp.float32)
         + jnp.dot(wl.astype(jnp.bfloat16), wc1l_ref[...], preferred_element_type=jnp.float32)
         + bc1_ref[...])
    z = _gelu(z)
    z = _layernorm(z, cls_ln_g_ref[...], cls_ln_b_ref[...], LN_EPS_CLS)
    o_ref[0] = jnp.dot(z, wc2_ref[...], preferred_element_type=jnp.float32) + bc2_ref[...]


# ---------------- weight packing (one-time prep: per-head layout, bf16 MXU operands) --------
def pack_kernel_params(params):
    bf16 = jnp.bfloat16
    scale = 1.0 / math.sqrt(HEAD_DIM)
    layers = params["layers"]

    def heads_cols(w):   # (H, NH*HD) -> (NH, H, HD)
        return jnp.stack([w[:, h * HEAD_DIM:(h + 1) * HEAD_DIM] for h in range(NUM_HEADS)], 0)

    def heads_vec(b):    # (NH*HD,) -> (NH, 1, HD)
        return jnp.stack([b[h * HEAD_DIM:(h + 1) * HEAD_DIM][None, :] for h in range(NUM_HEADS)], 0)

    def stk(fn):
        return jnp.stack([fn(l) for l in layers], axis=0)

    packed = dict(
        word_emb=params["word_emb"], pos_emb=params["pos_emb"], type_emb=params["type_emb"],
        emb_ln_g=params["emb_ln_g"].reshape(1, HIDDEN),
        emb_ln_b=params["emb_ln_b"].reshape(1, HIDDEN),
        # per-head QKV weights, attention scale folded into Q weights AND biases
        wqkv=stk(lambda l: jnp.concatenate(
            [heads_cols(l["wq"]) * scale, heads_cols(l["wk"]), heads_cols(l["wv"])],
            axis=0)).astype(bf16),                                      # (L, 3NH, H, HD)
        bqkv=stk(lambda l: jnp.concatenate(
            [heads_vec(l["bq"]) * scale, heads_vec(l["bk"]), heads_vec(l["bv"])],
            axis=0)),                                                   # (L, 3NH, 1, HD) f32
        wo=stk(lambda l: jnp.stack(
            [l["wo"][h * HEAD_DIM:(h + 1) * HEAD_DIM, :] for h in range(NUM_HEADS)],
            axis=0)).astype(bf16),                                      # (L, NH, HD, H)
        bo=stk(lambda l: l["bo"][None, :]),
        ln1_g=stk(lambda l: l["ln1_g"][None, :]), ln1_b=stk(lambda l: l["ln1_b"][None, :]),
        w1=stk(lambda l: l["w1"]).astype(bf16), b1=stk(lambda l: l["b1"][None, :]),
        w2=stk(lambda l: l["w2"]).astype(bf16), b2=stk(lambda l: l["b2"][None, :]),
        ln2_g=stk(lambda l: l["ln2_g"][None, :]), ln2_b=stk(lambda l: l["ln2_b"][None, :]),
    )
    h = params["head"]
    packed.update(
        wa1_b=h["wa1"][:HIDDEN].astype(bf16), wa1_l=h["wa1"][HIDDEN:].astype(bf16),
        ba1=h["ba1"][None, :],
        wa2=h["wa2"], ba2=h["ba2"][None, :],
        wc1_b=h["wc1"][:HIDDEN].astype(bf16), wc1_l=h["wc1"][HIDDEN:].astype(bf16),
        bc1=h["bc1"][None, :],
        cls_ln_g=h["ln_g"][None, :], cls_ln_b=h["ln_b"][None, :],
        wc2=h["wc2"], bc2=h["bc2"][None, :],
    )
    return packed


# ---------------- forward: one fused pallas_call, grid over batch ----------------
def hybrid_bert_forward(packed, input_ids, attention_mask, token_type_ids, lexicon_features):
    # TODO(synk): tfidf branch (tfidf_dim is not None) not exercised; module defaults to None.
    B, S = input_ids.shape
    ids3 = input_ids.astype(jnp.int32)[..., None]            # (B, S, 1)
    tt3 = token_type_ids.astype(jnp.int32)[..., None]        # (B, S, 1)
    mask3 = attention_mask.astype(jnp.float32)[:, None, :]   # (B, 1, S)
    lex3 = lexicon_features.astype(jnp.float32)[:, None, :]  # (B, 1, L)

    weights = (
        packed["word_emb"], packed["pos_emb"], packed["type_emb"],
        packed["emb_ln_g"], packed["emb_ln_b"],
        packed["wqkv"], packed["bqkv"], packed["wo"], packed["bo"],
        packed["ln1_g"], packed["ln1_b"],
        packed["w1"], packed["b1"], packed["w2"], packed["b2"],
        packed["ln2_g"], packed["ln2_b"],
        packed["wa1_b"], packed["wa1_l"], packed["ba1"], packed["wa2"], packed["ba2"],
        packed["wc1_b"], packed["wc1_l"], packed["bc1"],
        packed["cls_ln_g"], packed["cls_ln_b"], packed["wc2"], packed["bc2"],
    )

    def batch_spec(a):   # per-batch-element block; last two dims are the full array dims
        return pl.BlockSpec((1,) + a.shape[1:], lambda b: (b, 0, 0))

    def resident_spec(a):  # whole weight resident in VMEM across the batch grid
        return pl.BlockSpec(a.shape, lambda b, _n=a.ndim: (0,) * _n)

    in_specs = ([batch_spec(a) for a in (ids3, tt3, mask3, lex3)]
                + [resident_spec(w) for w in weights])
    out_specs = pl.BlockSpec((1, 1, NUM_LABELS), lambda b: (b, 0, 0))

    # advisory cost estimate for the XLA scheduler
    per_layer = (2 * S * HIDDEN * 3 * HIDDEN + 2 * S * HIDDEN * HIDDEN
                 + 4 * S * HIDDEN * FFN + 4 * NUM_HEADS * S * S * HEAD_DIM)
    head_flops = (2 * (HIDDEN + LEXICON_DIM) * (ATTN_HIDDEN + CLS_HIDDEN)
                  + 2 * ATTN_HIDDEN * 2 + 2 * CLS_HIDDEN * NUM_LABELS)
    emb_flops = 2 * S * (VOCAB + TYPE_VOCAB) * HIDDEN
    flops = int(B * (emb_flops + NUM_LAYERS * per_layer + head_flops))
    transc = int(B * (NUM_LAYERS * (NUM_HEADS * S * S + S * FFN) + ATTN_HIDDEN + CLS_HIDDEN + 8))
    bytes_accessed = int(
        sum(int(np.prod(a.shape)) * a.dtype.itemsize for a in (ids3, tt3, mask3, lex3) + weights)
        + B * NUM_LABELS * 4)

    kernel = functools.partial(
        _fused_forward_kernel, seq=S, hidden=HIDDEN, num_heads=NUM_HEADS,
        num_layers=NUM_LAYERS, vocab=VOCAB, type_vocab=TYPE_VOCAB)

    out = pl.pallas_call(
        kernel,
        out_shape=jax.ShapeDtypeStruct((B, 1, NUM_LABELS), jnp.float32),
        grid=(B,),
        in_specs=in_specs,
        out_specs=out_specs,
        compiler_params=pltpu.CompilerParams(
            dimension_semantics=("parallel",),            # batch across TCs on v7x
            vmem_limit_bytes=8 * 1024 * 1024),            # resident footprint is tiny
        cost_estimate=pl.CostEstimate(flops=flops, transcendentals=transc,
                                      bytes_accessed=bytes_accessed),
    )(ids3, tt3, mask3, lex3, *weights)
    return out.reshape(B, NUM_LABELS)


# ---------------- deterministic parameter init ----------------
def init_params(seed=0):
    key = jax.random.PRNGKey(seed)

    def nxt():
        nonlocal key
        key, sub = jax.random.split(key)
        return sub

    def w_init(shape):
        return 0.02 * jax.random.normal(nxt(), shape, jnp.float32)

    params = {
        "word_emb": w_init((VOCAB, HIDDEN)),
        "pos_emb": w_init((MAX_POS, HIDDEN)),
        "type_emb": w_init((TYPE_VOCAB, HIDDEN)),
        "emb_ln_g": jnp.ones((HIDDEN,), jnp.float32),
        "emb_ln_b": jnp.zeros((HIDDEN,), jnp.float32),
        "layers": [],
    }
    for _ in range(NUM_LAYERS):
        params["layers"].append({
            "wq": w_init((HIDDEN, HIDDEN)), "bq": jnp.zeros((HIDDEN,), jnp.float32),
            "wk": w_init((HIDDEN, HIDDEN)), "bk": jnp.zeros((HIDDEN,), jnp.float32),
            "wv": w_init((HIDDEN, HIDDEN)), "bv": jnp.zeros((HIDDEN,), jnp.float32),
            "wo": w_init((HIDDEN, HIDDEN)), "bo": jnp.zeros((HIDDEN,), jnp.float32),
            "ln1_g": jnp.ones((HIDDEN,), jnp.float32), "ln1_b": jnp.zeros((HIDDEN,), jnp.float32),
            "w1": w_init((HIDDEN, FFN)), "b1": jnp.zeros((FFN,), jnp.float32),
            "w2": w_init((FFN, HIDDEN)), "b2": jnp.zeros((HIDDEN,), jnp.float32),
            "ln2_g": jnp.ones((HIDDEN,), jnp.float32), "ln2_b": jnp.zeros((HIDDEN,), jnp.float32),
        })
    params["head"] = {
        "wa1": w_init((HIDDEN + LEXICON_DIM, ATTN_HIDDEN)),
        "ba1": jnp.zeros((ATTN_HIDDEN,), jnp.float32),
        "wa2": w_init((ATTN_HIDDEN, 2)), "ba2": jnp.zeros((2,), jnp.float32),
        "wc1": w_init((HIDDEN + LEXICON_DIM, CLS_HIDDEN)),
        "bc1": jnp.zeros((CLS_HIDDEN,), jnp.float32),
        "ln_g": jnp.ones((CLS_HIDDEN,), jnp.float32), "ln_b": jnp.zeros((CLS_HIDDEN,), jnp.float32),
        "wc2": w_init((CLS_HIDDEN, NUM_LABELS)), "bc2": jnp.zeros((NUM_LABELS,), jnp.float32),
    }
    return params


# ---------------- pure-JAX reference (f32, HIGHEST precision) ----------------
def reference_forward(params, input_ids, attention_mask, token_type_ids, lexicon):
    B, S = input_ids.shape
    hi = jax.lax.Precision.HIGHEST

    def ln(x, g, b, eps):
        mu = x.mean(-1, keepdims=True)
        var = ((x - mu) ** 2).mean(-1, keepdims=True)
        return (x - mu) / jnp.sqrt(var + eps) * g + b

    def gelu(x):
        return 0.5 * x * (1.0 + jax.lax.erf(x / jnp.sqrt(2.0)))

    x = (params["word_emb"][input_ids] + params["pos_emb"][jnp.arange(S)][None]
         + params["type_emb"][token_type_ids])
    x = ln(x, params["emb_ln_g"], params["emb_ln_b"], LN_EPS_BERT)
    mask = attention_mask.astype(jnp.float32)
    for l in params["layers"]:
        def proj(w, b):
            return jnp.einsum("bsh,hk->bsk", x, w, precision=hi) + b
        q = proj(l["wq"], l["bq"]).reshape(B, S, NUM_HEADS, HEAD_DIM).transpose(0, 2, 1, 3)
        k = proj(l["wk"], l["bk"]).reshape(B, S, NUM_HEADS, HEAD_DIM).transpose(0, 2, 1, 3)
        v = proj(l["wv"], l["bv"]).reshape(B, S, NUM_HEADS, HEAD_DIM).transpose(0, 2, 1, 3)
        s = jnp.einsum("bhqd,bhkd->bhqk", q, k, precision=hi) / math.sqrt(HEAD_DIM)
        s = s + (1.0 - mask)[:, None, None, :] * (-1e9)
        p = jax.nn.softmax(s, axis=-1)
        ctx = (jnp.einsum("bhqk,bhkd->bhqd", p, v, precision=hi)
               .transpose(0, 2, 1, 3).reshape(B, S, HIDDEN))
        attn = jnp.einsum("bsh,hk->bsk", ctx, l["wo"], precision=hi) + l["bo"]
        x = ln(x + attn, l["ln1_g"], l["ln1_b"], LN_EPS_BERT)
        h = gelu(jnp.einsum("bsh,hk->bsk", x, l["w1"], precision=hi) + l["b1"])
        f = jnp.einsum("bsh,hk->bsk", h, l["w2"], precision=hi) + l["b2"]
        x = ln(x + f, l["ln2_g"], l["ln2_b"], LN_EPS_BERT)
    cls = x[:, 0, :]
    p_ = params["head"]
    comb = jnp.concatenate([cls, lexicon], axis=1)
    hh = jnp.tanh(jnp.dot(comb, p_["wa1"], precision=hi) + p_["ba1"])
    a = jax.nn.softmax(jnp.dot(hh, p_["wa2"], precision=hi) + p_["ba2"], axis=1)
    a = jax.nn.softmax(a, axis=1)
    weighted = jnp.concatenate([cls * a[:, 0:1], lexicon * a[:, 1:2]], axis=1)
    z = gelu(jnp.dot(weighted, p_["wc1"], precision=hi) + p_["bc1"])
    z = ln(z, p_["ln_g"], p_["ln_b"], LN_EPS_CLS)
    return jnp.dot(z, p_["wc2"], precision=hi) + p_["bc2"]


if __name__ == "__main__":
    params = init_params(0)
    packed = pack_kernel_params(params)

    key = jax.random.PRNGKey(0)
    k1, k2 = jax.random.split(key)
    input_ids = jax.random.randint(k1, (BATCH, SEQ), 0, VOCAB)
    attention_mask = jnp.ones((BATCH, SEQ), jnp.float32).at[1, 6:].set(0.0)  # pad last 2 tokens
    token_type_ids = jnp.zeros((BATCH, SEQ), jnp.int32)
    lexicon_features = jax.random.uniform(k2, (BATCH, LEXICON_DIM), jnp.float32)

    fwd = jax.jit(hybrid_bert_forward)
    logits = jax.block_until_ready(
        fwd(packed, input_ids, attention_mask, token_type_ids, lexicon_features))
    assert logits.shape == (BATCH, NUM_LABELS)

    ref = reference_forward(params, input_ids, attention_mask, token_type_ids, lexicon_features)
    max_diff = float(np.max(np.abs(np.asarray(logits) - np.asarray(ref))))
    # bf16 matmul operands (f32 accumulation) vs. an all-f32 HIGHEST reference: allow 2e-2 abs.
    assert max_diff < 2e-2, f"mismatch vs reference: max diff {max_diff}"

    print("KERNEL_OK")
</pallas_src>

<mosaic_0001>
module attributes {stable_mosaic.version = 11 : i64} {
  func.func @_fused_forward_kernel(%arg0: i32, %arg1: memref<1x8x1xi32, #tpu.memory_space<vmem>>, %arg2: memref<1x8x1xi32, #tpu.memory_space<vmem>>, %arg3: memref<1x1x8xf32, #tpu.memory_space<vmem>>, %arg4: memref<1x1x2xf32, #tpu.memory_space<vmem>>, %arg5: memref<50x64xf32, #tpu.memory_space<vmem>>, %arg6: memref<16x64xf32, #tpu.memory_space<vmem>>, %arg7: memref<2x64xf32, #tpu.memory_space<vmem>>, %arg8: memref<1x64xf32, #tpu.memory_space<vmem>>, %arg9: memref<1x64xf32, #tpu.memory_space<vmem>>, %arg10: memref<2x6x64x32xbf16, #tpu.memory_space<vmem>>, %arg11: memref<2x6x1x32xf32, #tpu.memory_space<vmem>>, %arg12: memref<2x2x32x64xbf16, #tpu.memory_space<vmem>>, %arg13: memref<2x1x64xf32, #tpu.memory_space<vmem>>, %arg14: memref<2x1x64xf32, #tpu.memory_space<vmem>>, %arg15: memref<2x1x64xf32, #tpu.memory_space<vmem>>, %arg16: memref<2x64x256xbf16, #tpu.memory_space<vmem>>, %arg17: memref<2x1x256xf32, #tpu.memory_space<vmem>>, %arg18: memref<2x256x64xbf16, #tpu.memory_space<vmem>>, %arg19: memref<2x1x64xf32, #tpu.memory_space<vmem>>, %arg20: memref<2x1x64xf32, #tpu.memory_space<vmem>>, %arg21: memref<2x1x64xf32, #tpu.memory_space<vmem>>, %arg22: memref<64x64xbf16, #tpu.memory_space<vmem>>, %arg23: memref<2x64xbf16, #tpu.memory_space<vmem>>, %arg24: memref<1x64xf32, #tpu.memory_space<vmem>>, %arg25: memref<64x2xf32, #tpu.memory_space<vmem>>, %arg26: memref<1x2xf32, #tpu.memory_space<vmem>>, %arg27: memref<64x512xbf16, #tpu.memory_space<vmem>>, %arg28: memref<2x512xbf16, #tpu.memory_space<vmem>>, %arg29: memref<1x512xf32, #tpu.memory_space<vmem>>, %arg30: memref<1x512xf32, #tpu.memory_space<vmem>>, %arg31: memref<1x512xf32, #tpu.memory_space<vmem>>, %arg32: memref<512x3xf32, #tpu.memory_space<vmem>>, %arg33: memref<1x3xf32, #tpu.memory_space<vmem>>, %arg34: memref<1x1x3xf32, #tpu.memory_space<vmem>>) attributes {dimension_semantics = [#tpu.dimension_semantics<parallel>], iteration_bounds = array<i64: 2>, scalar_prefetch = 0 : i64, scratch_operands = 0 : i64, tpu.core_type = #tpu.core_type<tc>, window_params = [{transform_indices = @transform_0, window_bounds = array<i64: 1, 8, 1>}, {transform_indices = @transform_1, window_bounds = array<i64: 1, 8, 1>}, {transform_indices = @transform_2, window_bounds = array<i64: 1, 1, 8>}, {transform_indices = @transform_3, window_bounds = array<i64: 1, 1, 2>}, {pipeline_mode = #tpu.pipeline_mode<synchronous>, transform_indices = @transform_4, window_bounds = array<i64: 50, 64>}, {pipeline_mode = #tpu.pipeline_mode<synchronous>, transform_indices = @transform_5, window_bounds = array<i64: 16, 64>}, {pipeline_mode = #tpu.pipeline_mode<synchronous>, transform_indices = @transform_6, window_bounds = array<i64: 2, 64>}, {pipeline_mode = #tpu.pipeline_mode<synchronous>, transform_indices = @transform_7, window_bounds = array<i64: 1, 64>}, {pipeline_mode = #tpu.pipeline_mode<synchronous>, transform_indices = @transform_8, window_bounds = array<i64: 1, 64>}, {pipeline_mode = #tpu.pipeline_mode<synchronous>, transform_indices = @transform_9, window_bounds = array<i64: 2, 6, 64, 32>}, {pipeline_mode = #tpu.pipeline_mode<synchronous>, transform_indices = @transform_10, window_bounds = array<i64: 2, 6, 1, 32>}, {pipeline_mode = #tpu.pipeline_mode<synchronous>, transform_indices = @transform_11, window_bounds = array<i64: 2, 2, 32, 64>}, {pipeline_mode = #tpu.pipeline_mode<synchronous>, transform_indices = @transform_12, window_bounds = array<i64: 2, 1, 64>}, {pipeline_mode = #tpu.pipeline_mode<synchronous>, transform_indices = @transform_13, window_bounds = array<i64: 2, 1, 64>}, {pipeline_mode = #tpu.pipeline_mode<synchronous>, transform_indices = @transform_14, window_bounds = array<i64: 2, 1, 64>}, {pipeline_mode = #tpu.pipeline_mode<synchronous>, transform_indices = @transform_15, window_bounds = array<i64: 2, 64, 256>}, {pipeline_mode = #tpu.pipeline_mode<synchronous>, transform_indices = @transform_16, window_bounds = array<i64: 2, 1, 256>}, {pipeline_mode = #tpu.pipeline_mode<synchronous>, transform_indices = @transform_17, window_bounds = array<i64: 2, 256, 64>}, {pipeline_mode = #tpu.pipeline_mode<synchronous>, transform_indices = @transform_18, window_bounds = array<i64: 2, 1, 64>}, {pipeline_mode = #tpu.pipeline_mode<synchronous>, transform_indices = @transform_19, window_bounds = array<i64: 2, 1, 64>}, {pipeline_mode = #tpu.pipeline_mode<synchronous>, transform_indices = @transform_20, window_bounds = array<i64: 2, 1, 64>}, {pipeline_mode = #tpu.pipeline_mode<synchronous>, transform_indices = @transform_21, window_bounds = array<i64: 64, 64>}, {pipeline_mode = #tpu.pipeline_mode<synchronous>, transform_indices = @transform_22, window_bounds = array<i64: 2, 64>}, {pipeline_mode = #tpu.pipeline_mode<synchronous>, transform_indices = @transform_23, window_bounds = array<i64: 1, 64>}, {pipeline_mode = #tpu.pipeline_mode<synchronous>, transform_indices = @transform_24, window_bounds = array<i64: 64, 2>}, {pipeline_mode = #tpu.pipeline_mode<synchronous>, transform_indices = @transform_25, window_bounds = array<i64: 1, 2>}, {pipeline_mode = #tpu.pipeline_mode<synchronous>, transform_indices = @transform_26, window_bounds = array<i64: 64, 512>}, {pipeline_mode = #tpu.pipeline_mode<synchronous>, transform_indices = @transform_27, window_bounds = array<i64: 2, 512>}, {pipeline_mode = #tpu.pipeline_mode<synchronous>, transform_indices = @transform_28, window_bounds = array<i64: 1, 512>}, {pipeline_mode = #tpu.pipeline_mode<synchronous>, transform_indices = @transform_29, window_bounds = array<i64: 1, 512>}, {pipeline_mode = #tpu.pipeline_mode<synchronous>, transform_indices = @transform_30, window_bounds = array<i64: 1, 512>}, {pipeline_mode = #tpu.pipeline_mode<synchronous>, transform_indices = @transform_31, window_bounds = array<i64: 512, 3>}, {pipeline_mode = #tpu.pipeline_mode<synchronous>, transform_indices = @transform_32, window_bounds = array<i64: 1, 3>}, {transform_indices = @transform_33, window_bounds = array<i64: 1, 1, 3>}]} {
    %c0 = arith.constant 0 : index
    %c0_0 = arith.constant 0 : index
    %c0_1 = arith.constant 0 : index
    %0 = vector.load %arg1[%c0, %c0_0, %c0_1] : memref<1x8x1xi32, #tpu.memory_space<vmem>>, vector<1x8x1xi32>
    %1 = vector.shape_cast %0 : vector<1x8x1xi32> to vector<8x1xi32>
    %c0_2 = arith.constant 0 : index
    %c0_3 = arith.constant 0 : index
    %c0_4 = arith.constant 0 : index
    %2 = vector.load %arg2[%c0_2, %c0_3, %c0_4] : memref<1x8x1xi32, #tpu.memory_space<vmem>>, vector<1x8x1xi32>
    %3 = vector.shape_cast %2 : vector<1x8x1xi32> to vector<8x1xi32>
    %4 = tpu.iota {dimensions = array<i32: 1>} : vector<8x50xi32>
    %5 = vector.broadcast %1 : vector<8x1xi32> to vector<8x50xi32>
    %6 = arith.cmpi eq, %4, %5 : vector<8x50xi32>
    %cst = arith.constant 1.000000e+00 : f32
    %cst_5 = arith.constant 0.000000e+00 : f32
    %7 = vector.broadcast %cst : f32 to vector<8x50xf32>
    %8 = vector.broadcast %cst_5 : f32 to vector<8x50xf32>
    %9 = arith.select %6, %7, %8 : vector<8x50xi1>, vector<8x50xf32>
    %10 = tpu.iota {dimensions = array<i32: 1>} : vector<8x2xi32>
    %11 = vector.broadcast %3 : vector<8x1xi32> to vector<8x2xi32>
    %12 = arith.cmpi eq, %10, %11 : vector<8x2xi32>
    %cst_6 = arith.constant 1.000000e+00 : f32
    %cst_7 = arith.constant 0.000000e+00 : f32
    %13 = vector.broadcast %cst_6 : f32 to vector<8x2xf32>
    %14 = vector.broadcast %cst_7 : f32 to vector<8x2xf32>
    %15 = arith.select %12, %13, %14 : vector<8x2xi1>, vector<8x2xf32>
    %c0_8 = arith.constant 0 : index
    %c0_9 = arith.constant 0 : index
    %16 = vector.load %arg5[%c0_8, %c0_9] : memref<50x64xf32, #tpu.memory_space<vmem>>, vector<50x64xf32>
    %cst_10 = arith.constant dense<0.000000e+00> : vector<8x64xf32>
    %17 = tpu.matmul %9, %16, %cst_10 {dimension_numbers = #tpu.dot_dimension_numbers<[1], [0], [0], [1], [0, 0, 1, 1], [], []>} : vector<8x50xf32>, vector<50x64xf32>, vector<8x64xf32> -> vector<8x64xf32>
    %c0_11 = arith.constant 0 : index
    %c0_12 = arith.constant 0 : index
    %18 = vector.load %arg6[%c0_11, %c0_12] : memref<16x64xf32, #tpu.memory_space<vmem>>, vector<8x64xf32>
    %19 = arith.addf %17, %18 : vector<8x64xf32>
    %c0_13 = arith.constant 0 : index
    %c0_14 = arith.constant 0 : index
    %20 = vector.load %arg7[%c0_13, %c0_14] : memref<2x64xf32, #tpu.memory_space<vmem>>, vector<2x64xf32>
    %cst_15 = arith.constant dense<0.000000e+00> : vector<8x64xf32>
    %21 = tpu.matmul %15, %20, %cst_15 {dimension_numbers = #tpu.dot_dimension_numbers<[1], [0], [0], [1], [0, 0, 1, 1], [], []>} : vector<8x2xf32>, vector<2x64xf32>, vector<8x64xf32> -> vector<8x64xf32>
    %22 = arith.addf %19, %21 : vector<8x64xf32>
    %c0_16 = arith.constant 0 : index
    %c0_17 = arith.constant 0 : index
    %23 = vector.load %arg8[%c0_16, %c0_17] : memref<1x64xf32, #tpu.memory_space<vmem>>, vector<1x64xf32>
    %c0_18 = arith.constant 0 : index
    %c0_19 = arith.constant 0 : index
    %24 = vector.load %arg9[%c0_18, %c0_19] : memref<1x64xf32, #tpu.memory_space<vmem>>, vector<1x64xf32>
    %cst_20 = arith.constant dense<0.000000e+00> : vector<8xf32>
    %25 = vector.multi_reduction <add>, %22, %cst_20 [1] : vector<8x64xf32> to vector<8xf32>
    %26 = vector.shape_cast %25 : vector<8xf32> to vector<8x1xf32>
    %cst_21 = arith.constant 6.400000e+01 : f32
    %27 = vector.broadcast %cst_21 : f32 to vector<8x1xf32>
    %28 = arith.divf %26, %27 : vector<8x1xf32>
    %29 = vector.broadcast %28 : vector<8x1xf32> to vector<8x64xf32>
    %30 = arith.subf %22, %29 : vector<8x64xf32>
    %31 = arith.mulf %30, %30 : vector<8x64xf32>
    %cst_22 = arith.constant dense<0.000000e+00> : vector<8xf32>
    %32 = vector.multi_reduction <add>, %31, %cst_22 [1] : vector<8x64xf32> to vector<8xf32>
    %33 = vector.shape_cast %32 : vector<8xf32> to vector<8x1xf32>
    %cst_23 = arith.constant 6.400000e+01 : f32
    %34 = vector.broadcast %cst_23 : f32 to vector<8x1xf32>
    %35 = arith.divf %33, %34 : vector<8x1xf32>
    %cst_24 = arith.constant 9.99999996E-13 : f32
    %36 = vector.broadcast %cst_24 : f32 to vector<8x1xf32>
    %37 = arith.addf %35, %36 : vector<8x1xf32>
    %38 = math.rsqrt %37 : vector<8x1xf32>
    %39 = vector.broadcast %38 : vector<8x1xf32> to vector<8x64xf32>
    %40 = arith.mulf %30, %39 : vector<8x64xf32>
    %41 = vector.broadcast %23 : vector<1x64xf32> to vector<8x64xf32>
    %42 = arith.mulf %40, %41 : vector<8x64xf32>
    %43 = vector.broadcast %24 : vector<1x64xf32> to vector<8x64xf32>
    %44 = arith.addf %42, %43 : vector<8x64xf32>
    %c0_25 = arith.constant 0 : index
    %c0_26 = arith.constant 0 : index
    %c0_27 = arith.constant 0 : index
    %45 = vector.load %arg3[%c0_25, %c0_26, %c0_27] : memref<1x1x8xf32, #tpu.memory_space<vmem>>, vector<1x1x8xf32>
    %cst_28 = arith.constant 1.000000e+00 : f32
    %46 = vector.broadcast %cst_28 : f32 to vector<1x1x8xf32>
    %47 = arith.subf %46, %45 : vector<1x1x8xf32>
    %cst_29 = arith.constant -1.000000e+09 : f32
    %48 = vector.broadcast %cst_29 : f32 to vector<1x1x8xf32>
    %49 = arith.mulf %47, %48 : vector<1x1x8xf32>
    %50 = vector.shape_cast %49 : vector<1x1x8xf32> to vector<1x1x8xf32>
    %51 = vector.broadcast %50 : vector<1x1x8xf32> to vector<2x8x8xf32>
    %52 = arith.truncf %44 : vector<8x64xf32> to vector<8x64xbf16>
    %53 = vector.shape_cast %52 : vector<8x64xbf16> to vector<1x8x64xbf16>
    %54 = vector.shape_cast %53 : vector<1x8x64xbf16> to vector<1x8x64xbf16>
    %55 = vector.broadcast %54 : vector<1x8x64xbf16> to vector<6x8x64xbf16>
    %c0_30 = arith.constant 0 : index
    %c0_31 = arith.constant 0 : index
    %c0_32 = arith.constant 0 : index
    %c0_33 = arith.constant 0 : index
    %56 = vector.load %arg10[%c0_30, %c0_31, %c0_32, %c0_33] : memref<2x6x64x32xbf16, #tpu.memory_space<vmem>>, vector<1x6x64x32xbf16>
    %57 = vector.shape_cast %56 : vector<1x6x64x32xbf16> to vector<6x64x32xbf16>
    "tpu.trace_start"() <{level = 10 : i32, message = "jsd,jdf->jsf"}> : () -> ()
    %cst_34 = arith.constant dense<0.000000e+00> : vector<6x8x32xf32>
    %58 = tpu.matmul %55, %57, %cst_34 {dimension_numbers = #tpu.dot_dimension_numbers<[2], [1], [1], [2], [0, 0, 0, 1, 1, 2], [0], [0]>} : vector<6x8x64xbf16>, vector<6x64x32xbf16>, vector<6x8x32xf32> -> vector<6x8x32xf32>
    "tpu.trace_stop"() : () -> ()
    %c0_35 = arith.constant 0 : index
    %c0_36 = arith.constant 0 : index
    %c0_37 = arith.constant 0 : index
    %c0_38 = arith.constant 0 : index
    %59 = vector.load %arg11[%c0_35, %c0_36, %c0_37, %c0_38] : memref<2x6x1x32xf32, #tpu.memory_space<vmem>>, vector<1x6x1x32xf32>
    %60 = vector.shape_cast %59 : vector<1x6x1x32xf32> to vector<6x1x32xf32>
    %61 = vector.broadcast %60 : vector<6x1x32xf32> to vector<6x8x32xf32>
    %62 = arith.addf %58, %61 : vector<6x8x32xf32>
    %63 = vector.extract_strided_slice %62 {offsets = [0, 0, 0], sizes = [2, 8, 32], strides = [1, 1, 1]} : vector<6x8x32xf32> to vector<2x8x32xf32>
    %64 = vector.extract_strided_slice %62 {offsets = [2, 0, 0], sizes = [2, 8, 32], strides = [1, 1, 1]} : vector<6x8x32xf32> to vector<2x8x32xf32>
    %65 = vector.extract_strided_slice %62 {offsets = [4, 0, 0], sizes = [2, 8, 32], strides = [1, 1, 1]} : vector<6x8x32xf32> to vector<2x8x32xf32>
    %66 = arith.truncf %63 : vector<2x8x32xf32> to vector<2x8x32xbf16>
    %67 = arith.truncf %64 : vector<2x8x32xf32> to vector<2x8x32xbf16>
    "tpu.trace_start"() <{level = 10 : i32, message = "hqd,hkd->hqk"}> : () -> ()
    %cst_39 = arith.constant dense<0.000000e+00> : vector<2x8x8xf32>
    %68 = tpu.matmul %66, %67, %cst_39 {dimension_numbers = #tpu.dot_dimension_numbers<[2], [2], [1], [1], [0, 0, 0, 1, 1, 1], [0], [0]>} : vector<2x8x32xbf16>, vector<2x8x32xbf16>, vector<2x8x8xf32> -> vector<2x8x8xf32>
    "tpu.trace_stop"() : () -> ()
    %69 = arith.addf %68, %51 : vector<2x8x8xf32>
    %cst_40 = arith.constant dense<0xFF800000> : vector<2x8xf32>
    %70 = vector.multi_reduction <maximumf>, %69, %cst_40 [2] : vector<2x8x8xf32> to vector<2x8xf32>
    %71 = vector.shape_cast %70 : vector<2x8xf32> to vector<2x8x1xf32>
    %72 = vector.broadcast %71 : vector<2x8x1xf32> to vector<2x8x8xf32>
    %73 = arith.subf %69, %72 : vector<2x8x8xf32>
    %74 = math.exp %73 : vector<2x8x8xf32>
    %cst_41 = arith.constant dense<0.000000e+00> : vector<2x8xf32>
    %75 = vector.multi_reduction <add>, %74, %cst_41 [2] : vector<2x8x8xf32> to vector<2x8xf32>
    %76 = vector.shape_cast %75 : vector<2x8xf32> to vector<2x8x1xf32>
    %77 = tpu.reciprocal %76 {approx = true} : vector<2x8x1xf32> -> vector<2x8x1xf32>
    %78 = vector.broadcast %77 : vector<2x8x1xf32> to vector<2x8x8xf32>
    %79 = arith.mulf %74, %78 : vector<2x8x8xf32>
    %80 = arith.truncf %79 : vector<2x8x8xf32> to vector<2x8x8xbf16>
    %81 = arith.truncf %65 : vector<2x8x32xf32> to vector<2x8x32xbf16>
    "tpu.trace_start"() <{level = 10 : i32, message = "hqk,hkd->hqd"}> : () -> ()
    %cst_42 = arith.constant dense<0.000000e+00> : vector<2x8x32xf32>
    %82 = tpu.matmul %80, %81, %cst_42 {dimension_numbers = #tpu.dot_dimension_numbers<[2], [1], [1], [2], [0, 0, 0, 1, 1, 2], [0], [0]>} : vector<2x8x8xbf16>, vector<2x8x32xbf16>, vector<2x8x32xf32> -> vector<2x8x32xf32>
    "tpu.trace_stop"() : () -> ()
    %c0_43 = arith.constant 0 : index
    %c0_44 = arith.constant 0 : index
    %c0_45 = arith.constant 0 : index
    %c0_46 = arith.constant 0 : index
    %83 = vector.load %arg12[%c0_43, %c0_44, %c0_45, %c0_46] : memref<2x2x32x64xbf16, #tpu.memory_space<vmem>>, vector<1x2x32x64xbf16>
    %84 = vector.shape_cast %83 : vector<1x2x32x64xbf16> to vector<2x32x64xbf16>
    %c0_47 = arith.constant 0 : index
    %c0_48 = arith.constant 0 : index
    %c0_49 = arith.constant 0 : index
    %85 = vector.load %arg13[%c0_47, %c0_48, %c0_49] : memref<2x1x64xf32, #tpu.memory_space<vmem>>, vector<1x1x64xf32>
    %86 = vector.shape_cast %85 : vector<1x1x64xf32> to vector<1x64xf32>
    %87 = vector.extract_strided_slice %82 {offsets = [0, 0, 0], sizes = [1, 8, 32], strides = [1, 1, 1]} : vector<2x8x32xf32> to vector<1x8x32xf32>
    %88 = vector.shape_cast %87 : vector<1x8x32xf32> to vector<8x32xf32>
    %89 = arith.truncf %88 : vector<8x32xf32> to vector<8x32xbf16>
    %90 = vector.extract_strided_slice %84 {offsets = [0, 0, 0], sizes = [1, 32, 64], strides = [1, 1, 1]} : vector<2x32x64xbf16> to vector<1x32x64xbf16>
    %91 = vector.shape_cast %90 : vector<1x32x64xbf16> to vector<32x64xbf16>
    %cst_50 = arith.constant dense<0.000000e+00> : vector<8x64xf32>
    %92 = tpu.matmul %89, %91, %cst_50 {dimension_numbers = #tpu.dot_dimension_numbers<[1], [0], [0], [1], [0, 0, 1, 1], [], []>} : vector<8x32xbf16>, vector<32x64xbf16>, vector<8x64xf32> -> vector<8x64xf32>
    %93 = vector.broadcast %86 : vector<1x64xf32> to vector<8x64xf32>
    %94 = arith.addf %93, %92 : vector<8x64xf32>
    %95 = vector.extract_strided_slice %82 {offsets = [1, 0, 0], sizes = [1, 8, 32], strides = [1, 1, 1]} : vector<2x8x32xf32> to vector<1x8x32xf32>
    %96 = vector.shape_cast %95 : vector<1x8x32xf32> to vector<8x32xf32>
    %97 = arith.truncf %96 : vector<8x32xf32> to vector<8x32xbf16>
    %98 = vector.extract_strided_slice %84 {offsets = [1, 0, 0], sizes = [1, 32, 64], strides = [1, 1, 1]} : vector<2x32x64xbf16> to vector<1x32x64xbf16>
    %99 = vector.shape_cast %98 : vector<1x32x64xbf16> to vector<32x64xbf16>
    %cst_51 = arith.constant dense<0.000000e+00> : vector<8x64xf32>
    %100 = tpu.matmul %97, %99, %cst_51 {dimension_numbers = #tpu.dot_dimension_numbers<[1], [0], [0], [1], [0, 0, 1, 1], [], []>} : vector<8x32xbf16>, vector<32x64xbf16>, vector<8x64xf32> -> vector<8x64xf32>
    %101 = arith.addf %94, %100 : vector<8x64xf32>
    %102 = arith.addf %44, %101 : vector<8x64xf32>
    %c0_52 = arith.constant 0 : index
    %c0_53 = arith.constant 0 : index
    %c0_54 = arith.constant 0 : index
    %103 = vector.load %arg14[%c0_52, %c0_53, %c0_54] : memref<2x1x64xf32, #tpu.memory_space<vmem>>, vector<1x1x64xf32>
    %104 = vector.shape_cast %103 : vector<1x1x64xf32> to vector<1x64xf32>
    %c0_55 = arith.constant 0 : index
    %c0_56 = arith.constant 0 : index
    %c0_57 = arith.constant 0 : index
    %105 = vector.load %arg15[%c0_55, %c0_56, %c0_57] : memref<2x1x64xf32, #tpu.memory_space<vmem>>, vector<1x1x64xf32>
    %106 = vector.shape_cast %105 : vector<1x1x64xf32> to vector<1x64xf32>
    %cst_58 = arith.constant dense<0.000000e+00> : vector<8xf32>
    %107 = vector.multi_reduction <add>, %102, %cst_58 [1] : vector<8x64xf32> to vector<8xf32>
    %108 = vector.shape_cast %107 : vector<8xf32> to vector<8x1xf32>
    %cst_59 = arith.constant 6.400000e+01 : f32
    %109 = vector.broadcast %cst_59 : f32 to vector<8x1xf32>
    %110 = arith.divf %108, %109 : vector<8x1xf32>
    %111 = vector.broadcast %110 : vector<8x1xf32> to vector<8x64xf32>
    %112 = arith.subf %102, %111 : vector<8x64xf32>
    %113 = arith.mulf %112, %112 : vector<8x64xf32>
    %cst_60 = arith.constant dense<0.000000e+00> : vector<8xf32>
    %114 = vector.multi_reduction <add>, %113, %cst_60 [1] : vector<8x64xf32> to vector<8xf32>
    %115 = vector.shape_cast %114 : vector<8xf32> to vector<8x1xf32>
    %cst_61 = arith.constant 6.400000e+01 : f32
    %116 = vector.broadcast %cst_61 : f32 to vector<8x1xf32>
    %117 = arith.divf %115, %116 : vector<8x1xf32>
    %cst_62 = arith.constant 9.99999996E-13 : f32
    %118 = vector.broadcast %cst_62 : f32 to vector<8x1xf32>
    %119 = arith.addf %117, %118 : vector<8x1xf32>
    %120 = math.rsqrt %119 : vector<8x1xf32>
    %121 = vector.broadcast %120 : vector<8x1xf32> to vector<8x64xf32>
    %122 = arith.mulf %112, %121 : vector<8x64xf32>
    %123 = vector.broadcast %104 : vector<1x64xf32> to vector<8x64xf32>
    %124 = arith.mulf %122, %123 : vector<8x64xf32>
    %125 = vector.broadcast %106 : vector<1x64xf32> to vector<8x64xf32>
    %126 = arith.addf %124, %125 : vector<8x64xf32>
    %127 = arith.truncf %126 : vector<8x64xf32> to vector<8x64xbf16>
    %c0_63 = arith.constant 0 : index
    %c0_64 = arith.constant 0 : index
    %c0_65 = arith.constant 0 : index
    %128 = vector.load %arg16[%c0_63, %c0_64, %c0_65] : memref<2x64x256xbf16, #tpu.memory_space<vmem>>, vector<1x64x256xbf16>
    %129 = vector.shape_cast %128 : vector<1x64x256xbf16> to vector<64x256xbf16>
    %cst_66 = arith.constant dense<0.000000e+00> : vector<8x256xf32>
    %130 = tpu.matmul %127, %129, %cst_66 {dimension_numbers = #tpu.dot_dimension_numbers<[1], [0], [0], [1], [0, 0, 1, 1], [], []>} : vector<8x64xbf16>, vector<64x256xbf16>, vector<8x256xf32> -> vector<8x256xf32>
    %c0_67 = arith.constant 0 : index
    %c0_68 = arith.constant 0 : index
    %c0_69 = arith.constant 0 : index
    %131 = vector.load %arg17[%c0_67, %c0_68, %c0_69] : memref<2x1x256xf32, #tpu.memory_space<vmem>>, vector<1x1x256xf32>
    %132 = vector.shape_cast %131 : vector<1x1x256xf32> to vector<1x256xf32>
    %133 = vector.broadcast %132 : vector<1x256xf32> to vector<8x256xf32>
    %134 = arith.addf %130, %133 : vector<8x256xf32>
    %cst_70 = arith.constant 5.000000e-01 : f32
    %135 = vector.broadcast %cst_70 : f32 to vector<8x256xf32>
    %136 = arith.mulf %135, %134 : vector<8x256xf32>
    %cst_71 = arith.constant 0.707106769 : f32
    %137 = vector.broadcast %cst_71 : f32 to vector<8x256xf32>
    %138 = arith.mulf %134, %137 : vector<8x256xf32>
    %139 = math.absf %138 : vector<8x256xf32>
    %cst_72 = arith.constant 0.327591091 : f32
    %140 = vector.broadcast %cst_72 : f32 to vector<8x256xf32>
    %141 = arith.mulf %140, %139 : vector<8x256xf32>
    %cst_73 = arith.constant 1.000000e+00 : f32
    %142 = vector.broadcast %cst_73 : f32 to vector<8x256xf32>
    %143 = arith.addf %142, %141 : vector<8x256xf32>
    %cst_74 = arith.constant 1.000000e+00 : f32
    %144 = vector.broadcast %cst_74 : f32 to vector<8x256xf32>
    %145 = arith.divf %144, %143 : vector<8x256xf32>
    %cst_75 = arith.constant 1.06140542 : f32
    %146 = vector.broadcast %cst_75 : f32 to vector<8x256xf32>
    %147 = arith.mulf %146, %145 : vector<8x256xf32>
    %cst_76 = arith.constant -1.45315206 : f32
    %148 = vector.broadcast %cst_76 : f32 to vector<8x256xf32>
    %149 = arith.addf %147, %148 : vector<8x256xf32>
    %150 = arith.mulf %149, %145 : vector<8x256xf32>
    %cst_77 = arith.constant 1.42141378 : f32
    %151 = vector.broadcast %cst_77 : f32 to vector<8x256xf32>
    %152 = arith.addf %150, %151 : vector<8x256xf32>
    %153 = arith.mulf %152, %145 : vector<8x256xf32>
    %cst_78 = arith.constant -0.284496725 : f32
    %154 = vector.broadcast %cst_78 : f32 to vector<8x256xf32>
    %155 = arith.addf %153, %154 : vector<8x256xf32>
    %156 = arith.mulf %155, %145 : vector<8x256xf32>
    %cst_79 = arith.constant 0.254829586 : f32
    %157 = vector.broadcast %cst_79 : f32 to vector<8x256xf32>
    %158 = arith.addf %156, %157 : vector<8x256xf32>
    %159 = arith.mulf %158, %145 : vector<8x256xf32>
    %160 = arith.mulf %139, %139 : vector<8x256xf32>
    %cst_80 = arith.constant 0.000000e+00 : f32
    %161 = vector.broadcast %cst_80 : f32 to vector<8x256xf32>
    %162 = arith.subf %161, %160 : vector<8x256xf32>
    %163 = math.exp %162 : vector<8x256xf32>
    %164 = arith.mulf %159, %163 : vector<8x256xf32>
    %cst_81 = arith.constant 1.000000e+00 : f32
    %165 = vector.broadcast %cst_81 : f32 to vector<8x256xf32>
    %166 = arith.subf %165, %164 : vector<8x256xf32>
    %cst_82 = arith.constant 0.000000e+00 : f32
    %167 = vector.broadcast %cst_82 : f32 to vector<8x256xf32>
    %168 = arith.cmpf oge, %138, %167 : vector<8x256xf32>
    %cst_83 = arith.constant 0.000000e+00 : f32
    %169 = vector.broadcast %cst_83 : f32 to vector<8x256xf32>
    %170 = arith.subf %169, %166 : vector<8x256xf32>
    %171 = arith.select %168, %166, %170 : vector<8x256xi1>, vector<8x256xf32>
    %cst_84 = arith.constant 1.000000e+00 : f32
    %172 = vector.broadcast %cst_84 : f32 to vector<8x256xf32>
    %173 = arith.addf %172, %171 : vector<8x256xf32>
    %174 = arith.mulf %136, %173 : vector<8x256xf32>
    %175 = arith.truncf %174 : vector<8x256xf32> to vector<8x256xbf16>
    %c0_85 = arith.constant 0 : index
    %c0_86 = arith.constant 0 : index
    %c0_87 = arith.constant 0 : index
    %176 = vector.load %arg18[%c0_85, %c0_86, %c0_87] : memref<2x256x64xbf16, #tpu.memory_space<vmem>>, vector<1x256x64xbf16>
    %177 = vector.shape_cast %176 : vector<1x256x64xbf16> to vector<256x64xbf16>
    %cst_88 = arith.constant dense<0.000000e+00> : vector<8x64xf32>
    %178 = tpu.matmul %175, %177, %cst_88 {dimension_numbers = #tpu.dot_dimension_numbers<[1], [0], [0], [1], [0, 0, 1, 1], [], []>} : vector<8x256xbf16>, vector<256x64xbf16>, vector<8x64xf32> -> vector<8x64xf32>
    %c0_89 = arith.constant 0 : index
    %c0_90 = arith.constant 0 : index
    %c0_91 = arith.constant 0 : index
    %179 = vector.load %arg19[%c0_89, %c0_90, %c0_91] : memref<2x1x64xf32, #tpu.memory_space<vmem>>, vector<1x1x64xf32>
    %180 = vector.shape_cast %179 : vector<1x1x64xf32> to vector<1x64xf32>
    %181 = vector.broadcast %180 : vector<1x64xf32> to vector<8x64xf32>
    %182 = arith.addf %178, %181 : vector<8x64xf32>
    %183 = arith.addf %126, %182 : vector<8x64xf32>
    %c0_92 = arith.constant 0 : index
    %c0_93 = arith.constant 0 : index
    %c0_94 = arith.constant 0 : index
    %184 = vector.load %arg20[%c0_92, %c0_93, %c0_94] : memref<2x1x64xf32, #tpu.memory_space<vmem>>, vector<1x1x64xf32>
    %185 = vector.shape_cast %184 : vector<1x1x64xf32> to vector<1x64xf32>
    %c0_95 = arith.constant 0 : index
    %c0_96 = arith.constant 0 : index
    %c0_97 = arith.constant 0 : index
    %186 = vector.load %arg21[%c0_95, %c0_96, %c0_97] : memref<2x1x64xf32, #tpu.memory_space<vmem>>, vector<1x1x64xf32>
    %187 = vector.shape_cast %186 : vector<1x1x64xf32> to vector<1x64xf32>
    %cst_98 = arith.constant dense<0.000000e+00> : vector<8xf32>
    %188 = vector.multi_reduction <add>, %183, %cst_98 [1] : vector<8x64xf32> to vector<8xf32>
    %189 = vector.shape_cast %188 : vector<8xf32> to vector<8x1xf32>
    %cst_99 = arith.constant 6.400000e+01 : f32
    %190 = vector.broadcast %cst_99 : f32 to vector<8x1xf32>
    %191 = arith.divf %189, %190 : vector<8x1xf32>
    %192 = vector.broadcast %191 : vector<8x1xf32> to vector<8x64xf32>
    %193 = arith.subf %183, %192 : vector<8x64xf32>
    %194 = arith.mulf %193, %193 : vector<8x64xf32>
    %cst_100 = arith.constant dense<0.000000e+00> : vector<8xf32>
    %195 = vector.multi_reduction <add>, %194, %cst_100 [1] : vector<8x64xf32> to vector<8xf32>
    %196 = vector.shape_cast %195 : vector<8xf32> to vector<8x1xf32>
    %cst_101 = arith.constant 6.400000e+01 : f32
    %197 = vector.broadcast %cst_101 : f32 to vector<8x1xf32>
    %198 = arith.divf %196, %197 : vector<8x1xf32>
    %cst_102 = arith.constant 9.99999996E-13 : f32
    %199 = vector.broadcast %cst_102 : f32 to vector<8x1xf32>
    %200 = arith.addf %198, %199 : vector<8x1xf32>
    %201 = math.rsqrt %200 : vector<8x1xf32>
    %202 = vector.broadcast %201 : vector<8x1xf32> to vector<8x64xf32>
    %203 = arith.mulf %193, %202 : vector<8x64xf32>
    %204 = vector.broadcast %185 : vector<1x64xf32> to vector<8x64xf32>
    %205 = arith.mulf %203, %204 : vector<8x64xf32>
    %206 = vector.broadcast %187 : vector<1x64xf32> to vector<8x64xf32>
    %207 = arith.addf %205, %206 : vector<8x64xf32>
    %208 = arith.truncf %207 : vector<8x64xf32> to vector<8x64xbf16>
    %209 = vector.shape_cast %208 : vector<8x64xbf16> to vector<1x8x64xbf16>
    %210 = vector.shape_cast %209 : vector<1x8x64xbf16> to vector<1x8x64xbf16>
    %211 = vector.broadcast %210 : vector<1x8x64xbf16> to vector<6x8x64xbf16>
    %c1 = arith.constant 1 : index
    %c0_103 = arith.constant 0 : index
    %c0_104 = arith.constant 0 : index
    %c0_105 = arith.constant 0 : index
    %212 = vector.load %arg10[%c1, %c0_103, %c0_104, %c0_105] : memref<2x6x64x32xbf16, #tpu.memory_space<vmem>>, vector<1x6x64x32xbf16>
    %213 = vector.shape_cast %212 : vector<1x6x64x32xbf16> to vector<6x64x32xbf16>
    "tpu.trace_start"() <{level = 10 : i32, message = "jsd,jdf->jsf"}> : () -> ()
    %cst_106 = arith.constant dense<0.000000e+00> : vector<6x8x32xf32>
    %214 = tpu.matmul %211, %213, %cst_106 {dimension_numbers = #tpu.dot_dimension_numbers<[2], [1], [1], [2], [0, 0, 0, 1, 1, 2], [0], [0]>} : vector<6x8x64xbf16>, vector<6x64x32xbf16>, vector<6x8x32xf32> -> vector<6x8x32xf32>
    "tpu.trace_stop"() : () -> ()
    %c1_107 = arith.constant 1 : index
    %c0_108 = arith.constant 0 : index
    %c0_109 = arith.constant 0 : index
    %c0_110 = arith.constant 0 : index
    %215 = vector.load %arg11[%c1_107, %c0_108, %c0_109, %c0_110] : memref<2x6x1x32xf32, #tpu.memory_space<vmem>>, vector<1x6x1x32xf32>
    %216 = vector.shape_cast %215 : vector<1x6x1x32xf32> to vector<6x1x32xf32>
    %217 = vector.broadcast %216 : vector<6x1x32xf32> to vector<6x8x32xf32>
    %218 = arith.addf %214, %217 : vector<6x8x32xf32>
    %219 = vector.extract_strided_slice %218 {offsets = [0, 0, 0], sizes = [2, 8, 32], strides = [1, 1, 1]} : vector<6x8x32xf32> to vector<2x8x32xf32>
    %220 = vector.extract_strided_slice %218 {offsets = [2, 0, 0], sizes = [2, 8, 32], strides = [1, 1, 1]} : vector<6x8x32xf32> to vector<2x8x32xf32>
    %221 = vector.extract_strided_slice %218 {offsets = [4, 0, 0], sizes = [2, 8, 32], strides = [1, 1, 1]} : vector<6x8x32xf32> to vector<2x8x32xf32>
    %222 = arith.truncf %219 : vector<2x8x32xf32> to vector<2x8x32xbf16>
    %223 = arith.truncf %220 : vector<2x8x32xf32> to vector<2x8x32xbf16>
    "tpu.trace_start"() <{level = 10 : i32, message = "hqd,hkd->hqk"}> : () -> ()
    %cst_111 = arith.constant dense<0.000000e+00> : vector<2x8x8xf32>
    %224 = tpu.matmul %222, %223, %cst_111 {dimension_numbers = #tpu.dot_dimension_numbers<[2], [2], [1], [1], [0, 0, 0, 1, 1, 1], [0], [0]>} : vector<2x8x32xbf16>, vector<2x8x32xbf16>, vector<2x8x8xf32> -> vector<2x8x8xf32>
    "tpu.trace_stop"() : () -> ()
    %225 = arith.addf %224, %51 : vector<2x8x8xf32>
    %cst_112 = arith.constant dense<0xFF800000> : vector<2x8xf32>
    %226 = vector.multi_reduction <maximumf>, %225, %cst_112 [2] : vector<2x8x8xf32> to vector<2x8xf32>
    %227 = vector.shape_cast %226 : vector<2x8xf32> to vector<2x8x1xf32>
    %228 = vector.broadcast %227 : vector<2x8x1xf32> to vector<2x8x8xf32>
    %229 = arith.subf %225, %228 : vector<2x8x8xf32>
    %230 = math.exp %229 : vector<2x8x8xf32>
    %cst_113 = arith.constant dense<0.000000e+00> : vector<2x8xf32>
    %231 = vector.multi_reduction <add>, %230, %cst_113 [2] : vector<2x8x8xf32> to vector<2x8xf32>
    %232 = vector.shape_cast %231 : vector<2x8xf32> to vector<2x8x1xf32>
    %233 = tpu.reciprocal %232 {approx = true} : vector<2x8x1xf32> -> vector<2x8x1xf32>
    %234 = vector.broadcast %233 : vector<2x8x1xf32> to vector<2x8x8xf32>
    %235 = arith.mulf %230, %234 : vector<2x8x8xf32>
    %236 = arith.truncf %235 : vector<2x8x8xf32> to vector<2x8x8xbf16>
    %237 = arith.truncf %221 : vector<2x8x32xf32> to vector<2x8x32xbf16>
    "tpu.trace_start"() <{level = 10 : i32, message = "hqk,hkd->hqd"}> : () -> ()
    %cst_114 = arith.constant dense<0.000000e+00> : vector<2x8x32xf32>
    %238 = tpu.matmul %236, %237, %cst_114 {dimension_numbers = #tpu.dot_dimension_numbers<[2], [1], [1], [2], [0, 0, 0, 1, 1, 2], [0], [0]>} : vector<2x8x8xbf16>, vector<2x8x32xbf16>, vector<2x8x32xf32> -> vector<2x8x32xf32>
    "tpu.trace_stop"() : () -> ()
    %c1_115 = arith.constant 1 : index
    %c0_116 = arith.constant 0 : index
    %c0_117 = arith.constant 0 : index
    %c0_118 = arith.constant 0 : index
    %239 = vector.load %arg12[%c1_115, %c0_116, %c0_117, %c0_118] : memref<2x2x32x64xbf16, #tpu.memory_space<vmem>>, vector<1x2x32x64xbf16>
    %240 = vector.shape_cast %239 : vector<1x2x32x64xbf16> to vector<2x32x64xbf16>
    %c1_119 = arith.constant 1 : index
    %c0_120 = arith.constant 0 : index
    %c0_121 = arith.constant 0 : index
    %241 = vector.load %arg13[%c1_119, %c0_120, %c0_121] : memref<2x1x64xf32, #tpu.memory_space<vmem>>, vector<1x1x64xf32>
    %242 = vector.shape_cast %241 : vector<1x1x64xf32> to vector<1x64xf32>
    %243 = vector.extract_strided_slice %238 {offsets = [0, 0, 0], sizes = [1, 8, 32], strides = [1, 1, 1]} : vector<2x8x32xf32> to vector<1x8x32xf32>
    %244 = vector.shape_cast %243 : vector<1x8x32xf32> to vector<8x32xf32>
    %245 = arith.truncf %244 : vector<8x32xf32> to vector<8x32xbf16>
    %246 = vector.extract_strided_slice %240 {offsets = [0, 0, 0], sizes = [1, 32, 64], strides = [1, 1, 1]} : vector<2x32x64xbf16> to vector<1x32x64xbf16>
    %247 = vector.shape_cast %246 : vector<1x32x64xbf16> to vector<32x64xbf16>
    %cst_122 = arith.constant dense<0.000000e+00> : vector<8x64xf32>
    %248 = tpu.matmul %245, %247, %cst_122 {dimension_numbers = #tpu.dot_dimension_numbers<[1], [0], [0], [1], [0, 0, 1, 1], [], []>} : vector<8x32xbf16>, vector<32x64xbf16>, vector<8x64xf32> -> vector<8x64xf32>
    %249 = vector.broadcast %242 : vector<1x64xf32> to vector<8x64xf32>
    %250 = arith.addf %249, %248 : vector<8x64xf32>
    %251 = vector.extract_strided_slice %238 {offsets = [1, 0, 0], sizes = [1, 8, 32], strides = [1, 1, 1]} : vector<2x8x32xf32> to vector<1x8x32xf32>
    %252 = vector.shape_cast %251 : vector<1x8x32xf32> to vector<8x32xf32>
    %253 = arith.truncf %252 : vector<8x32xf32> to vector<8x32xbf16>
    %254 = vector.extract_strided_slice %240 {offsets = [1, 0, 0], sizes = [1, 32, 64], strides = [1, 1, 1]} : vector<2x32x64xbf16> to vector<1x32x64xbf16>
    %255 = vector.shape_cast %254 : vector<1x32x64xbf16> to vector<32x64xbf16>
    %cst_123 = arith.constant dense<0.000000e+00> : vector<8x64xf32>
    %256 = tpu.matmul %253, %255, %cst_123 {dimension_numbers = #tpu.dot_dimension_numbers<[1], [0], [0], [1], [0, 0, 1, 1], [], []>} : vector<8x32xbf16>, vector<32x64xbf16>, vector<8x64xf32> -> vector<8x64xf32>
    %257 = arith.addf %250, %256 : vector<8x64xf32>
    %258 = arith.addf %207, %257 : vector<8x64xf32>
    %c1_124 = arith.constant 1 : index
    %c0_125 = arith.constant 0 : index
    %c0_126 = arith.constant 0 : index
    %259 = vector.load %arg14[%c1_124, %c0_125, %c0_126] : memref<2x1x64xf32, #tpu.memory_space<vmem>>, vector<1x1x64xf32>
    %260 = vector.shape_cast %259 : vector<1x1x64xf32> to vector<1x64xf32>
    %c1_127 = arith.constant 1 : index
    %c0_128 = arith.constant 0 : index
    %c0_129 = arith.constant 0 : index
    %261 = vector.load %arg15[%c1_127, %c0_128, %c0_129] : memref<2x1x64xf32, #tpu.memory_space<vmem>>, vector<1x1x64xf32>
    %262 = vector.shape_cast %261 : vector<1x1x64xf32> to vector<1x64xf32>
    %cst_130 = arith.constant dense<0.000000e+00> : vector<8xf32>
    %263 = vector.multi_reduction <add>, %258, %cst_130 [1] : vector<8x64xf32> to vector<8xf32>
    %264 = vector.shape_cast %263 : vector<8xf32> to vector<8x1xf32>
    %cst_131 = arith.constant 6.400000e+01 : f32
    %265 = vector.broadcast %cst_131 : f32 to vector<8x1xf32>
    %266 = arith.divf %264, %265 : vector<8x1xf32>
    %267 = vector.broadcast %266 : vector<8x1xf32> to vector<8x64xf32>
    %268 = arith.subf %258, %267 : vector<8x64xf32>
    %269 = arith.mulf %268, %268 : vector<8x64xf32>
    %cst_132 = arith.constant dense<0.000000e+00> : vector<8xf32>
    %270 = vector.multi_reduction <add>, %269, %cst_132 [1] : vector<8x64xf32> to vector<8xf32>
    %271 = vector.shape_cast %270 : vector<8xf32> to vector<8x1xf32>
    %cst_133 = arith.constant 6.400000e+01 : f32
    %272 = vector.broadcast %cst_133 : f32 to vector<8x1xf32>
    %273 = arith.divf %271, %272 : vector<8x1xf32>
    %cst_134 = arith.constant 9.99999996E-13 : f32
    %274 = vector.broadcast %cst_134 : f32 to vector<8x1xf32>
    %275 = arith.addf %273, %274 : vector<8x1xf32>
    %276 = math.rsqrt %275 : vector<8x1xf32>
    %277 = vector.broadcast %276 : vector<8x1xf32> to vector<8x64xf32>
    %278 = arith.mulf %268, %277 : vector<8x64xf32>
    %279 = vector.broadcast %260 : vector<1x64xf32> to vector<8x64xf32>
    %280 = arith.mulf %278, %279 : vector<8x64xf32>
    %281 = vector.broadcast %262 : vector<1x64xf32> to vector<8x64xf32>
    %282 = arith.addf %280, %281 : vector<8x64xf32>
    %283 = arith.truncf %282 : vector<8x64xf32> to vector<8x64xbf16>
    %c1_135 = arith.constant 1 : index
    %c0_136 = arith.constant 0 : index
    %c0_137 = arith.constant 0 : index
    %284 = vector.load %arg16[%c1_135, %c0_136, %c0_137] : memref<2x64x256xbf16, #tpu.memory_space<vmem>>, vector<1x64x256xbf16>
    %285 = vector.shape_cast %284 : vector<1x64x256xbf16> to vector<64x256xbf16>
    %cst_138 = arith.constant dense<0.000000e+00> : vector<8x256xf32>
    %286 = tpu.matmul %283, %285, %cst_138 {dimension_numbers = #tpu.dot_dimension_numbers<[1], [0], [0], [1], [0, 0, 1, 1], [], []>} : vector<8x64xbf16>, vector<64x256xbf16>, vector<8x256xf32> -> vector<8x256xf32>
    %c1_139 = arith.constant 1 : index
    %c0_140 = arith.constant 0 : index
    %c0_141 = arith.constant 0 : index
    %287 = vector.load %arg17[%c1_139, %c0_140, %c0_141] : memref<2x1x256xf32, #tpu.memory_space<vmem>>, vector<1x1x256xf32>
    %288 = vector.shape_cast %287 : vector<1x1x256xf32> to vector<1x256xf32>
    %289 = vector.broadcast %288 : vector<1x256xf32> to vector<8x256xf32>
    %290 = arith.addf %286, %289 : vector<8x256xf32>
    %cst_142 = arith.constant 5.000000e-01 : f32
    %291 = vector.broadcast %cst_142 : f32 to vector<8x256xf32>
    %292 = arith.mulf %291, %290 : vector<8x256xf32>
    %cst_143 = arith.constant 0.707106769 : f32
    %293 = vector.broadcast %cst_143 : f32 to vector<8x256xf32>
    %294 = arith.mulf %290, %293 : vector<8x256xf32>
    %295 = math.absf %294 : vector<8x256xf32>
    %cst_144 = arith.constant 0.327591091 : f32
    %296 = vector.broadcast %cst_144 : f32 to vector<8x256xf32>
    %297 = arith.mulf %296, %295 : vector<8x256xf32>
    %cst_145 = arith.constant 1.000000e+00 : f32
    %298 = vector.broadcast %cst_145 : f32 to vector<8x256xf32>
    %299 = arith.addf %298, %297 : vector<8x256xf32>
    %cst_146 = arith.constant 1.000000e+00 : f32
    %300 = vector.broadcast %cst_146 : f32 to vector<8x256xf32>
    %301 = arith.divf %300, %299 : vector<8x256xf32>
    %cst_147 = arith.constant 1.06140542 : f32
    %302 = vector.broadcast %cst_147 : f32 to vector<8x256xf32>
    %303 = arith.mulf %302, %301 : vector<8x256xf32>
    %cst_148 = arith.constant -1.45315206 : f32
    %304 = vector.broadcast %cst_148 : f32 to vector<8x256xf32>
    %305 = arith.addf %303, %304 : vector<8x256xf32>
    %306 = arith.mulf %305, %301 : vector<8x256xf32>
    %cst_149 = arith.constant 1.42141378 : f32
    %307 = vector.broadcast %cst_149 : f32 to vector<8x256xf32>
    %308 = arith.addf %306, %307 : vector<8x256xf32>
    %309 = arith.mulf %308, %301 : vector<8x256xf32>
    %cst_150 = arith.constant -0.284496725 : f32
    %310 = vector.broadcast %cst_150 : f32 to vector<8x256xf32>
    %311 = arith.addf %309, %310 : vector<8x256xf32>
    %312 = arith.mulf %311, %301 : vector<8x256xf32>
    %cst_151 = arith.constant 0.254829586 : f32
    %313 = vector.broadcast %cst_151 : f32 to vector<8x256xf32>
    %314 = arith.addf %312, %313 : vector<8x256xf32>
    %315 = arith.mulf %314, %301 : vector<8x256xf32>
    %316 = arith.mulf %295, %295 : vector<8x256xf32>
    %cst_152 = arith.constant 0.000000e+00 : f32
    %317 = vector.broadcast %cst_152 : f32 to vector<8x256xf32>
    %318 = arith.subf %317, %316 : vector<8x256xf32>
    %319 = math.exp %318 : vector<8x256xf32>
    %320 = arith.mulf %315, %319 : vector<8x256xf32>
    %cst_153 = arith.constant 1.000000e+00 : f32
    %321 = vector.broadcast %cst_153 : f32 to vector<8x256xf32>
    %322 = arith.subf %321, %320 : vector<8x256xf32>
    %cst_154 = arith.constant 0.000000e+00 : f32
    %323 = vector.broadcast %cst_154 : f32 to vector<8x256xf32>
    %324 = arith.cmpf oge, %294, %323 : vector<8x256xf32>
    %cst_155 = arith.constant 0.000000e+00 : f32
    %325 = vector.broadcast %cst_155 : f32 to vector<8x256xf32>
    %326 = arith.subf %325, %322 : vector<8x256xf32>
    %327 = arith.select %324, %322, %326 : vector<8x256xi1>, vector<8x256xf32>
    %cst_156 = arith.constant 1.000000e+00 : f32
    %328 = vector.broadcast %cst_156 : f32 to vector<8x256xf32>
    %329 = arith.addf %328, %327 : vector<8x256xf32>
    %330 = arith.mulf %292, %329 : vector<8x256xf32>
    %331 = arith.truncf %330 : vector<8x256xf32> to vector<8x256xbf16>
    %c1_157 = arith.constant 1 : index
    %c0_158 = arith.constant 0 : index
    %c0_159 = arith.constant 0 : index
    %332 = vector.load %arg18[%c1_157, %c0_158, %c0_159] : memref<2x256x64xbf16, #tpu.memory_space<vmem>>, vector<1x256x64xbf16>
    %333 = vector.shape_cast %332 : vector<1x256x64xbf16> to vector<256x64xbf16>
    %cst_160 = arith.constant dense<0.000000e+00> : vector<8x64xf32>
    %334 = tpu.matmul %331, %333, %cst_160 {dimension_numbers = #tpu.dot_dimension_numbers<[1], [0], [0], [1], [0, 0, 1, 1], [], []>} : vector<8x256xbf16>, vector<256x64xbf16>, vector<8x64xf32> -> vector<8x64xf32>
    %c1_161 = arith.constant 1 : index
    %c0_162 = arith.constant 0 : index
    %c0_163 = arith.constant 0 : index
    %335 = vector.load %arg19[%c1_161, %c0_162, %c0_163] : memref<2x1x64xf32, #tpu.memory_space<vmem>>, vector<1x1x64xf32>
    %336 = vector.shape_cast %335 : vector<1x1x64xf32> to vector<1x64xf32>
    %337 = vector.broadcast %336 : vector<1x64xf32> to vector<8x64xf32>
    %338 = arith.addf %334, %337 : vector<8x64xf32>
    %339 = arith.addf %282, %338 : vector<8x64xf32>
    %c1_164 = arith.constant 1 : index
    %c0_165 = arith.constant 0 : index
    %c0_166 = arith.constant 0 : index
    %340 = vector.load %arg20[%c1_164, %c0_165, %c0_166] : memref<2x1x64xf32, #tpu.memory_space<vmem>>, vector<1x1x64xf32>
    %341 = vector.shape_cast %340 : vector<1x1x64xf32> to vector<1x64xf32>
    %c1_167 = arith.constant 1 : index
    %c0_168 = arith.constant 0 : index
    %c0_169 = arith.constant 0 : index
    %342 = vector.load %arg21[%c1_167, %c0_168, %c0_169] : memref<2x1x64xf32, #tpu.memory_space<vmem>>, vector<1x1x64xf32>
    %343 = vector.shape_cast %342 : vector<1x1x64xf32> to vector<1x64xf32>
    %cst_170 = arith.constant dense<0.000000e+00> : vector<8xf32>
    %344 = vector.multi_reduction <add>, %339, %cst_170 [1] : vector<8x64xf32> to vector<8xf32>
    %345 = vector.shape_cast %344 : vector<8xf32> to vector<8x1xf32>
    %cst_171 = arith.constant 6.400000e+01 : f32
    %346 = vector.broadcast %cst_171 : f32 to vector<8x1xf32>
    %347 = arith.divf %345, %346 : vector<8x1xf32>
    %348 = vector.broadcast %347 : vector<8x1xf32> to vector<8x64xf32>
    %349 = arith.subf %339, %348 : vector<8x64xf32>
    %350 = arith.mulf %349, %349 : vector<8x64xf32>
    %cst_172 = arith.constant dense<0.000000e+00> : vector<8xf32>
    %351 = vector.multi_reduction <add>, %350, %cst_172 [1] : vector<8x64xf32> to vector<8xf32>
    %352 = vector.shape_cast %351 : vector<8xf32> to vector<8x1xf32>
    %cst_173 = arith.constant 6.400000e+01 : f32
    %353 = vector.broadcast %cst_173 : f32 to vector<8x1xf32>
    %354 = arith.divf %352, %353 : vector<8x1xf32>
    %cst_174 = arith.constant 9.99999996E-13 : f32
    %355 = vector.broadcast %cst_174 : f32 to vector<8x1xf32>
    %356 = arith.addf %354, %355 : vector<8x1xf32>
    %357 = math.rsqrt %356 : vector<8x1xf32>
    %358 = vector.broadcast %357 : vector<8x1xf32> to vector<8x64xf32>
    %359 = arith.mulf %349, %358 : vector<8x64xf32>
    %360 = vector.broadcast %341 : vector<1x64xf32> to vector<8x64xf32>
    %361 = arith.mulf %359, %360 : vector<8x64xf32>
    %362 = vector.broadcast %343 : vector<1x64xf32> to vector<8x64xf32>
    %363 = arith.addf %361, %362 : vector<8x64xf32>
    %364 = vector.extract_strided_slice %363 {offsets = [0, 0], sizes = [1, 64], strides = [1, 1]} : vector<8x64xf32> to vector<1x64xf32>
    %c0_175 = arith.constant 0 : index
    %c0_176 = arith.constant 0 : index
    %c0_177 = arith.constant 0 : index
    %365 = vector.load %arg4[%c0_175, %c0_176, %c0_177] : memref<1x1x2xf32, #tpu.memory_space<vmem>>, vector<1x1x2xf32>
    %366 = vector.shape_cast %365 : vector<1x1x2xf32> to vector<1x2xf32>
    %367 = arith.truncf %364 : vector<1x64xf32> to vector<1x64xbf16>
    %c0_178 = arith.constant 0 : index
    %c0_179 = arith.constant 0 : index
    %368 = vector.load %arg22[%c0_178, %c0_179] : memref<64x64xbf16, #tpu.memory_space<vmem>>, vector<64x64xbf16>
    %cst_180 = arith.constant dense<0.000000e+00> : vector<1x64xf32>
    %369 = tpu.matmul %367, %368, %cst_180 {dimension_numbers = #tpu.dot_dimension_numbers<[1], [0], [0], [1], [0, 0, 1, 1], [], []>} : vector<1x64xbf16>, vector<64x64xbf16>, vector<1x64xf32> -> vector<1x64xf32>
    %370 = arith.truncf %366 : vector<1x2xf32> to vector<1x2xbf16>
    %c0_181 = arith.constant 0 : index
    %c0_182 = arith.constant 0 : index
    %371 = vector.load %arg23[%c0_181, %c0_182] : memref<2x64xbf16, #tpu.memory_space<vmem>>, vector<2x64xbf16>
    %cst_183 = arith.constant dense<0.000000e+00> : vector<1x64xf32>
    %372 = tpu.matmul %370, %371, %cst_183 {dimension_numbers = #tpu.dot_dimension_numbers<[1], [0], [0], [1], [0, 0, 1, 1], [], []>} : vector<1x2xbf16>, vector<2x64xbf16>, vector<1x64xf32> -> vector<1x64xf32>
    %373 = arith.addf %369, %372 : vector<1x64xf32>
    %c0_184 = arith.constant 0 : index
    %c0_185 = arith.constant 0 : index
    %374 = vector.load %arg24[%c0_184, %c0_185] : memref<1x64xf32, #tpu.memory_space<vmem>>, vector<1x64xf32>
    %375 = arith.addf %373, %374 : vector<1x64xf32>
    %376 = math.tanh %375 : vector<1x64xf32>
    %c0_186 = arith.constant 0 : index
    %c0_187 = arith.constant 0 : index
    %377 = vector.load %arg25[%c0_186, %c0_187] : memref<64x2xf32, #tpu.memory_space<vmem>>, vector<64x2xf32>
    %cst_188 = arith.constant dense<0.000000e+00> : vector<1x2xf32>
    %378 = tpu.matmul %376, %377, %cst_188 {dimension_numbers = #tpu.dot_dimension_numbers<[1], [0], [0], [1], [0, 0, 1, 1], [], []>} : vector<1x64xf32>, vector<64x2xf32>, vector<1x2xf32> -> vector<1x2xf32>
    %c0_189 = arith.constant 0 : index
    %c0_190 = arith.constant 0 : index
    %379 = vector.load %arg26[%c0_189, %c0_190] : memref<1x2xf32, #tpu.memory_space<vmem>>, vector<1x2xf32>
    %380 = arith.addf %378, %379 : vector<1x2xf32>
    %cst_191 = arith.constant dense<0xFF800000> : vector<1xf32>
    %381 = vector.multi_reduction <maximumf>, %380, %cst_191 [1] : vector<1x2xf32> to vector<1xf32>
    %382 = vector.shape_cast %381 : vector<1xf32> to vector<1x1xf32>
    %383 = vector.broadcast %382 : vector<1x1xf32> to vector<1x2xf32>
    %384 = arith.subf %380, %383 : vector<1x2xf32>
    %385 = math.exp %384 : vector<1x2xf32>
    %cst_192 = arith.constant dense<0.000000e+00> : vector<1xf32>
    %386 = vector.multi_reduction <add>, %385, %cst_192 [1] : vector<1x2xf32> to vector<1xf32>
    %387 = vector.shape_cast %386 : vector<1xf32> to vector<1x1xf32>
    %388 = vector.broadcast %387 : vector<1x1xf32> to vector<1x2xf32>
    %389 = arith.divf %385, %388 : vector<1x2xf32>
    %cst_193 = arith.constant dense<0xFF800000> : vector<1xf32>
    %390 = vector.multi_reduction <maximumf>, %389, %cst_193 [1] : vector<1x2xf32> to vector<1xf32>
    %391 = vector.shape_cast %390 : vector<1xf32> to vector<1x1xf32>
    %392 = vector.broadcast %391 : vector<1x1xf32> to vector<1x2xf32>
    %393 = arith.subf %389, %392 : vector<1x2xf32>
    %394 = math.exp %393 : vector<1x2xf32>
    %cst_194 = arith.constant dense<0.000000e+00> : vector<1xf32>
    %395 = vector.multi_reduction <add>, %394, %cst_194 [1] : vector<1x2xf32> to vector<1xf32>
    %396 = vector.shape_cast %395 : vector<1xf32> to vector<1x1xf32>
    %397 = vector.broadcast %396 : vector<1x1xf32> to vector<1x2xf32>
    %398 = arith.divf %394, %397 : vector<1x2xf32>
    %399 = vector.extract_strided_slice %398 {offsets = [0, 0], sizes = [1, 1], strides = [1, 1]} : vector<1x2xf32> to vector<1x1xf32>
    %400 = vector.broadcast %399 : vector<1x1xf32> to vector<1x64xf32>
    %401 = arith.mulf %364, %400 : vector<1x64xf32>
    %402 = vector.extract_strided_slice %398 {offsets = [0, 1], sizes = [1, 1], strides = [1, 1]} : vector<1x2xf32> to vector<1x1xf32>
    %403 = vector.broadcast %402 : vector<1x1xf32> to vector<1x2xf32>
    %404 = arith.mulf %366, %403 : vector<1x2xf32>
    %405 = arith.truncf %401 : vector<1x64xf32> to vector<1x64xbf16>
    %c0_195 = arith.constant 0 : index
    %c0_196 = arith.constant 0 : index
    %406 = vector.load %arg27[%c0_195, %c0_196] : memref<64x512xbf16, #tpu.memory_space<vmem>>, vector<64x512xbf16>
    %cst_197 = arith.constant dense<0.000000e+00> : vector<1x512xf32>
    %407 = tpu.matmul %405, %406, %cst_197 {dimension_numbers = #tpu.dot_dimension_numbers<[1], [0], [0], [1], [0, 0, 1, 1], [], []>} : vector<1x64xbf16>, vector<64x512xbf16>, vector<1x512xf32> -> vector<1x512xf32>
    %408 = arith.truncf %404 : vector<1x2xf32> to vector<1x2xbf16>
    %c0_198 = arith.constant 0 : index
    %c0_199 = arith.constant 0 : index
    %409 = vector.load %arg28[%c0_198, %c0_199] : memref<2x512xbf16, #tpu.memory_space<vmem>>, vector<2x512xbf16>
    %cst_200 = arith.constant dense<0.000000e+00> : vector<1x512xf32>
    %410 = tpu.matmul %408, %409, %cst_200 {dimension_numbers = #tpu.dot_dimension_numbers<[1], [0], [0], [1], [0, 0, 1, 1], [], []>} : vector<1x2xbf16>, vector<2x512xbf16>, vector<1x512xf32> -> vector<1x512xf32>
    %411 = arith.addf %407, %410 : vector<1x512xf32>
    %c0_201 = arith.constant 0 : index
    %c0_202 = arith.constant 0 : index
    %412 = vector.load %arg29[%c0_201, %c0_202] : memref<1x512xf32, #tpu.memory_space<vmem>>, vector<1x512xf32>
    %413 = arith.addf %411, %412 : vector<1x512xf32>
    %cst_203 = arith.constant 5.000000e-01 : f32
    %414 = vector.broadcast %cst_203 : f32 to vector<1x512xf32>
    %415 = arith.mulf %414, %413 : vector<1x512xf32>
    %cst_204 = arith.constant 0.707106769 : f32
    %416 = vector.broadcast %cst_204 : f32 to vector<1x512xf32>
    %417 = arith.mulf %413, %416 : vector<1x512xf32>
    %418 = math.absf %417 : vector<1x512xf32>
    %cst_205 = arith.constant 0.327591091 : f32
    %419 = vector.broadcast %cst_205 : f32 to vector<1x512xf32>
    %420 = arith.mulf %419, %418 : vector<1x512xf32>
    %cst_206 = arith.constant 1.000000e+00 : f32
    %421 = vector.broadcast %cst_206 : f32 to vector<1x512xf32>
    %422 = arith.addf %421, %420 : vector<1x512xf32>
    %cst_207 = arith.constant 1.000000e+00 : f32
    %423 = vector.broadcast %cst_207 : f32 to vector<1x512xf32>
    %424 = arith.divf %423, %422 : vector<1x512xf32>
    %cst_208 = arith.constant 1.06140542 : f32
    %425 = vector.broadcast %cst_208 : f32 to vector<1x512xf32>
    %426 = arith.mulf %425, %424 : vector<1x512xf32>
    %cst_209 = arith.constant -1.45315206 : f32
    %427 = vector.broadcast %cst_209 : f32 to vector<1x512xf32>
    %428 = arith.addf %426, %427 : vector<1x512xf32>
    %429 = arith.mulf %428, %424 : vector<1x512xf32>
    %cst_210 = arith.constant 1.42141378 : f32
    %430 = vector.broadcast %cst_210 : f32 to vector<1x512xf32>
    %431 = arith.addf %429, %430 : vector<1x512xf32>
    %432 = arith.mulf %431, %424 : vector<1x512xf32>
    %cst_211 = arith.constant -0.284496725 : f32
    %433 = vector.broadcast %cst_211 : f32 to vector<1x512xf32>
    %434 = arith.addf %432, %433 : vector<1x512xf32>
    %435 = arith.mulf %434, %424 : vector<1x512xf32>
    %cst_212 = arith.constant 0.254829586 : f32
    %436 = vector.broadcast %cst_212 : f32 to vector<1x512xf32>
    %437 = arith.addf %435, %436 : vector<1x512xf32>
    %438 = arith.mulf %437, %424 : vector<1x512xf32>
    %439 = arith.mulf %418, %418 : vector<1x512xf32>
    %cst_213 = arith.constant 0.000000e+00 : f32
    %440 = vector.broadcast %cst_213 : f32 to vector<1x512xf32>
    %441 = arith.subf %440, %439 : vector<1x512xf32>
    %442 = math.exp %441 : vector<1x512xf32>
    %443 = arith.mulf %438, %442 : vector<1x512xf32>
    %cst_214 = arith.constant 1.000000e+00 : f32
    %444 = vector.broadcast %cst_214 : f32 to vector<1x512xf32>
    %445 = arith.subf %444, %443 : vector<1x512xf32>
    %cst_215 = arith.constant 0.000000e+00 : f32
    %446 = vector.broadcast %cst_215 : f32 to vector<1x512xf32>
    %447 = arith.cmpf oge, %417, %446 : vector<1x512xf32>
    %cst_216 = arith.constant 0.000000e+00 : f32
    %448 = vector.broadcast %cst_216 : f32 to vector<1x512xf32>
    %449 = arith.subf %448, %445 : vector<1x512xf32>
    %450 = arith.select %447, %445, %449 : vector<1x512xi1>, vector<1x512xf32>
    %cst_217 = arith.constant 1.000000e+00 : f32
    %451 = vector.broadcast %cst_217 : f32 to vector<1x512xf32>
    %452 = arith.addf %451, %450 : vector<1x512xf32>
    %453 = arith.mulf %415, %452 : vector<1x512xf32>
    %c0_218 = arith.constant 0 : index
    %c0_219 = arith.constant 0 : index
    %454 = vector.load %arg30[%c0_218, %c0_219] : memref<1x512xf32, #tpu.memory_space<vmem>>, vector<1x512xf32>
    %c0_220 = arith.constant 0 : index
    %c0_221 = arith.constant 0 : index
    %455 = vector.load %arg31[%c0_220, %c0_221] : memref<1x512xf32, #tpu.memory_space<vmem>>, vector<1x512xf32>
    %cst_222 = arith.constant dense<0.000000e+00> : vector<1xf32>
    %456 = vector.multi_reduction <add>, %453, %cst_222 [1] : vector<1x512xf32> to vector<1xf32>
    %457 = vector.shape_cast %456 : vector<1xf32> to vector<1x1xf32>
    %cst_223 = arith.constant 5.120000e+02 : f32
    %458 = vector.broadcast %cst_223 : f32 to vector<1x1xf32>
    %459 = arith.divf %457, %458 : vector<1x1xf32>
    %460 = vector.broadcast %459 : vector<1x1xf32> to vector<1x512xf32>
    %461 = arith.subf %453, %460 : vector<1x512xf32>
    %462 = arith.mulf %461, %461 : vector<1x512xf32>
    %cst_224 = arith.constant dense<0.000000e+00> : vector<1xf32>
    %463 = vector.multi_reduction <add>, %462, %cst_224 [1] : vector<1x512xf32> to vector<1xf32>
    %464 = vector.shape_cast %463 : vector<1xf32> to vector<1x1xf32>
    %cst_225 = arith.constant 5.120000e+02 : f32
    %465 = vector.broadcast %cst_225 : f32 to vector<1x1xf32>
    %466 = arith.divf %464, %465 : vector<1x1xf32>
    %cst_226 = arith.constant 9.99999974E-6 : f32
    %467 = vector.broadcast %cst_226 : f32 to vector<1x1xf32>
    %468 = arith.addf %466, %467 : vector<1x1xf32>
    %469 = math.rsqrt %468 : vector<1x1xf32>
    %470 = vector.broadcast %469 : vector<1x1xf32> to vector<1x512xf32>
    %471 = arith.mulf %461, %470 : vector<1x512xf32>
    %472 = arith.mulf %471, %454 : vector<1x512xf32>
    %473 = arith.addf %472, %455 : vector<1x512xf32>
    %c0_227 = arith.constant 0 : index
    %c0_228 = arith.constant 0 : index
    %474 = vector.load %arg32[%c0_227, %c0_228] : memref<512x3xf32, #tpu.memory_space<vmem>>, vector<512x3xf32>
    %cst_229 = arith.constant dense<0.000000e+00> : vector<1x3xf32>
    %475 = tpu.matmul %473, %474, %cst_229 {dimension_numbers = #tpu.dot_dimension_numbers<[1], [0], [0], [1], [0, 0, 1, 1], [], []>} : vector<1x512xf32>, vector<512x3xf32>, vector<1x3xf32> -> vector<1x3xf32>
    %c0_230 = arith.constant 0 : index
    %c0_231 = arith.constant 0 : index
    %476 = vector.load %arg33[%c0_230, %c0_231] : memref<1x3xf32, #tpu.memory_space<vmem>>, vector<1x3xf32>
    %477 = arith.addf %475, %476 : vector<1x3xf32>
    %c0_232 = arith.constant 0 : index
    %c0_233 = arith.constant 0 : index
    %c0_234 = arith.constant 0 : index
    %478 = vector.load %arg34[%c0_232, %c0_233, %c0_234] : memref<1x1x3xf32, #tpu.memory_space<vmem>>, vector<1x1x3xf32>
    %479 = vector.shape_cast %478 : vector<1x1x3xf32> to vector<1x3xf32>
    %480 = vector.shape_cast %477 : vector<1x3xf32> to vector<1x1x3xf32>
    tpu.vector_store %arg34[%c0_232, %c0_233, %c0_234], %480 {strides = array<i32>} : memref<1x1x3xf32, #tpu.memory_space<vmem>>, vector<1x1x3xf32>,
    return
  }
  func.func @transform_0(%arg0: i32) -> (i32, i32, i32) {
    %c0_i32 = arith.constant 0 : i32
    %c0_i32_0 = arith.constant 0 : i32
    %c0_i32_1 = arith.constant 0 : i32
    return %arg0, %c0_i32, %c0_i32_0 : i32, i32, i32
  }
  func.func @transform_1(%arg0: i32) -> (i32, i32, i32) {
    %c0_i32 = arith.constant 0 : i32
    %c0_i32_0 = arith.constant 0 : i32
    %c0_i32_1 = arith.constant 0 : i32
    return %arg0, %c0_i32, %c0_i32_0 : i32, i32, i32
  }
  func.func @transform_2(%arg0: i32) -> (i32, i32, i32) {
    %c0_i32 = arith.constant 0 : i32
    %c0_i32_0 = arith.constant 0 : i32
    %c0_i32_1 = arith.constant 0 : i32
    return %arg0, %c0_i32, %c0_i32_0 : i32, i32, i32
  }
  func.func @transform_3(%arg0: i32) -> (i32, i32, i32) {
    %c0_i32 = arith.constant 0 : i32
    %c0_i32_0 = arith.constant 0 : i32
    %c0_i32_1 = arith.constant 0 : i32
    return %arg0, %c0_i32, %c0_i32_0 : i32, i32, i32
  }
  func.func @transform_4(%arg0: i32) -> (i32, i32) {
    %c0_i32 = arith.constant 0 : i32
    %c0_i32_0 = arith.constant 0 : i32
    %c0_i32_1 = arith.constant 0 : i32
    return %c0_i32, %c0_i32_0 : i32, i32
  }
  func.func @transform_5(%arg0: i32) -> (i32, i32) {
    %c0_i32 = arith.constant 0 : i32
    %c0_i32_0 = arith.constant 0 : i32
    %c0_i32_1 = arith.constant 0 : i32
    return %c0_i32, %c0_i32_0 : i32, i32
  }
  func.func @transform_6(%arg0: i32) -> (i32, i32) {
    %c0_i32 = arith.constant 0 : i32
    %c0_i32_0 = arith.constant 0 : i32
    %c0_i32_1 = arith.constant 0 : i32
    return %c0_i32, %c0_i32_0 : i32, i32
  }
  func.func @transform_7(%arg0: i32) -> (i32, i32) {
    %c0_i32 = arith.constant 0 : i32
    %c0_i32_0 = arith.constant 0 : i32
    %c0_i32_1 = arith.constant 0 : i32
    return %c0_i32, %c0_i32_0 : i32, i32
  }
  func.func @transform_8(%arg0: i32) -> (i32, i32) {
    %c0_i32 = arith.constant 0 : i32
    %c0_i32_0 = arith.constant 0 : i32
    %c0_i32_1 = arith.constant 0 : i32
    return %c0_i32, %c0_i32_0 : i32, i32
  }
  func.func @transform_9(%arg0: i32) -> (i32, i32, i32, i32) {
    %c0_i32 = arith.constant 0 : i32
    %c0_i32_0 = arith.constant 0 : i32
    %c0_i32_1 = arith.constant 0 : i32
    %c0_i32_2 = arith.constant 0 : i32
    %c0_i32_3 = arith.constant 0 : i32
    return %c0_i32, %c0_i32_0, %c0_i32_1, %c0_i32_2 : i32, i32, i32, i32
  }
  func.func @transform_10(%arg0: i32) -> (i32, i32, i32, i32) {
    %c0_i32 = arith.constant 0 : i32
    %c0_i32_0 = arith.constant 0 : i32
    %c0_i32_1 = arith.constant 0 : i32
    %c0_i32_2 = arith.constant 0 : i32
    %c0_i32_3 = arith.constant 0 : i32
    return %c0_i32, %c0_i32_0, %c0_i32_1, %c0_i32_2 : i32, i32, i32, i32
  }
  func.func @transform_11(%arg0: i32) -> (i32, i32, i32, i32) {
    %c0_i32 = arith.constant 0 : i32
    %c0_i32_0 = arith.constant 0 : i32
    %c0_i32_1 = arith.constant 0 : i32
    %c0_i32_2 = arith.constant 0 : i32
    %c0_i32_3 = arith.constant 0 : i32
    return %c0_i32, %c0_i32_0, %c0_i32_1, %c0_i32_2 : i32, i32, i32, i32
  }
  func.func @transform_12(%arg0: i32) -> (i32, i32, i32) {
    %c0_i32 = arith.constant 0 : i32
    %c0_i32_0 = arith.constant 0 : i32
    %c0_i32_1 = arith.constant 0 : i32
    %c0_i32_2 = arith.constant 0 : i32
    return %c0_i32, %c0_i32_0, %c0_i32_1 : i32, i32, i32
  }
  func.func @transform_13(%arg0: i32) -> (i32, i32, i32) {
    %c0_i32 = arith.constant 0 : i32
    %c0_i32_0 = arith.constant 0 : i32
    %c0_i32_1 = arith.constant 0 : i32
    %c0_i32_2 = arith.constant 0 : i32
    return %c0_i32, %c0_i32_0, %c0_i32_1 : i32, i32, i32
  }
  func.func @transform_14(%arg0: i32) -> (i32, i32, i32) {
    %c0_i32 = arith.constant 0 : i32
    %c0_i32_0 = arith.constant 0 : i32
    %c0_i32_1 = arith.constant 0 : i32
    %c0_i32_2 = arith.constant 0 : i32
    return %c0_i32, %c0_i32_0, %c0_i32_1 : i32, i32, i32
  }
  func.func @transform_15(%arg0: i32) -> (i32, i32, i32) {
    %c0_i32 = arith.constant 0 : i32
    %c0_i32_0 = arith.constant 0 : i32
    %c0_i32_1 = arith.constant 0 : i32
    %c0_i32_2 = arith.constant 0 : i32
    return %c0_i32, %c0_i32_0, %c0_i32_1 : i32, i32, i32
  }
  func.func @transform_16(%arg0: i32) -> (i32, i32, i32) {
    %c0_i32 = arith.constant 0 : i32
    %c0_i32_0 = arith.constant 0 : i32
    %c0_i32_1 = arith.constant 0 : i32
    %c0_i32_2 = arith.constant 0 : i32
    return %c0_i32, %c0_i32_0, %c0_i32_1 : i32, i32, i32
  }
  func.func @transform_17(%arg0: i32) -> (i32, i32, i32) {
    %c0_i32 = arith.constant 0 : i32
    %c0_i32_0 = arith.constant 0 : i32
    %c0_i32_1 = arith.constant 0 : i32
    %c0_i32_2 = arith.constant 0 : i32
    return %c0_i32, %c0_i32_0, %c0_i32_1 : i32, i32, i32
  }
  func.func @transform_18(%arg0: i32) -> (i32, i32, i32) {
    %c0_i32 = arith.constant 0 : i32
    %c0_i32_0 = arith.constant 0 : i32
    %c0_i32_1 = arith.constant 0 : i32
    %c0_i32_2 = arith.constant 0 : i32
    return %c0_i32, %c0_i32_0, %c0_i32_1 : i32, i32, i32
  }
  func.func @transform_19(%arg0: i32) -> (i32, i32, i32) {
    %c0_i32 = arith.constant 0 : i32
    %c0_i32_0 = arith.constant 0 : i32
    %c0_i32_1 = arith.constant 0 : i32
    %c0_i32_2 = arith.constant 0 : i32
    return %c0_i32, %c0_i32_0, %c0_i32_1 : i32, i32, i32
  }
  func.func @transform_20(%arg0: i32) -> (i32, i32, i32) {
    %c0_i32 = arith.constant 0 : i32
    %c0_i32_0 = arith.constant 0 : i32
    %c0_i32_1 = arith.constant 0 : i32
    %c0_i32_2 = arith.constant 0 : i32
    return %c0_i32, %c0_i32_0, %c0_i32_1 : i32, i32, i32
  }
  func.func @transform_21(%arg0: i32) -> (i32, i32) {
    %c0_i32 = arith.constant 0 : i32
    %c0_i32_0 = arith.constant 0 : i32
    %c0_i32_1 = arith.constant 0 : i32
    return %c0_i32, %c0_i32_0 : i32, i32
  }
  func.func @transform_22(%arg0: i32) -> (i32, i32) {
    %c0_i32 = arith.constant 0 : i32
    %c0_i32_0 = arith.constant 0 : i32
    %c0_i32_1 = arith.constant 0 : i32
    return %c0_i32, %c0_i32_0 : i32, i32
  }
  func.func @transform_23(%arg0: i32) -> (i32, i32) {
    %c0_i32 = arith.constant 0 : i32
    %c0_i32_0 = arith.constant 0 : i32
    %c0_i32_1 = arith.constant 0 : i32
    return %c0_i32, %c0_i32_0 : i32, i32
  }
  func.func @transform_24(%arg0: i32) -> (i32, i32) {
    %c0_i32 = arith.constant 0 : i32
    %c0_i32_0 = arith.constant 0 : i32
    %c0_i32_1 = arith.constant 0 : i32
    return %c0_i32, %c0_i32_0 : i32, i32
  }
  func.func @transform_25(%arg0: i32) -> (i32, i32) {
    %c0_i32 = arith.constant 0 : i32
    %c0_i32_0 = arith.constant 0 : i32
    %c0_i32_1 = arith.constant 0 : i32
    return %c0_i32, %c0_i32_0 : i32, i32
  }
  func.func @transform_26(%arg0: i32) -> (i32, i32) {
    %c0_i32 = arith.constant 0 : i32
    %c0_i32_0 = arith.constant 0 : i32
    %c0_i32_1 = arith.constant 0 : i32
    return %c0_i32, %c0_i32_0 : i32, i32
  }
  func.func @transform_27(%arg0: i32) -> (i32, i32) {
    %c0_i32 = arith.constant 0 : i32
    %c0_i32_0 = arith.constant 0 : i32
    %c0_i32_1 = arith.constant 0 : i32
    return %c0_i32, %c0_i32_0 : i32, i32
  }
  func.func @transform_28(%arg0: i32) -> (i32, i32) {
    %c0_i32 = arith.constant 0 : i32
    %c0_i32_0 = arith.constant 0 : i32
    %c0_i32_1 = arith.constant 0 : i32
    return %c0_i32, %c0_i32_0 : i32, i32
  }
  func.func @transform_29(%arg0: i32) -> (i32, i32) {
    %c0_i32 = arith.constant 0 : i32
    %c0_i32_0 = arith.constant 0 : i32
    %c0_i32_1 = arith.constant 0 : i32
    return %c0_i32, %c0_i32_0 : i32, i32
  }
  func.func @transform_30(%arg0: i32) -> (i32, i32) {
    %c0_i32 = arith.constant 0 : i32
    %c0_i32_0 = arith.constant 0 : i32
    %c0_i32_1 = arith.constant 0 : i32
    return %c0_i32, %c0_i32_0 : i32, i32
  }
  func.func @transform_31(%arg0: i32) -> (i32, i32) {
    %c0_i32 = arith.constant 0 : i32
    %c0_i32_0 = arith.constant 0 : i32
    %c0_i32_1 = arith.constant 0 : i32
    return %c0_i32, %c0_i32_0 : i32, i32
  }
  func.func @transform_32(%arg0: i32) -> (i32, i32) {
    %c0_i32 = arith.constant 0 : i32
    %c0_i32_0 = arith.constant 0 : i32
    %c0_i32_1 = arith.constant 0 : i32
    return %c0_i32, %c0_i32_0 : i32, i32
  }
  func.func @transform_33(%arg0: i32) -> (i32, i32, i32) {
    %c0_i32 = arith.constant 0 : i32
    %c0_i32_0 = arith.constant 0 : i32
    %c0_i32_1 = arith.constant 0 : i32
    return %arg0, %c0_i32, %c0_i32_0 : i32, i32, i32
  }
}

</mosaic_0001>

<bundles_post_ra>
// kernel: hybrid_bert_forward.1
= control target key start
LH: loop header
LB: loop body
LE: loop exit
PB: predicated region body
PF: predicated region fallthrough
CT: control target
= control target key end

     0   :  { %s6094_s6 = smov 1   ;;  %s6095_s10 = smov 2   ;;  %s7002_s0 = inlined_call_operand.smem [shape: u32[34], index: -1, kind: input, shape index: {}] }
   0x1   :  { %s6142_s5 = sld [smem:[%s7002_s0]]   ;;  %s6096_s14 = smov 3  }
   0x2   :  { %s6147_s9 = sld [smem:[%s7002_s0 + %s6094_s6]]   ;;  %s6097_s18 = smov 4  }
   0x3   :  { %s6152_s13 = sld [smem:[%s7002_s0 + %s6095_s10]]   ;;  %s6098_s22 = smov 5  }
   0x4   :  { %s6157_s17 = sld [smem:[%s7002_s0 + %s6096_s14]]   ;;  %s6099_s26 = smov 6  }
   0x5   :  { %s6162_s21 = sld [smem:[%s7002_s0 + %s6097_s18]]   ;;  %s6100_s30 = smov 7  }
   0x6   :  { %s6167_s25 = sld [smem:[%s7002_s0 + %s6098_s22]]   ;;  %s6101_s4 = smov 8  }
   0x7   :  { %7021 = sst [smem:[#allocation5_spill]] %s6142_s5  ;;  %s6102_s10 = smov 9  }
   0x8   :  { %7022 = sst [smem:[#allocation6_spill]] %s6147_s9  ;;  %s6103_s15 = smov 10  }
   0x9   :  { %7023 = sst [smem:[#allocation7_spill]] %s6152_s13  ;;  %s6104_s20 = smov 11  }
   0xa   :  { %7024 = sst [smem:[#allocation8_spill]] %s6157_s17  ;;  %s6106_s1 = smov 13  }
   0xb   :  { %s6172_s29 = sld [smem:[%s7002_s0 + %s6099_s26]]   ;;  %s6105_s26 = smov 12  }
   0xc   :  { %s6177_s3 = sld [smem:[%s7002_s0 + %s6100_s30]]   ;;  %s6107_s7 = smov 14  }
   0xd   :  { %s6182_s8 = sld [smem:[%s7002_s0 + %s6101_s4]]   ;;  %s6109_s22 = smov 16  }
   0xe   :  { %s6187_s14 = sld [smem:[%s7002_s0 + %s6102_s10]]   ;;  %s6110_s28 = smov 17  }
   0xf   :  { %s6192_s19 = sld [smem:[%s7002_s0 + %s6103_s15]]   ;;  %s6108_s15 = smov 15  }
  0x10   :  { %s6197_s24 = sld [smem:[%s7002_s0 + %s6104_s20]]  }
  0x11   :  { %s6202_s30 = sld [smem:[%s7002_s0 + %s6105_s26]]  }
  0x12   :  { %7025 = sst [smem:[#allocation9_spill]] %s6177_s3 }
  0x13   :  { %7026 = sst [smem:[#allocation10_spill]] %s6182_s8 }
  0x14   :  { %7027 = sst [smem:[#allocation11_spill]] %s6187_s14 }
  0x15   :  { %s6207_s6 = sld [smem:[%s7002_s0 + %s6106_s1]]  }
  0x16   :  { %s6212_s12 = sld [smem:[%s7002_s0 + %s6107_s7]]   ;;  %s6111_s7 = smov 18  }
  0x17   :  { %s6217_s20 = sld [smem:[%s7002_s0 + %s6108_s15]]   ;;  %s6112_s15 = smov 19  }
  0x18   :  { %s6222_s27 = sld [smem:[%s7002_s0 + %s6109_s22]]   ;;  %s6113_s22 = smov 20  }
  0x19   :  { %s6227_s4 = sld [smem:[%s7002_s0 + %s6110_s28]]   ;;  %s6114_s28 = smov 21  }
  0x1a   :  { %s6232_s17 = sld [smem:[%s7002_s0 + %s6111_s7]]   ;;  %s6115_s7 = smov 22  }
  0x1b   :  { %7028 = sst [smem:[#allocation12_spill]] %s6207_s6 }
  0x1c   :  { %7029 = sst [smem:[#allocation13_spill]] %s6212_s12 }
  0x1d   :  { %s6237_s12 = sld [smem:[%s7002_s0 + %s6112_s15]]   ;;  %s6116_s15 = smov 23  }
  0x1e   :  { %7030 = sst [smem:[#allocation14_spill]] %s6222_s27 }
  0x1f   :  { %7031 = sst [smem:[#allocation15_spill]] %s6227_s4 }
  0x20   :  { %7032 = sst [smem:[#allocation16_spill]] %s6232_s17 }
  0x21   :  { %s6242_s27 = sld [smem:[%s7002_s0 + %s6113_s22]]   ;;  %s6117_s22 = smov 24  }
  0x22   :  { %s6247_s4 = sld [smem:[%s7002_s0 + %s6114_s28]]   ;;  %s6118_s28 = smov 25  }
  0x23   :  { %7033 = sst [smem:[#allocation17_spill]] %s6237_s12 }
  0x24   :  { %s6252_s17 = sld [smem:[%s7002_s0 + %s6115_s7]]   ;;  %s6119_s7 = smov 26  }
  0x25   :  { %s6257_s12 = sld [smem:[%s7002_s0 + %s6116_s15]]   ;;  %s6120_s15 = smov 27  }
  0x27   :  { %7034 = sst [smem:[#allocation18_spill]] %s6242_s27 }
  0x28   :  { %7035 = sst [smem:[#allocation19_spill]] %s6247_s4 }
  0x29   :  { %s6262_s27 = sld [smem:[%s7002_s0 + %s6117_s22]]   ;;  %s6121_s22 = smov 28  }
  0x2a   :  { %7036 = sst [smem:[#allocation20_spill]] %s6252_s17 }
  0x2b   :  { %7037 = sst [smem:[#allocation21_spill]] %s6257_s12 }
  0x2c   :  { %s6267_s4 = sld [smem:[%s7002_s0 + %s6118_s28]]   ;;  %s6122_s28 = smov 29  }
  0x2d   :  { %s6272_s17 = sld [smem:[%s7002_s0 + %s6119_s7]]   ;;  %s6123_s7 = smov 30  }
  0x2e   :  { %s6277_s12 = sld [smem:[%s7002_s0 + %s6120_s15]]   ;;  %s6124_s15 = smov 31  }
  0x2f   :  { %7038 = sst [smem:[#allocation22_spill]] %s6262_s27 }
  0x30   :  { %s6282_s27 = sld [smem:[%s7002_s0 + %s6121_s22]]   ;;  %s6125_s22 = smov 32  }
  0x32   :  { %7039 = sst [smem:[#allocation23_spill]] %s6267_s4 }
  0x33   :  { %7040 = sst [smem:[#allocation24_spill]] %s6272_s17 }
  0x34   :  { %7041 = sst [smem:[#allocation25_spill]] %s6277_s12 }
  0x35   :  { %s6287_s4 = sld [smem:[%s7002_s0 + %s6122_s28]]   ;;  %s6126_s28 = smov 33  }
  0x36   :  { %7042 = sst [smem:[#allocation26_spill]] %s6282_s27 }
  0x37   :  { %s6292_s17 = sld [smem:[%s7002_s0 + %s6123_s7]]  }
  0x38   :  { %s6297_s12 = sld [smem:[%s7002_s0 + %s6124_s15]]  }
  0x39   :  { %s6302_s27 = sld [smem:[%s7002_s0 + %s6125_s22]]  }
  0x3b   :  { %7043 = sst [smem:[#allocation27_spill]] %s6287_s4 }
  0x3c   :  { %s6307_s4 = sld [smem:[%s7002_s0 + %s6126_s28]]  }
  0x3e   :  { %7044 = sst [smem:[#allocation28_spill]] %s6297_s12 }
  0x3f   :  { %72 = vsyncpa [#allocation3], 0 }
  0x40   :  { %74 = vsyncpa [#allocation3 + $0x1], 0  ;;  %s6309_s7 = smov 0   ;;  %s6311_s10 = smov 0  }
  0x41   :  { %s6313_s11 = smov 0   ;;  %s6315_s15 = smov 0  }
  0x42 LB: > { %s7045_s14 = sld [smem:[#allocation11_spill]]  ;;  %s7046_s12 = sld [smem:[#allocation28_spill]]  ;;  %s6088_s11 = sphi %s6313_s11, %s7073_s11   ;;  %s6084_s10 = sphi %s6311_s10, %s7072_s10   ;;  %s6080_s7 = sphi %s6309_s7, %s7071_s7   ;;  %s6092_s15 = sphi %s6315_s15, %s7074_s15  }
  0x43   : > { %s7047_s6 = sld [smem:[#allocation12_spill]]  ;;  %s6330_s0 = sadd.s32 4294967295, %s6092_s15  }
  0x44   : > { %s4833_s16 = sadd.s32 4294967294, %s6092_s15   ;;  %s6334_s18 = sadd.s32 1, %s6092_s15  }
  0x45   : > { %s800_s22 = sadd.s32 1, %s6088_s11  ;;  %s797_s23 = ssub.s32 %s6092_s15, %s6334_s18 }
  0x46   : > { %p810_p0 = scmp.ne.s32.totalorder %s6088_s11, %s6084_s10  ;;  %p798_p1 = scmp.eq.s32.totalorder %s797_s23, 0 }
  0x47   : > { %p811_p2 = scmp.eq.s32.totalorder %s6330_s0, 1  ;;  %p816_p3 = scmp.ne.s32.totalorder %s6084_s10, %s6080_s7 }
  0x48   : > { %p817_p4 = scmp.eq.s32.totalorder %s4833_s16, 1  ;;  %p4836_p7 = scmp.ge.s32.totalorder %s6092_s15, 1 }
  0x49   : > { %s6345_s26 = scalar_select %p798_p1, %s6088_s11, %s800_s22  }
  0x4a   : > { %p6347_p5 = por %p811_p2, %p810_p0  ;;  %p6351_p6 = por %p817_p4, %p816_p3 }
  0x4b   : > { %p948_p8 = scmp.lt.s32.totalorder %s6092_s15, 3 }
  0x4d   : > { %p949_p9 = pnand %p4836_p7, %p948_p8 }
  0x4e   : > { %p1040_p10 = scmp.lt.s32.totalorder (!%p949_p9), %s6330_s0, 1  ;;  %v1069_v0 = vld [vmem:[%s6162_s21] sm:$0xff] (!%p949_p9)  ;;  %v1070_v1 = vld [vmem:[%s6162_s21 + $0x8] sm:$0xff] (!%p949_p9)  ;;  %v1071_v2 = vld [vmem:[%s6162_s21 + $0x10] sm:$0xff] (!%p949_p9)  ;;  %s7050_s5 = sld [smem:[#allocation5_spill]] (!%p949_p9)  ;;  %v6127_v3 = vmov (!%p949_p9), 0   ;;  %v1057_v16 = vlaneseq (!%p949_p9) }
  0x4f   : > { %952 = sbr.rel (%p949_p9) target bundleno = 7458 (0x1d22), region = 152  ;;  %5817 = vset.pattern.permute.xlu0 (!%p949_p9), %v6127_v3  ;;  %s7051_s9 = sld [smem:[#allocation6_spill]] (!%p949_p9)  ;;  %v6128_v4 = vmov (!%p949_p9), 0.0|0.0   ;;  %v5653_v5 = vpack.c.bf16 (!%p949_p9), %v1070_v1, %v1069_v0  ;;  %v1072_v6 = vld [vmem:[%s6162_s21 + $0x18] sm:$0xff] (!%p949_p9)  ;;  %v1073_v7 = vld [vmem:[%s6162_s21 + $0x20] sm:$0xff] (!%p949_p9)  ;;  %v6129_v8 = vmov (!%p949_p9), 0.0  }
  0x50   : > { %5652 = vmatprep.subr.bf16.mxu0 (!%p949_p9), %v6128_v4  ;;  %5386 = vmatprep.subr.mxu1 (!%p949_p9), %v6129_v8  ;;  %v5656_v9 = vpack.c.bf16 (!%p949_p9), %v1072_v6, %v1071_v2  ;;  %v1074_v10 = vld [vmem:[%s6162_s21 + $0x28] sm:$0xff] (!%p949_p9)  ;;  %vm1081_vm0 = vcmask (!%p949_p9), 1041408   ;;  %vm6130_vm1 = vmmov (!%p949_p9), 0   ;;  %v1075_v14 = vld [vmem:[%s6162_s21 + $0x30] sm:$0x3] (!%p949_p9)  ;;  %v1058_v17 = vand.u32 (!%p949_p9), 127, %v1057_v16 }
  0x51   : > { %5654 = vmatpush3.bf16.msra.mxu0 (!%p949_p9), %v5653_v5  ;;  %v5659_v13 = vpack.c.bf16 (!%p949_p9), %v1074_v10, %v1073_v7  ;;  %5383 = vmatprep.mubr.msk.f32.mxu0 (!%p949_p9), %vm6130_vm1, %v6129_v8  ;;  %v1155_v15 = vld [vmem:[%s6172_s29] sm:$0x3] (!%p949_p9)  ;;  %vm1077_vm2 = vcmask (!%p949_p9), 408576   ;;  %vm1156_vm4 = vcmask (!%p949_p9), 15360   ;;  %vm1236_vm6 = vcmask (!%p949_p9), 523264   ;;  %v5822_v37 = vld [vmem:[%s7045_s14 + $0x8] sm:$0xff] (!%p949_p9)  }
  0x52   : > { %5655 = vmatprep.subr.bf16.mxu0 (!%p949_p9), %v6128_v4  ;;  %5388 = vmatprep.mubr.msk.f32.mxu1 (!%p949_p9), %vm6130_vm1, %v6129_v8  ;;  %v1076_v22 = vld [vmem:[%s6167_s25] sm:$0xff] (!%p949_p9)  ;;  %v5823_v38 = vld [vmem:[%s7045_s14 + $0x48] sm:$0xff] (!%p949_p9)   ;;  %v5824_v39 = vld [vmem:[%s7045_s14 + $0x10] sm:$0xff] (!%p949_p9)   ;;  %s7052_s3 = sld [smem:[#allocation9_spill]] (!%p949_p9)  ;;  %s7053_s8 = sld [smem:[#allocation10_spill]] (!%p949_p9)  ;;  %vm1756_vm7 = vcmask (!%p949_p9), 261120  }
  0x53   : > { %5387 = vmatpush3.msk.msra.mxu1 (!%p949_p9), %vm1081_vm0, %v1155_v15  ;;  %v5820_v35 = vld [vmem:[%s7045_s14] sm:$0xff] (!%p949_p9)   ;;  %v5825_v40 = vld [vmem:[%s7045_s14 + $0x50] sm:$0xff] (!%p949_p9)   ;;  %v5826_v41 = vld [vmem:[%s7045_s14 + $0x18] sm:$0xff] (!%p949_p9)   ;;  %vm1879_vm8 = vcmask (!%p949_p9), 1043456   ;;  %s7054_s13 = sld [smem:[#allocation7_spill]] (!%p949_p9)  ;;  %vm1849_vm9 = vcmask (!%p949_p9), 64512  }
  0x54   : > { %5391 = vmatprep.subr.bf16.mxu1 (!%p949_p9), %v6129_v8  ;;  %v5821_v36 = vld [vmem:[%s7045_s14 + $0x40] sm:$0xff] (!%p949_p9)   ;;  %v5827_v42 = vld [vmem:[%s7045_s14 + $0x58] sm:$0xff] (!%p949_p9)   ;;  %v5830_v55 = vld [vmem:[%s7045_s14 + $0x28] sm:$0xff] (!%p949_p9)   ;;  %vm3738_vm14 = vcmask (!%p949_p9), 1040384   ;;  %vm3934_vm15 = vcmask (!%p949_p9), 8192  }
  0x55   : > { %5657 = vmatpush3.bf16.msra.mxu0 (!%p949_p9), %v5656_v9  ;;  %v5828_v52 = vld [vmem:[%s7045_s14 + $0x20] sm:$0xff] (!%p949_p9)   ;;  %v5831_v56 = vld [vmem:[%s7045_s14 + $0x88] sm:$0xff] (!%p949_p9)   ;;  %v5832_v57 = vld [vmem:[%s7045_s14 + $0x30] sm:$0xff] (!%p949_p9)  }
  0x56   : > { %s6365_s2 = scalar_select %p1040_p10, %s6330_s0, 1  ;;  %5658 = vmatprep.subr.bf16.mxu0 %v6128_v4  ;;  %v5829_v53 = vld [vmem:[%s7045_s14 + $0x80] sm:$0xff]   ;;  %v5833_v58 = vld [vmem:[%s7045_s14 + $0x90] sm:$0xff]   ;;  %v5834_v59 = vld [vmem:[%s7045_s14 + $0x38] sm:$0xff]  }
  0x57   : > { %v5835_v60 = vld [vmem:[%s7045_s14 + $0x98] sm:$0xff]   ;;  %v5836_v61 = vld [vmem:[%s7045_s14 + $0x60] sm:$0xff]   ;;  %v5837_v62 = vld [vmem:[%s7045_s14 + $0x68] sm:$0xff]  }
  0x58   : > { %s4837_s16 = sshll.u32 %s6365_s2, 3  ;;  %v4843_v47 = vld [vmem:[%s7052_s3] ss:$0 sm:$0xff]  ;;  %v5838_v63 = vld [vmem:[%s7045_s14 + $0x70] sm:$0xff]   ;;  %v5839_v0 = vld [vmem:[%s7045_s14 + $0x78] sm:$0xff]   ;;  %s7058_s3 = sld [smem:[#allocation16_spill]] }
  0x59   : > { %s1043_s22 = scalar_lea.vmem %s7050_s5, %s4837_s16  ;;  %s1047_s23 = scalar_lea.vmem %s7051_s9, %s4837_s16  ;;  %5660 = vmatpush3.bf16.msra.mxu0 %v5659_v13  ;;  %v4844_v49 = vld [vmem:[%s7053_s8] ss:$0 sm:$0xff]  ;;  %v5841_v2 = vld [vmem:[%s7045_s14 + $0xa8] sm:$0xff]   ;;  %v5842_v5 = vld [vmem:[%s7045_s14 + $0xb0] sm:$0xff]  }
  0x5a   : > { %v1055_v11 = vld [vmem:[%s1043_s22] sm:$0xff]  ;;  %5381 = vmatprep.subr.mxu0 %v6129_v8  ;;  %v5843_v6 = vld [vmem:[%s7045_s14 + $0xb8] sm:$0xff]   ;;  %s1050_s16 = scalar_lea.vmem %s7054_s13, %s6365_s2  ;;  %s7055_s22 = sld [smem:[#allocation13_spill]] }
  0x5b   : > { %1060 = vperm.xlu0 %5817, %v1055_v11   ;;  %v1056_v12 = vld [vmem:[%s1047_s23] sm:$0xff]  ;;  %s7056_s23 = sld [smem:[#allocation15_spill]]  ;;  %s7059_s5 = sld [smem:[#allocation17_spill]] }
  0x5c   : > { %v5840_v1 = vld [vmem:[%s7045_s14 + $0xa0] sm:$0xff]   ;;  %s7060_s8 = sld [smem:[#allocation18_spill]]  ;;  %s7062_s9 = sld [smem:[#allocation20_spill]] }
  0x5d   : > { %5382 = vmatpush3.msk.msra.mxu0 %vm1081_vm0, %v1075_v14  ;;  %v4847_v7 = vld [vmem:[%s6192_s19 + $0x2] ss:$0 sm:$0xff]  ;;  %s7063_s13 = sld [smem:[#allocation19_spill]] }
  0x5e   : > { %5415 = vmatprep.subr.bf16.mxu0 %v6129_v8 }
  0x5f   : > { %1065 = vperm.xlu0 %5817, %v1056_v12  }
  0xda   : > { %v1061_v18 = vpop.permute.xlu0 %1060 }
  0xdb   : > { %vm1062_vm3 = vcmp.eq.s32.totalorder %v1058_v17, %v1061_v18 }
  0xdc   : > { %v1063_v19 = vsel %vm1062_vm3, 1.0, %v6129_v8 }
  0xdd   : > { %5384 = vmatmul.mubr.msk.f32.vlgmr.msra.gmra.mrb[0].mxu0 %vm1077_vm2, %v1063_v19 }
  0xde   : > { %v1066_v20 = vpop.permute.xlu0 %1065  ;;  %5423 = vmatprep.mubr.msk.bf16.mxu0 %vm6130_vm1, %v6129_v8  ;;  %5416 = vmatpush3.bf16.msra.mxu0 %v5821_v36  ;;  %v4848_v36 = vld [vmem:[%s6192_s19 + $0x3] ss:$0 sm:$0xff] }
  0xdf   : > { %vm1067_vm5 = vcmp.eq.s32.totalorder %v1058_v17, %v1066_v20  ;;  %5417 = vmatprep.subr.bf16.mxu0 %v6129_v8  ;;  %v4845_v20 = vld [vmem:[%s6192_s19] ss:$0 sm:$0xff] }
  0xe0   : > { %v1068_v21 = vsel %vm1067_vm5, 1.0, %v6129_v8 }
  0xe1   : > { %5389 = vmatmul.mubr.msk.f32.vlgmr.msra.gmra.mrb[0].mxu1 %vm1156_vm4, %v1068_v21 }
  0xe2   : > { %5399 = vmatprep.mubr.msk.bf16.mxu1 %vm6130_vm1, %v6129_v8  ;;  %5392 = vmatpush3.bf16.msra.mxu1 %v5820_v35 }
  0xe3   : > { %5393 = vmatprep.subr.bf16.mxu1 %v6129_v8  ;;  %5418 = vmatpush3.bf16.msra.mxu0 %v5823_v38 }
  0xe4   : > { %5419 = vmatprep.subr.bf16.mxu0 %v6129_v8 }
  0xe6   : > { %5394 = vmatpush3.bf16.msra.mxu1 %v5822_v37 }
  0xe7   : > { %5395 = vmatprep.subr.bf16.mxu1 %v6129_v8  ;;  %5420 = vmatpush3.bf16.msra.mxu0 %v5825_v40 }
  0xe8   : > { %5421 = vmatprep.subr.bf16.mxu0 %v6129_v8 }
  0xea   : > { %5396 = vmatpush3.bf16.msra.mxu1 %v5824_v39 }
  0xeb   : > { %5397 = vmatprep.subr.bf16.mxu1 %v6129_v8  ;;  %5422 = vmatpush3.bf16.msra.mxu0 %v5827_v42 }
  0xec   : > { %5439 = vmatprep.subr.bf16.mxu0 %v6129_v8 }
  0xee   : > { %5398 = vmatpush3.bf16.msra.mxu1 %v5826_v41 }
  0xef   : > { %5403 = vmatprep.subr.bf16.mxu1 %v6129_v8 }
 0x1b0   : > { %v1151_v23 = vpop.f32.mrb[0].mxu0 }
 0x1b1   : > { %v5385_v24 = vpop.f32.mrb[1].mxu0  ;;  %v1152_v25 = vadd.f32 %v1151_v23, %v1076_v22 }
 0x1b2   : > { %v4849_v24 = vld [vmem:[%s6192_s19 + $0x4] ss:$0 sm:$0xff] }
 0x1b4   : > { %v1229_v26 = vpop.f32.mrb[0].mxu1 }
 0x1b5   : > { %v1233_v27 = vadd.f32 %v1229_v26, %v1152_v25  ;;  %v5390_v28 = vpop.f32.mrb[1].mxu1 }
 0x1b7   : > { %v1237_v29 = vsel %vm1236_vm6, %v1233_v27, 0.0 }
 0x1b8   : > { %1238 = vadd.xlane.f32.xlu1 %v1237_v29 }
 0x245   : > { %v1239_v30 = vpop.xlane.xlu1 %1238 }
 0x246   : > { %v1241_v31 = vmul.f32 0.015625, %v1239_v30 }
 0x248   : > { %v1242_v32 = vsub.f32 %v1233_v27, %v1241_v31 }
 0x24a   : > { %v1243_v33 = vmul.f32 %v1242_v32, %v1242_v32 }
 0x24c   : > { %v1244_v34 = vsel %vm1236_vm6, %v1243_v33, 0.0 }
 0x24d   : > { %1245 = vadd.xlane.f32.xlu1 %v1244_v34 }
 0x2da   : > { %v1246_v43 = vpop.xlane.xlu1 %1245 }
 0x2db   : > { %v1247_v44 = vmul.f32 0.015625, %v1246_v43  ;;  %v4846_v43 = vld [vmem:[%s6192_s19 + $0x1] ss:$0 sm:$0xff] }
 0x2dd   : > { %v1248_v45 = vadd.f32 1e-12, %v1247_v44 }
 0x2df   : > { %5960 = vrsqrt.f32 %v1248_v45 }
 0x2e9   : > { %v5961_v46 = vpop.eup %5960 }
 0x2ea   : > { %v1250_v48 = vmul.f32 %v5961_v46, %v1242_v32 }
 0x2ec   : > { %v1257_v50 = vmul.f32 %v4843_v47, %v1250_v48  ;;  %v4850_v47 = vld [vmem:[%s6192_s19 + $0x5] ss:$0 sm:$0xff] }
 0x2ee   : > { %v6413_v51 = vadd.f32 %v4844_v49, %v1257_v50 }
 0x2f0   : > { %v1274_v54 = vpack.c.bf16 %v6413_v51, %v6413_v51 }
 0x2f2   : > { %5400 = vmatmul.mubr.msk.bf16.vlgmr.msra.gmra.mrb[4].mxu1 %vm1236_vm6, %v1274_v54  ;;  %5424 = vmatmul.mubr.msk.bf16.vlgmr.msra.gmra.mrb[4].mxu0 %vm1236_vm6, %v1274_v54 }
 0x2f3   : > { %5404 = vmatpush3.bf16.msra.mxu1 %v5828_v52  ;;  %5440 = vmatpush3.bf16.msra.mxu0 %v5829_v53 }
 0x2f4   : > { %5405 = vmatprep.subr.bf16.mxu1 %v6129_v8  ;;  %5441 = vmatprep.subr.bf16.mxu0 %v6129_v8 }
 0x2f5   : > { %5411 = vmatprep.mubr.msk.bf16.mxu1 %vm6130_vm1, %v6129_v8  ;;  %5447 = vmatprep.mubr.msk.bf16.mxu0 %vm6130_vm1, %v6129_v8 }
 0x2f7   : > { %5406 = vmatpush3.bf16.msra.mxu1 %v5830_v55  ;;  %5442 = vmatpush3.bf16.msra.mxu0 %v5831_v56  ;;  %v1265_v56 = vld [vmem:[%s1050_s16] sm:$0x1]  ;;  %s7057_s16 = sld [smem:[#allocation14_spill]] }
 0x2f8   : > { %5407 = vmatprep.subr.bf16.mxu1 %v6129_v8  ;;  %5443 = vmatprep.subr.bf16.mxu0 %v6129_v8 }
 0x2fb   : > { %5408 = vmatpush3.bf16.msra.mxu1 %v5832_v57  ;;  %5444 = vmatpush3.bf16.msra.mxu0 %v5833_v58  ;;  %v6490_v57 = vshrl.u32 %v1057_v16, 7  ;;  %v1266_v58 = vsub.f32 1.0, %v1265_v56 }
 0x2fc   : > { %5409 = vmatprep.subr.bf16.mxu1 %v6129_v8  ;;  %5445 = vmatprep.subr.bf16.mxu0 %v6129_v8 }
 0x2ff   : > { %5410 = vmatpush3.bf16.msra.mxu1 %v5834_v59  ;;  %5446 = vmatpush3.bf16.msra.mxu0 %v5835_v60  ;;  %v6493_v59 = vsub.s32 0, %v6490_v57  ;;  %v1267_v60 = vmul.f32 -1e+09, %v1266_v58 }
 0x300   : > { %5427 = vmatprep.subr.bf16.mxu1 %v6129_v8  ;;  %5463 = vmatprep.subr.bf16.mxu0 %v6129_v8 }
 0x302   : > { %5412 = vmatmul.mubr.msk.bf16.vlgmr.msra.gmra.mrb[8].mxu1 %vm1236_vm6, %v1274_v54  ;;  %5448 = vmatmul.mubr.msk.bf16.vlgmr.msra.gmra.mrb[8].mxu0 %vm1236_vm6, %v1274_v54 }
 0x303   : > { %5428 = vmatpush3.bf16.msra.mxu1 %v5836_v61  ;;  %5435 = vmatprep.mubr.msk.bf16.mxu1 %vm6130_vm1, %v6129_v8  ;;  %v6496_v61 = vrot.slane %v1267_v60, %v6493_v59 }
 0x304   : > { %5429 = vmatprep.subr.bf16.mxu1 %v6129_v8  ;;  %5465 = vmatprep.mubr.msk.bf16.mxu0 %vm6130_vm1, %v6129_v8 }
 0x307   : > { %5430 = vmatpush3.bf16.msra.mxu1 %v5837_v62 }
 0x308   : > { %5431 = vmatprep.subr.bf16.mxu1 %v6129_v8 }
 0x30b   : > { %5432 = vmatpush3.bf16.msra.mxu1 %v5838_v63 }
 0x30c   : > { %5433 = vmatprep.subr.bf16.mxu1 %v6129_v8 }
 0x30f   : > { %5434 = vmatpush3.bf16.msra.mxu1 %v5839_v0 }
 0x310   : > { %5451 = vmatprep.subr.bf16.mxu1 %v6129_v8 }
 0x312   : > { %5436 = vmatmul.mubr.msk.bf16.vlgmr.msra.gmra.mrb[12].mxu1 %vm1236_vm6, %v1274_v54 }
 0x313   : > { %5452 = vmatpush3.bf16.msra.mxu1 %v5840_v1  ;;  %5459 = vmatprep.mubr.msk.bf16.mxu1 %vm6130_vm1, %v6129_v8 }
 0x314   : > { %5453 = vmatprep.subr.bf16.mxu1 %v6129_v8 }
 0x317   : > { %5454 = vmatpush3.bf16.msra.mxu1 %v5841_v2 }
 0x318   : > { %5455 = vmatprep.subr.bf16.mxu1 %v6129_v8 }
 0x31b   : > { %5456 = vmatpush3.bf16.msra.mxu1 %v5842_v5 }
 0x31c   : > { %5457 = vmatprep.subr.bf16.mxu1 %v6129_v8 }
 0x31f   : > { %5458 = vmatpush3.bf16.msra.mxu1 %v5843_v6 }
 0x320   : > { %5475 = vmatprep.subr.bf16.mxu1 %v6129_v8 }
 0x322   : > { %5460 = vmatmul.mubr.msk.bf16.vlgmr.msra.gmra.mrb[16].mxu1 %vm1236_vm6, %v1274_v54 }
 0x323   : > { %5477 = vmatprep.mubr.msk.bf16.mxu1 %vm6130_vm1, %v6129_v8 }
 0x3c5   : > { %v1426_v9 = vpop.f32.mrb[4].mxu1  ;;  %v1554_v10 = vpop.f32.mrb[4].mxu0 }
 0x3c6   : > { %v1555_v11 = vadd.f32 %v4847_v7, %v1554_v10  ;;  %v5401_v12 = vpop.f32.mrb[5].mxu1  ;;  %v5425_v13 = vpop.f32.mrb[5].mxu0  ;;  %v1427_v22 = vadd.f32 %v4845_v20, %v1426_v9 }
 0x3c7   : > { %v1429_v14 = vpop.f32.mrb[6].mxu1  ;;  %v1557_v15 = vpop.f32.mrb[6].mxu0 }
 0x3c8   : > { %v1754_v17 = vpack.c.bf16 %v1555_v11, %v1555_v11  ;;  %v5402_v18 = vpop.f32.mrb[7].mxu1  ;;  %v5426_v19 = vpop.f32.mrb[7].mxu0  ;;  %v1752_v23 = vpack.c.bf16 %v1427_v22, %v1427_v22 }
 0x3ca   : > { %v1761_v21 = vsel %vm1756_vm7, %v1754_v17, 0 }
 0x3cb   : > { %5464 = vmatpush3.bf16.xpose.msra.mxu0 %v1761_v21 }
 0x3cc   : > { %5469 = vmatprep.subr.bf16.mxu0 %v6129_v8 }
 0x3d2   : > { %5466 = vmatmul.mubr.msk.bf16.vlgmr.msra.gmra.mrb[12].mxu0 %vm1756_vm7, %v1752_v23 }
 0x3d3   : > { %5471 = vmatprep.mubr.msk.bf16.mxu0 %vm6130_vm1, %v6129_v8 }
 0x3d5   : > { %v1490_v25 = vpop.f32.mrb[8].mxu1  ;;  %v1682_v26 = vpop.f32.mrb[8].mxu0 }
 0x3d6   : > { %v1683_v27 = vadd.f32 %v4849_v24, %v1682_v26  ;;  %v5413_v28 = vpop.f32.mrb[9].mxu1  ;;  %v5449_v29 = vpop.f32.mrb[9].mxu0  ;;  %v1491_v45 = vadd.f32 %v4846_v43, %v1490_v25  ;;  %v5844_v26 = vld [vmem:[%s6197_s24] sm:$0xff]  }
 0x3d7   : > { %v1493_v30 = vpop.f32.mrb[10].mxu1  ;;  %v1685_v31 = vpop.f32.mrb[10].mxu0 }
 0x3d8   : > { %v1874_v32 = vpack.c.bf16 %v1683_v27, %v1683_v27  ;;  %v5414_v33 = vpop.f32.mrb[11].mxu1  ;;  %v5450_v34 = vpop.f32.mrb[11].mxu0  ;;  %v1753_v46 = vpack.c.bf16 %v1491_v45, %v1491_v45 }
 0x3d9   : > { %v5846_v33 = vld [vmem:[%s6197_s24 + $0x10] sm:$0xff]   ;;  %v5847_v34 = vld [vmem:[%s6197_s24 + $0x18] sm:$0xff]  }
 0x3da   : > { %v1881_v35 = vsel %vm1879_vm8, %v1874_v32, 0  ;;  %v5845_v32 = vld [vmem:[%s6197_s24 + $0x8] sm:$0xff]  }
 0x3db   : > { %5476 = vmatpush3.bf16.msra.mxu1 %v1881_v35 }
 0x3dc   : > { %5487 = vmatprep.subr.bf16.mxu1 %v6129_v8 }
 0x3e5   : > { %v1618_v37 = vpop.f32.mrb[12].mxu1 }
 0x3e6   : > { %v1619_v38 = vadd.f32 %v4848_v36, %v1618_v37  ;;  %v5437_v39 = vpop.f32.mrb[13].mxu1 }
 0x3e7   : > { %v1621_v40 = vpop.f32.mrb[14].mxu1 }
 0x3e8   : > { %v1755_v41 = vpack.c.bf16 %v1619_v38, %v1619_v38  ;;  %v5438_v42 = vpop.f32.mrb[15].mxu1 }
 0x3ea   : > { %v1807_v44 = vsel %vm1756_vm7, %v1755_v41, 0 }
 0x3eb   : > { %5470 = vmatpush3.bf16.xpose.msra.mxu0 %v1807_v44 }
 0x3ec   : > { %5481 = vmatprep.subr.bf16.mxu0 %v6129_v8 }
 0x3f2   : > { %5472 = vmatmul.mubr.msk.bf16.vlgmr.msra.gmra.mrb[16].mxu0 %vm1756_vm7, %v1753_v46 }
 0x3f3   : > { %5483 = vmatprep.mubr.msk.bf16.mxu0 %vm6130_vm1, %v6129_v8 }
 0x3f5   : > { %v1746_v48 = vpop.f32.mrb[16].mxu1 }
 0x3f6   : > { %v1747_v49 = vadd.f32 %v4850_v47, %v1746_v48  ;;  %v5461_v50 = vpop.f32.mrb[17].mxu1 }
 0x3f7   : > { %v1749_v52 = vpop.f32.mrb[18].mxu1 }
 0x3f8   : > { %v1875_v53 = vpack.c.bf16 %v1747_v49, %v1747_v49  ;;  %v5462_v54 = vpop.f32.mrb[19].mxu1  ;;  %v4888_v49 = vld [vmem:[%s6202_s30] ss:$0 sm:$0xff] }
 0x3fa   : > { %v1927_v55 = vsel %vm1879_vm8, %v1875_v53, 0 }
 0x3fb   : > { %5482 = vmatpush3.bf16.msra.mxu0 %v1927_v55 }
 0x3fc   : > { %5495 = vmatprep.subr.bf16.mxu0 %v6129_v8 }
 0x4a5   : > { %v1797_v62 = vpop.f32.mrb[12].mxu0 }
 0x4a6   : > { %v1798_v63 = vadd.f32 %v1797_v62, %v6496_v61  ;;  %v5467_v0 = vpop.f32.mrb[13].mxu0 }
 0x4a7   : > { %v1800_v1 = vpop.f32.mrb[14].mxu0 }
 0x4a8   : > { %v5468_v2 = vpop.f32.mrb[15].mxu0  ;;  %v1850_v5 = vsel %vm1849_vm9, %v1798_v63, -inf }
 0x4a9   : > { %1851 = vmax.xlane.f32.xlu0 %v1850_v5  ;;  %v5850_v5 = vld [vmem:[%s6217_s20 + $0x4] ss:$8 sps:$4 sm:$0xff]  }
 0x4c5   : > { %v1843_v16 = vpop.f32.mrb[16].mxu0 }
 0x4c6   : > { %v1844_v6 = vadd.f32 %v1843_v16, %v6496_v61  ;;  %v5473_v7 = vpop.f32.mrb[17].mxu0  ;;  %v5848_v16 = vld [vmem:[%s6217_s20] ss:$8 sps:$4 sm:$0xff]  }
 0x4c7   : > { %v1846_v9 = vpop.f32.mrb[18].mxu0  ;;  %v5856_v7 = vld [vmem:[%s6217_s20 + $0x24] ss:$8 sps:$4 sm:$0xff]  }
 0x4c8   : > { %v5474_v10 = vpop.f32.mrb[19].mxu0  ;;  %v1853_v11 = vsel %vm1849_vm9, %v1844_v6, -inf  ;;  %v5854_v9 = vld [vmem:[%s6217_s20 + $0x20] ss:$8 sps:$4 sm:$0xff]  }
 0x4c9   : > { %1854 = vmax.xlane.f32.xlu1 %v1853_v11  ;;  %v5857_v10 = vld [vmem:[%s6217_s20 + $0x30] ss:$8 sps:$4 sm:$0xff]   ;;  %v5859_v11 = vld [vmem:[%s6217_s20 + $0x34] ss:$8 sps:$4 sm:$0xff]  }
 0x536   : > { %v1852_v12 = vpop.xlane.xlu0 %1851 }
 0x537   : > { %v1856_v13 = vsub.f32 %v1798_v63, %v1852_v12 }
 0x539   : > { %v1858_v14 = vmul.f32 1.442695, %v1856_v13 }
 0x53b   : > { %5962 = vpow2.f32 %v1858_v14 }
 0x545   : > { %v5963_v15 = vpop.eup %5962 }
 0x546   : > { %v1862_v17 = vsel %vm1849_vm9, %v5963_v15, 0.0 }
 0x547   : > { %1863 = vadd.xlane.f32.xlu1 %v1862_v17  ;;  %v4892_v17 = vld [vmem:[%s7047_s6] ss:$0 sm:$0xff] }
 0x556   : > { %v1855_v18 = vpop.xlane.xlu1 %1854 }
 0x557   : > { %v1857_v19 = vsub.f32 %v1844_v6, %v1855_v18  ;;  %v5853_v6 = vld [vmem:[%s6217_s20 + $0x14] ss:$8 sps:$4 sm:$0xff]  }
 0x559   : > { %v1860_v20 = vmul.f32 1.442695, %v1857_v19  ;;  %v4893_v19 = vld [vmem:[%s7055_s22] ss:$0 sm:$0xff] }
 0x55b   : > { %5964 = vpow2.f32 %v1860_v20 }
 0x565   : > { %v5965_v21 = vpop.eup %5964 }
 0x566   : > { %v1865_v22 = vsel %vm1849_vm9, %v5965_v21, 0.0 }
 0x567   : > { %1866 = vadd.xlane.f32.xlu1 %v1865_v22 }
 0x5d4   : > { %v1864_v23 = vpop.xlane.xlu1 %1863 }
 0x5d5   : > { %5966 = vrcp.f32 %v1864_v23  ;;  %v5860_v23 = vld [vmem:[%s7056_s23 + $0x40] sm:$0xff]  }
 0x5df   : > { %v5967_v24 = vpop.eup %5966 }
 0x5e0   : > { %v1870_v25 = vmul.f32 %v5967_v24, %v5963_v15  ;;  %v5861_v24 = vld [vmem:[%s7056_s23] sm:$0xff]  }
 0x5e2   : > { %v1872_v27 = vpack.c.bf16 %v1870_v25, %v1870_v25  ;;  %v5862_v25 = vld [vmem:[%s7056_s23 + $0x48] sm:$0xff]  }
 0x5e4   : > { %5478 = vmatmul.mubr.msk.bf16.vlgmr.msra.gmra.mrb[20].mxu1 %vm1849_vm9, %v1872_v27  ;;  %v5864_v27 = vld [vmem:[%s7056_s23 + $0x50] sm:$0xff]  }
 0x5e5   : > { %5488 = vmatpush3.bf16.msra.mxu1 %v5844_v26  ;;  %5491 = vmatprep.mubr.msk.bf16.mxu1 %vm6130_vm1, %v6129_v8  ;;  %v5863_v26 = vld [vmem:[%s7056_s23 + $0x8] sm:$0xff]  }
 0x5e6   : > { %5489 = vmatprep.subr.bf16.mxu1 %v6129_v8 }
 0x5e9   : > { %5490 = vmatpush3.bf16.msra.mxu1 %v5845_v32  ;;  %v5869_v32 = vld [vmem:[%s7056_s23 + $0x20] sm:$0xff]  }
 0x5ea   : > { %2192 = vmatprep.subr.bf16.mxu1 %v5850_v5 }
 0x5f4   : > { %v1867_v28 = vpop.xlane.xlu1 %1866 }
 0x5f5   : > { %5968 = vrcp.f32 %v1867_v28  ;;  %v5865_v28 = vld [vmem:[%s7056_s23 + $0x10] sm:$0xff]  }
 0x5ff   : > { %v5969_v29 = vpop.eup %5968 }
 0x600   : > { %v1871_v30 = vmul.f32 %v5969_v29, %v5965_v21  ;;  %v5866_v29 = vld [vmem:[%s7056_s23 + $0x58] sm:$0xff]  }
 0x602   : > { %v1873_v31 = vpack.c.bf16 %v1871_v30, %v1871_v30  ;;  %v5867_v30 = vld [vmem:[%s7056_s23 + $0x18] sm:$0xff]  }
 0x604   : > { %5484 = vmatmul.mubr.msk.bf16.vlgmr.msra.gmra.mrb[20].mxu0 %vm1849_vm9, %v1873_v31  ;;  %v5868_v31 = vld [vmem:[%s7056_s23 + $0x60] sm:$0xff]  }
 0x605   : > { %5499 = vmatprep.mubr.msk.bf16.mxu0 %vm6130_vm1, %v6129_v8  ;;  %5496 = vmatpush3.bf16.msra.mxu0 %v5846_v33  ;;  %v5870_v33 = vld [vmem:[%s7056_s23 + $0x68] sm:$0xff]  }
 0x606   : > { %5497 = vmatprep.subr.bf16.mxu0 %v6129_v8 }
 0x609   : > { %5498 = vmatpush3.bf16.msra.mxu0 %v5847_v34  ;;  %v5871_v34 = vld [vmem:[%s7056_s23 + $0x28] sm:$0xff]  }
 0x60a   : > { %5195 = vmatprep.subr.bf16.mxu0 %v5860_v23 }
 0x6b7   : > { %v1917_v35 = vpop.f32.mrb[20].mxu1 }
 0x6b8   : > { %v1978_v36 = vpack.c.bf16 %v1917_v35, %v1917_v35  ;;  %v5479_v37 = vpop.f32.mrb[21].mxu1  ;;  %v5872_v35 = vld [vmem:[%s7056_s23 + $0x70] sm:$0xff]  }
 0x6b9   : > { %v1920_v38 = vpop.f32.mrb[22].mxu1  ;;  %v5874_v37 = vld [vmem:[%s7056_s23 + $0x78] sm:$0xff]  }
 0x6ba   : > { %v5480_v39 = vpop.f32.mrb[23].mxu1  ;;  %5492 = vmatmul.mubr.msk.bf16.vlgmr.msra.gmra.mrb[24].mxu1 %vm1756_vm7, %v1978_v36  ;;  %v5873_v36 = vld [vmem:[%s7056_s23 + $0x30] sm:$0xff]   ;;  %v5875_v38 = vld [vmem:[%s7056_s23 + $0x38] sm:$0xff]  }
 0x6bb   : > { %2224 = vmatprep.mubr.bf16.mxu1 %v6127_v3  ;;  %2193 = vmatpush1.bf16.msra.mxu1 %v5848_v16  ;;  %v2137_v39 = vld [vmem:[%s7057_s16] sm:$0x3] }
 0x6bc   : > { %2194 = vmatprep.subr.bf16.mxu1 %v5853_v6 }
 0x6d7   : > { %v1963_v40 = vpop.f32.mrb[20].mxu0 }
 0x6d8   : > { %v2041_v41 = vpack.c.bf16 %v1963_v40, %v1963_v40  ;;  %v5485_v42 = vpop.f32.mrb[21].mxu0  ;;  %v6560_v40 = vsub.s32 1, %v6490_v57 }
 0x6d9   : > { %v1966_v43 = vpop.f32.mrb[22].mxu0 }
 0x6da   : > { %v5486_v44 = vpop.f32.mrb[23].mxu0  ;;  %5500 = vmatmul.mubr.msk.bf16.vlgmr.msra.gmra.mrb[24].mxu0 %vm1756_vm7, %v2041_v41  ;;  %v2142_v41 = vrot.slane %v2137_v39, %v6493_v59  ;;  %v2146_v42 = vrot.slane %v2137_v39, %v6560_v40 }
 0x6db   : > { %5196 = vmatpush3.bf16.msra.mxu0 %v5861_v24 }
 0x6dc   : > { %5197 = vmatprep.subr.bf16.mxu0 %v5862_v25 }
 0x6df   : > { %5198 = vmatpush3.bf16.msra.mxu0 %v5863_v26 }
 0x6e0   : > { %5199 = vmatprep.subr.bf16.mxu0 %v5864_v27 }
 0x6e3   : > { %5200 = vmatpush3.bf16.msra.mxu0 %v5865_v28 }
 0x6e4   : > { %5201 = vmatprep.subr.bf16.mxu0 %v5866_v29 }
 0x6e7   : > { %5202 = vmatpush3.bf16.msra.mxu0 %v5867_v30 }
 0x6e8   : > { %5203 = vmatprep.subr.bf16.mxu0 %v5868_v31 }
 0x6eb   : > { %5204 = vmatpush3.bf16.msra.mxu0 %v5869_v32 }
 0x6ec   : > { %5205 = vmatprep.subr.bf16.mxu0 %v5870_v33 }
 0x6ef   : > { %5206 = vmatpush3.bf16.msra.mxu0 %v5871_v34 }
 0x6f0   : > { %5207 = vmatprep.subr.bf16.mxu0 %v5872_v35 }
 0x6f3   : > { %5208 = vmatpush3.bf16.msra.mxu0 %v5873_v36 }
 0x6f4   : > { %5209 = vmatprep.subr.bf16.mxu0 %v5874_v37 }
 0x6f7   : > { %5210 = vmatpush3.bf16.msra.mxu0 %v5875_v38 }
 0x6f8   : > { %5527 = vmatprep.subr.bf16.mxu0 %v6129_v8 }
 0x78d   : > { %v2028_v45 = vpop.f32.mrb[24].mxu1 }
 0x78e   : > { %v5493_v46 = vpop.f32.mrb[25].mxu1  ;;  %v2040_v50 = vadd.f32 %v4888_v49, %v2028_v45 }
 0x78f   : > { %v2031_v47 = vpop.f32.mrb[26].mxu1 }
 0x790   : > { %v5494_v48 = vpop.f32.mrb[27].mxu1 }
 0x7ad   : > { %v2091_v52 = vpop.f32.mrb[24].mxu0 }
 0x7ae   : > { %v2097_v53 = vadd.f32 %v2091_v52, %v2040_v50  ;;  %v5501_v54 = vpop.f32.mrb[25].mxu0 }
 0x7af   : > { %v2094_v55 = vpop.f32.mrb[26].mxu0 }
 0x7b0   : > { %v5502_v56 = vpop.f32.mrb[27].mxu0  ;;  %v2098_v58 = vadd.f32 %v2097_v53, %v6413_v51  ;;  %v5851_v51 = vld [vmem:[%s6217_s20 + $0x10] ss:$8 sps:$4 sm:$0xff]  }
 0x7b1   : > { %2195 = vmatpush1.bf16.msra.mxu1 %v5851_v51 }
 0x7b2   : > { %v2101_v60 = vsel %vm1236_vm6, %v2098_v58, 0.0  ;;  %2196 = vmatprep.subr.bf16.mxu1 %v5856_v7 }
 0x7b3   : > { %2102 = vadd.xlane.f32.xlu1 %v2101_v60 }
 0x7b5   : > { %2197 = vmatpush1.bf16.msra.mxu1 %v5854_v9 }
 0x7b6   : > { %2198 = vmatprep.subr.bf16.mxu1 %v5859_v11 }
 0x7b9   : > { %2199 = vmatpush1.bf16.msra.mxu1 %v5857_v10 }
 0x7ba   : > { %5503 = vmatprep.subr.bf16.mxu1 %v6129_v8 }
 0x840   : > { %v2103_v62 = vpop.xlane.xlu1 %2102 }
 0x841   : > { %v2104_v63 = vmul.f32 0.015625, %v2103_v62 }
 0x843   : > { %v2105_v0 = vsub.f32 %v2098_v58, %v2104_v63 }
 0x845   : > { %v2106_v1 = vmul.f32 %v2105_v0, %v2105_v0 }
 0x847   : > { %v2107_v2 = vsel %vm1236_vm6, %v2106_v1, 0.0 }
 0x848   : > { %2108 = vadd.xlane.f32.xlu1 %v2107_v2 }
 0x8d5   : > { %v2109_v12 = vpop.xlane.xlu1 %2108 }
 0x8d6   : > { %v2110_v13 = vmul.f32 0.015625, %v2109_v12 }
 0x8d8   : > { %v2111_v14 = vadd.f32 1e-12, %v2110_v13 }
 0x8da   : > { %5970 = vrsqrt.f32 %v2111_v14 }
 0x8e4   : > { %v5971_v15 = vpop.eup %5970 }
 0x8e5   : > { %v2113_v18 = vmul.f32 %v5971_v15, %v2105_v0 }
 0x8e7   : > { %v2120_v20 = vmul.f32 %v4892_v17, %v2113_v18 }
 0x8e9   : > { %v6534_v21 = vadd.f32 %v4893_v19, %v2120_v20 }
 0x8eb   : > { %v2128_v22 = vpack.c.bf16 %v6534_v21, %v6534_v21 }
 0x8ed   : > { %4902 = vmatmul.mubr.msk.bf16.vlgmr.msra.gmra.mrb[28].mxu1 %vm1236_vm6, %v2128_v22 }
 0x8ee   : > { %5511 = vmatprep.mubr.msk.bf16.mxu1 %vm6130_vm1, %v6129_v8 }
 0x9c0   : > { %v2226_v43 = vpop.f32.mrb[28].mxu1 }
 0x9c1   : > { %v2227_v44 = vadd.f32 %v2226_v43, %v2142_v41  ;;  %v2228_v45 = vpop.f32.mrb[29].mxu1 }
 0x9c2   : > { %v2229_v46 = vadd.f32 %v2228_v45, %v2146_v42  ;;  %v2230_v47 = vpop.f32.mrb[30].mxu1 }
 0x9c3   : > { %v2235_v48 = vmul.f32 0.70710677, %v2227_v44  ;;  %v2231_v49 = vpop.f32.mrb[31].mxu1  ;;  %v2233_v35 = vmul.f32 0.5, %v2227_v44 }
 0x9c4   : > { %v2236_v50 = vmul.f32 0.70710677, %v2229_v46  ;;  %v2234_v38 = vmul.f32 0.5, %v2229_v46 }
 0x9c5   : > { %v2237_v52 = vand.u32 2147483647, %v2235_v48  ;;  %vm2277_vm10 = vcmp.ge.f32.partialorder %v2235_v48, 0.0  ;;  %v4903_v48 = vld [vmem:[%s7058_s3] ss:$0 sm:$0xff] }
 0x9c6   : > { %v2238_v53 = vand.u32 2147483647, %v2236_v50  ;;  %vm2278_vm11 = vcmp.ge.f32.partialorder %v2236_v50, 0.0 }
 0x9c7   : > { %v2239_v54 = vmul.f32 0.3275911, %v2237_v52  ;;  %v2265_v60 = vmul.f32 %v2237_v52, %v2237_v52 }
 0x9c8   : > { %v2240_v55 = vmul.f32 0.3275911, %v2238_v53  ;;  %v2266_v62 = vmul.f32 %v2238_v53, %v2238_v53 }
 0x9c9   : > { %v2241_v56 = vadd.f32 1.0, %v2239_v54  ;;  %v2267_v0 = vsub.f32 0.0, %v2265_v60 }
 0x9ca   : > { %v2242_v58 = vadd.f32 1.0, %v2240_v55  ;;  %v2268_v5 = vsub.f32 0.0, %v2266_v62 }
 0x9cb   : > { %5972 = vrcp.f32 %v2241_v56  ;;  %v2269_v51 = vmul.f32 1.442695, %v2267_v0  ;;  %v5877_v0 = vld [vmem:[%s7045_s14 + $0x100] sm:$0xff]  }
 0x9cc   : > { %5974 = vrcp.f32 %v2242_v58  ;;  %v2271_v10 = vmul.f32 1.442695, %v2268_v5  ;;  %v5881_v5 = vld [vmem:[%s7045_s14 + $0x110] sm:$0xff]  }
 0x9cd   : > { %5976 = vpow2.f32 %v2269_v51 }
 0x9ce   : > { %5978 = vpow2.f32 %v2271_v10 }
 0x9d5   : > { %v5973_v63 = vpop.eup %5972 }
 0x9d6   : > { %v5975_v1 = vpop.eup %5974  ;;  %v2247_v2 = vmul.f32 1.0614054, %v5973_v63 }
 0x9d7   : > { %v2248_v16 = vmul.f32 1.0614054, %v5975_v1  ;;  %v5977_v25 = vpop.eup %5976 }
 0x9d8   : > { %v2249_v6 = vadd.f32 -1.4531521, %v2247_v2  ;;  %v5979_v27 = vpop.eup %5978  ;;  %v5880_v2 = vld [vmem:[%s7045_s14 + $0xd0] sm:$0xff]  }
 0x9d9   : > { %v2250_v7 = vadd.f32 -1.4531521, %v2248_v16  ;;  %v5882_v16 = vld [vmem:[%s7045_s14 + $0xd8] sm:$0xff]  }
 0x9da   : > { %v2251_v9 = vmul.f32 %v5973_v63, %v2249_v6  ;;  %v5883_v6 = vld [vmem:[%s7045_s14 + $0x118] sm:$0xff]  }
 0x9db   : > { %v2252_v11 = vmul.f32 %v5975_v1, %v2250_v7 }
 0x9dc   : > { %v2253_v12 = vadd.f32 1.4214138, %v2251_v9 }
 0x9dd   : > { %v2254_v13 = vadd.f32 1.4214138, %v2252_v11  ;;  %v4920_v11 = vld [vmem:[%s7059_s5] ss:$0 sm:$0xff] }
 0x9de   : > { %v2255_v14 = vmul.f32 %v5973_v63, %v2253_v12 }
 0x9df   : > { %v2256_v15 = vmul.f32 %v5975_v1, %v2254_v13  ;;  %v4921_v13 = vld [vmem:[%s7060_s8] ss:$0 sm:$0xff] }
 0x9e0   : > { %v2257_v17 = vadd.f32 -0.28449672, %v2255_v14 }
 0x9e1   : > { %v2258_v18 = vadd.f32 -0.28449672, %v2256_v15 }
 0x9e2   : > { %v2259_v19 = vmul.f32 %v5973_v63, %v2257_v17  ;;  %v5884_v17 = vld [vmem:[%s7045_s14 + $0xe0] sm:$0xff]  }
 0x9e3   : > { %v2260_v20 = vmul.f32 %v5975_v1, %v2258_v18  ;;  %v5885_v18 = vld [vmem:[%s7045_s14 + $0x140] sm:$0xff]  }
 0x9e4   : > { %v2261_v22 = vadd.f32 0.2548296, %v2259_v19 }
 0x9e5   : > { %v2262_v23 = vadd.f32 0.2548296, %v2260_v20  ;;  %v5886_v20 = vld [vmem:[%s7045_s14 + $0xe8] sm:$0xff]  }
 0x9e6   : > { %v2263_v24 = vmul.f32 %v5973_v63, %v2261_v22  ;;  %v5876_v63 = vld [vmem:[%s7045_s14 + $0xc0] sm:$0xff]   ;;  %v5887_v22 = vld [vmem:[%s7045_s14 + $0x148] sm:$0xff]  }
 0x9e7   : > { %v2264_v26 = vmul.f32 %v5975_v1, %v2262_v23  ;;  %5504 = vmatpush3.bf16.msra.mxu1 %v5876_v63  ;;  %v5879_v1 = vld [vmem:[%s7045_s14 + $0x108] sm:$0xff]   ;;  %v5888_v23 = vld [vmem:[%s7045_s14 + $0xf0] sm:$0xff]  }
 0x9e8   : > { %v2273_v28 = vmul.f32 %v5977_v25, %v2263_v24  ;;  %5505 = vmatprep.subr.bf16.mxu1 %v6129_v8  ;;  %v5889_v24 = vld [vmem:[%s7045_s14 + $0x150] sm:$0xff]   ;;  %v5890_v25 = vld [vmem:[%s7045_s14 + $0xf8] sm:$0xff]  }
 0x9e9   : > { %v2274_v29 = vmul.f32 %v5979_v27, %v2264_v26  ;;  %v5891_v26 = vld [vmem:[%s7045_s14 + $0x158] sm:$0xff]   ;;  %v5892_v27 = vld [vmem:[%s7045_s14 + $0x120] sm:$0xff]  }
 0x9ea   : > { %v2275_v30 = vsub.f32 1.0, %v2273_v28  ;;  %v5893_v28 = vld [vmem:[%s7045_s14 + $0x128] sm:$0xff]  }
 0x9eb   : > { %v2276_v31 = vsub.f32 1.0, %v2274_v29  ;;  %v5894_v29 = vld [vmem:[%s7045_s14 + $0x130] sm:$0xff]  }
 0x9ec   : > { %v2279_v32 = vsub.f32 0.0, %v2275_v30 }
 0x9ed   : > { %v2280_v33 = vsub.f32 0.0, %v2276_v31 }
 0x9ee   : > { %v2281_v34 = vsel %vm2277_vm10, %v2275_v30, %v2279_v32  ;;  %v5895_v30 = vld [vmem:[%s7045_s14 + $0x138] sm:$0xff]   ;;  %v5897_v32 = vld [vmem:[%s7045_s14 + $0x168] sm:$0xff]  }
 0x9ef   : > { %v2283_v36 = vadd.f32 1.0, %v2281_v34  ;;  %v2282_v37 = vsel %vm2278_vm11, %v2276_v31, %v2280_v33  ;;  %v5896_v31 = vld [vmem:[%s7045_s14 + $0x160] sm:$0xff]   ;;  %v5898_v33 = vld [vmem:[%s7045_s14 + $0x170] sm:$0xff]   ;;  %v5899_v34 = vld [vmem:[%s7045_s14 + $0x178] sm:$0xff]  }
 0x9f0   : > { %v2284_v39 = vadd.f32 1.0, %v2282_v37 }
 0x9f1   : > { %v2285_v41 = vmul.f32 %v2283_v36, %v2233_v35  ;;  %v4978_v35 = vld [vmem:[%s6192_s19 + $0x8] ss:$0 sm:$0xff] }
 0x9f2   : > { %v2286_v42 = vmul.f32 %v2284_v39, %v2234_v38 }
 0x9f3   : > { %v2287_v45 = vpack.c.bf16 %v2285_v41, %v2285_v41 }
 0x9f4   : > { %v2288_v43 = vpack.c.bf16 %v2286_v42, %v2286_v42 }
 0x9f6   : > { %2456 = vmatprep.mubr.bf16.mxu0 %v2288_v43 }
 0x9f7   : > { %2457 = vmatmul.mubr.bf16.vlgmr.msra.gmra.mrb[28].mxu0 %v2287_v45 }
 0x9f8   : > { %5535 = vmatprep.mubr.msk.bf16.mxu0 %vm6130_vm1, %v6129_v8  ;;  %5528 = vmatpush3.bf16.msra.mxu0 %v5877_v0 }
 0x9f9   : > { %5529 = vmatprep.subr.bf16.mxu0 %v6129_v8 }
 0x9fc   : > { %5530 = vmatpush3.bf16.msra.mxu0 %v5879_v1 }
 0x9fd   : > { %5531 = vmatprep.subr.bf16.mxu0 %v6129_v8 }
 0xa00   : > { %5532 = vmatpush3.bf16.msra.mxu0 %v5881_v5 }
 0xa01   : > { %5533 = vmatprep.subr.bf16.mxu0 %v6129_v8 }
 0xa04   : > { %5534 = vmatpush3.bf16.msra.mxu0 %v5883_v6 }
 0xa05   : > { %5551 = vmatprep.subr.bf16.mxu0 %v6129_v8 }
 0xaca   : > { %v5211_v47 = vpop.f32.mrb[28].mxu0 }
 0xacb   : > { %v5212_v49 = vpop.f32.mrb[29].mxu0 }
 0xacc   : > { %v5213_v50 = vadd.f32 %v5212_v49, %v5211_v47  ;;  %v5214_v44 = vpop.f32.mrb[30].mxu0  ;;  %v4976_v49 = vld [vmem:[%s6192_s19 + $0x6] ss:$0 sm:$0xff] }
 0xacd   : > { %v5215_v52 = vpop.f32.mrb[31].mxu0 }
 0xace   : > { %v2459_v53 = vadd.f32 %v5213_v50, %v4903_v48 }
 0xad0   : > { %v2464_v46 = vadd.f32 %v2459_v53, %v6534_v21  ;;  %v5878_v21 = vld [vmem:[%s7045_s14 + $0xc8] sm:$0xff]  }
 0xad1   : > { %5506 = vmatpush3.bf16.msra.mxu1 %v5878_v21  ;;  %v4980_v53 = vld [vmem:[%s6192_s19 + $0xa] ss:$0 sm:$0xff] }
 0xad2   : > { %v2467_v54 = vsel %vm1236_vm6, %v2464_v46, 0.0  ;;  %5507 = vmatprep.subr.bf16.mxu1 %v6129_v8 }
 0xad3   : > { %2468 = vadd.xlane.f32.xlu1 %v2467_v54 }
 0xad5   : > { %5508 = vmatpush3.bf16.msra.mxu1 %v5880_v2  ;;  %v4979_v2 = vld [vmem:[%s6192_s19 + $0x9] ss:$0 sm:$0xff] }
 0xad6   : > { %5509 = vmatprep.subr.bf16.mxu1 %v6129_v8 }
 0xad9   : > { %5510 = vmatpush3.bf16.msra.mxu1 %v5882_v16 }
 0xada   : > { %5515 = vmatprep.subr.bf16.mxu1 %v6129_v8 }
 0xb60   : > { %v2469_v55 = vpop.xlane.xlu1 %2468 }
 0xb61   : > { %v2470_v56 = vmul.f32 0.015625, %v2469_v55 }
 0xb63   : > { %v2471_v58 = vsub.f32 %v2464_v46, %v2470_v56 }
 0xb65   : > { %v2472_v60 = vmul.f32 %v2471_v58, %v2471_v58 }
 0xb67   : > { %v2473_v62 = vsel %vm1236_vm6, %v2472_v60, 0.0 }
 0xb68   : > { %2474 = vadd.xlane.f32.xlu1 %v2473_v62 }
 0xbf5   : > { %v2475_v51 = vpop.xlane.xlu1 %2474 }
 0xbf6   : > { %v2476_v7 = vmul.f32 0.015625, %v2475_v51 }
 0xbf8   : > { %v2477_v9 = vadd.f32 1e-12, %v2476_v7 }
 0xbfa   : > { %5980 = vrsqrt.f32 %v2477_v9 }
 0xc04   : > { %v5981_v10 = vpop.eup %5980 }
 0xc05   : > { %v2479_v12 = vmul.f32 %v5981_v10, %v2471_v58  ;;  %v4977_v10 = vld [vmem:[%s6192_s19 + $0x7] ss:$0 sm:$0xff] }
 0xc07   : > { %v2486_v14 = vmul.f32 %v4920_v11, %v2479_v12 }
 0xc09   : > { %v6588_v15 = vadd.f32 %v4921_v13, %v2486_v14  ;;  %v4981_v14 = vld [vmem:[%s6192_s19 + $0xb] ss:$0 sm:$0xff] }
 0xc0b   : > { %v2494_v19 = vpack.c.bf16 %v6588_v15, %v6588_v15 }
 0xc0d   : > { %5512 = vmatmul.mubr.msk.bf16.vlgmr.msra.gmra.mrb[32].mxu1 %vm1236_vm6, %v2494_v19  ;;  %5536 = vmatmul.mubr.msk.bf16.vlgmr.msra.gmra.mrb[32].mxu0 %vm1236_vm6, %v2494_v19 }
 0xc0e   : > { %5516 = vmatpush3.bf16.msra.mxu1 %v5884_v17  ;;  %5552 = vmatpush3.bf16.msra.mxu0 %v5885_v18 }
 0xc0f   : > { %5517 = vmatprep.subr.bf16.mxu1 %v6129_v8  ;;  %5553 = vmatprep.subr.bf16.mxu0 %v6129_v8 }
 0xc10   : > { %5523 = vmatprep.mubr.msk.bf16.mxu1 %vm6130_vm1, %v6129_v8  ;;  %5559 = vmatprep.mubr.msk.bf16.mxu0 %vm6130_vm1, %v6129_v8 }
 0xc12   : > { %5518 = vmatpush3.bf16.msra.mxu1 %v5886_v20  ;;  %5554 = vmatpush3.bf16.msra.mxu0 %v5887_v22 }
 0xc13   : > { %5519 = vmatprep.subr.bf16.mxu1 %v6129_v8  ;;  %5555 = vmatprep.subr.bf16.mxu0 %v6129_v8 }
 0xc16   : > { %5520 = vmatpush3.bf16.msra.mxu1 %v5888_v23  ;;  %5556 = vmatpush3.bf16.msra.mxu0 %v5889_v24 }
 0xc17   : > { %5521 = vmatprep.subr.bf16.mxu1 %v6129_v8  ;;  %5557 = vmatprep.subr.bf16.mxu0 %v6129_v8 }
 0xc1a   : > { %5522 = vmatpush3.bf16.msra.mxu1 %v5890_v25  ;;  %5558 = vmatpush3.bf16.msra.mxu0 %v5891_v26 }
 0xc1b   : > { %5539 = vmatprep.subr.bf16.mxu1 %v6129_v8  ;;  %5575 = vmatprep.subr.bf16.mxu0 %v6129_v8 }
 0xc1d   : > { %5524 = vmatmul.mubr.msk.bf16.vlgmr.msra.gmra.mrb[36].mxu1 %vm1236_vm6, %v2494_v19  ;;  %5560 = vmatmul.mubr.msk.bf16.vlgmr.msra.gmra.mrb[36].mxu0 %vm1236_vm6, %v2494_v19 }
 0xc1e   : > { %5540 = vmatpush3.bf16.msra.mxu1 %v5892_v27  ;;  %5547 = vmatprep.mubr.msk.bf16.mxu1 %vm6130_vm1, %v6129_v8 }
 0xc1f   : > { %5541 = vmatprep.subr.bf16.mxu1 %v6129_v8  ;;  %5577 = vmatprep.mubr.msk.bf16.mxu0 %vm6130_vm1, %v6129_v8 }
 0xc22   : > { %5542 = vmatpush3.bf16.msra.mxu1 %v5893_v28 }
 0xc23   : > { %5543 = vmatprep.subr.bf16.mxu1 %v6129_v8 }
 0xc26   : > { %5544 = vmatpush3.bf16.msra.mxu1 %v5894_v29 }
 0xc27   : > { %5545 = vmatprep.subr.bf16.mxu1 %v6129_v8 }
 0xc2a   : > { %5546 = vmatpush3.bf16.msra.mxu1 %v5895_v30 }
 0xc2b   : > { %5563 = vmatprep.subr.bf16.mxu1 %v6129_v8 }
 0xc2d   : > { %5548 = vmatmul.mubr.msk.bf16.vlgmr.msra.gmra.mrb[40].mxu1 %vm1236_vm6, %v2494_v19 }
 0xc2e   : > { %5564 = vmatpush3.bf16.msra.mxu1 %v5896_v31  ;;  %5571 = vmatprep.mubr.msk.bf16.mxu1 %vm6130_vm1, %v6129_v8 }
 0xc2f   : > { %5565 = vmatprep.subr.bf16.mxu1 %v6129_v8 }
 0xc32   : > { %5566 = vmatpush3.bf16.msra.mxu1 %v5897_v32 }
 0xc33   : > { %5567 = vmatprep.subr.bf16.mxu1 %v6129_v8 }
 0xc36   : > { %5568 = vmatpush3.bf16.msra.mxu1 %v5898_v33 }
 0xc37   : > { %5569 = vmatprep.subr.bf16.mxu1 %v6129_v8 }
 0xc3a   : > { %5570 = vmatpush3.bf16.msra.mxu1 %v5899_v34 }
 0xc3b   : > { %5587 = vmatprep.subr.bf16.mxu1 %v6129_v8 }
 0xc3d   : > { %5572 = vmatmul.mubr.msk.bf16.vlgmr.msra.gmra.mrb[44].mxu1 %vm1236_vm6, %v2494_v19 }
 0xc3e   : > { %5589 = vmatprep.mubr.msk.bf16.mxu1 %vm6130_vm1, %v6129_v8 }
 0xce0   : > { %v2648_v36 = vpop.f32.mrb[32].mxu1  ;;  %v2776_v37 = vpop.f32.mrb[32].mxu0 }
 0xce1   : > { %v2777_v38 = vadd.f32 %v4978_v35, %v2776_v37  ;;  %v5513_v39 = vpop.f32.mrb[33].mxu1  ;;  %v5537_v41 = vpop.f32.mrb[33].mxu0  ;;  %v2649_v44 = vadd.f32 %v4976_v49, %v2648_v36 }
 0xce2   : > { %v2651_v42 = vpop.f32.mrb[34].mxu1  ;;  %v2779_v43 = vpop.f32.mrb[34].mxu0 }
 0xce3   : > { %v2976_v45 = vpack.c.bf16 %v2777_v38, %v2777_v38  ;;  %v5514_v47 = vpop.f32.mrb[35].mxu1  ;;  %v5538_v48 = vpop.f32.mrb[35].mxu0  ;;  %v2974_v52 = vpack.c.bf16 %v2649_v44, %v2649_v44 }
 0xce5   : > { %v2982_v50 = vsel %vm1756_vm7, %v2976_v45, 0 }
 0xce6   : > { %5576 = vmatpush3.bf16.xpose.msra.mxu0 %v2982_v50 }
 0xce7   : > { %5581 = vmatprep.subr.bf16.mxu0 %v6129_v8 }
 0xced   : > { %5578 = vmatmul.mubr.msk.bf16.vlgmr.msra.gmra.mrb[40].mxu0 %vm1756_vm7, %v2974_v52  ;;  %v5900_v52 = vld [vmem:[%s6197_s24 + $0x20] sm:$0xff]  }
 0xcee   : > { %5583 = vmatprep.mubr.msk.bf16.mxu0 %vm6130_vm1, %v6129_v8 }
 0xcf0   : > { %v2712_v46 = vpop.f32.mrb[36].mxu1  ;;  %v2904_v54 = vpop.f32.mrb[36].mxu0 }
 0xcf1   : > { %v2905_v55 = vadd.f32 %v4980_v53, %v2904_v54  ;;  %v5525_v56 = vpop.f32.mrb[37].mxu1  ;;  %v5561_v58 = vpop.f32.mrb[37].mxu0  ;;  %v2713_v12 = vadd.f32 %v4977_v10, %v2712_v46 }
 0xcf2   : > { %v2715_v60 = vpop.f32.mrb[38].mxu1  ;;  %v2907_v62 = vpop.f32.mrb[38].mxu0  ;;  %v5901_v58 = vld [vmem:[%s6197_s24 + $0x28] sm:$0xff]  }
 0xcf3   : > { %v3094_v63 = vpack.c.bf16 %v2905_v55, %v2905_v55  ;;  %v5526_v0 = vpop.f32.mrb[39].mxu1  ;;  %v5562_v21 = vpop.f32.mrb[39].mxu0  ;;  %v2975_v13 = vpack.c.bf16 %v2713_v12, %v2713_v12  ;;  %v5902_v60 = vld [vmem:[%s6197_s24 + $0x30] sm:$0xff]   ;;  %v5903_v62 = vld [vmem:[%s6197_s24 + $0x38] sm:$0xff]  }
 0xcf5   : > { %v3100_v1 = vsel %vm1879_vm8, %v3094_v63, 0 }
 0xcf6   : > { %5588 = vmatpush3.bf16.msra.mxu1 %v3100_v1 }
 0xcf7   : > { %5599 = vmatprep.subr.bf16.mxu1 %v6129_v8 }
 0xd00   : > { %v2840_v5 = vpop.f32.mrb[40].mxu1 }
 0xd01   : > { %v2841_v16 = vadd.f32 %v4979_v2, %v2840_v5  ;;  %v5549_v6 = vpop.f32.mrb[41].mxu1 }
 0xd02   : > { %v2843_v51 = vpop.f32.mrb[42].mxu1 }
 0xd03   : > { %v2977_v7 = vpack.c.bf16 %v2841_v16, %v2841_v16  ;;  %v5550_v9 = vpop.f32.mrb[43].mxu1 }
 0xd05   : > { %v3028_v11 = vsel %vm1756_vm7, %v2977_v7, 0 }
 0xd06   : > { %5582 = vmatpush3.bf16.xpose.msra.mxu0 %v3028_v11 }
 0xd07   : > { %5593 = vmatprep.subr.bf16.mxu0 %v6129_v8 }
 0xd0d   : > { %5584 = vmatmul.mubr.msk.bf16.vlgmr.msra.gmra.mrb[44].mxu0 %vm1756_vm7, %v2975_v13  ;;  %v5028_v13 = vld [vmem:[%s6202_s30 + $0x1] ss:$0 sm:$0xff] }
 0xd0e   : > { %5595 = vmatprep.mubr.msk.bf16.mxu0 %vm6130_vm1, %v6129_v8 }
 0xd10   : > { %v2968_v17 = vpop.f32.mrb[44].mxu1 }
 0xd11   : > { %v2969_v18 = vadd.f32 %v4981_v14, %v2968_v17  ;;  %v5573_v19 = vpop.f32.mrb[45].mxu1 }
 0xd12   : > { %v2971_v20 = vpop.f32.mrb[46].mxu1 }
 0xd13   : > { %v3095_v22 = vpack.c.bf16 %v2969_v18, %v2969_v18  ;;  %v5574_v23 = vpop.f32.mrb[47].mxu1 }
 0xd15   : > { %v3146_v24 = vsel %vm1879_vm8, %v3095_v22, 0 }
 0xd16   : > { %5594 = vmatpush3.bf16.msra.mxu0 %v3146_v24 }
 0xd17   : > { %5607 = vmatprep.subr.bf16.mxu0 %v6129_v8 }
 0xdc0   : > { %v3018_v25 = vpop.f32.mrb[40].mxu0 }
 0xdc1   : > { %v3019_v26 = vadd.f32 %v3018_v25, %v6496_v61  ;;  %v5579_v27 = vpop.f32.mrb[41].mxu0 }
 0xdc2   : > { %v3021_v28 = vpop.f32.mrb[42].mxu0 }
 0xdc3   : > { %v5580_v29 = vpop.f32.mrb[43].mxu0  ;;  %v3070_v30 = vsel %vm1849_vm9, %v3019_v26, -inf }
 0xdc4   : > { %3071 = vmax.xlane.f32.xlu1 %v3070_v30  ;;  %v5906_v30 = vld [vmem:[%s6217_s20 + $0x44] ss:$8 sps:$4 sm:$0xff]  }
 0xde0   : > { %v3064_v31 = vpop.f32.mrb[44].mxu0 }
 0xde1   : > { %v3065_v32 = vadd.f32 %v3064_v31, %v6496_v61  ;;  %v5585_v33 = vpop.f32.mrb[45].mxu0  ;;  %v5904_v31 = vld [vmem:[%s6217_s20 + $0x40] ss:$8 sps:$4 sm:$0xff]  }
 0xde2   : > { %v3067_v34 = vpop.f32.mrb[46].mxu0  ;;  %v5912_v33 = vld [vmem:[%s6217_s20 + $0x64] ss:$8 sps:$4 sm:$0xff]  }
 0xde3   : > { %v5586_v35 = vpop.f32.mrb[47].mxu0  ;;  %v3073_v36 = vsel %vm1849_vm9, %v3065_v32, -inf  ;;  %v5910_v34 = vld [vmem:[%s6217_s20 + $0x60] ss:$8 sps:$4 sm:$0xff]  }
 0xde4   : > { %3074 = vmax.xlane.f32.xlu0 %v3073_v36  ;;  %v5913_v35 = vld [vmem:[%s6217_s20 + $0x70] ss:$8 sps:$4 sm:$0xff]   ;;  %v5915_v36 = vld [vmem:[%s6217_s20 + $0x74] ss:$8 sps:$4 sm:$0xff]  }
 0xe51   : > { %v3072_v37 = vpop.xlane.xlu1 %3071 }
 0xe52   : > { %v3076_v38 = vsub.f32 %v3019_v26, %v3072_v37 }
 0xe54   : > { %v3078_v39 = vmul.f32 1.442695, %v3076_v38 }
 0xe56   : > { %5982 = vpow2.f32 %v3078_v39 }
 0xe60   : > { %v5983_v41 = vpop.eup %5982 }
 0xe61   : > { %v3082_v42 = vsel %vm1849_vm9, %v5983_v41, 0.0 }
 0xe62   : > { %3083 = vadd.xlane.f32.xlu1 %v3082_v42  ;;  %v5034_v42 = vld [vmem:[%s7047_s6 + $0x1] ss:$0 sm:$0xff]  ;;  %s7061_s6 = sld [smem:[#allocation8_spill]] }
 0xe71   : > { %v3075_v43 = vpop.xlane.xlu0 %3074 }
 0xe72   : > { %v3077_v45 = vsub.f32 %v3065_v32, %v3075_v43  ;;  %v5909_v32 = vld [vmem:[%s6217_s20 + $0x54] ss:$8 sps:$4 sm:$0xff]  }
 0xe74   : > { %v3080_v47 = vmul.f32 1.442695, %v3077_v45  ;;  %v5035_v45 = vld [vmem:[%s7055_s22 + $0x1] ss:$0 sm:$0xff] }
 0xe76   : > { %5984 = vpow2.f32 %v3080_v47 }
 0xe80   : > { %v5985_v61 = vpop.eup %5984 }
 0xe81   : > { %v3085_v48 = vsel %vm1849_vm9, %v5985_v61, 0.0 }
 0xe82   : > { %3086 = vadd.xlane.f32.xlu0 %v3085_v48 }
 0xeef   : > { %v3084_v49 = vpop.xlane.xlu1 %3083 }
 0xef0   : > { %5986 = vrcp.f32 %v3084_v49  ;;  %v5916_v49 = vld [vmem:[%s7056_s23 + $0xc0] sm:$0xff]  }
 0xefa   : > { %v5987_v50 = vpop.eup %5986 }
 0xefb   : > { %v3090_v44 = vmul.f32 %v5987_v50, %v5983_v41  ;;  %v5917_v50 = vld [vmem:[%s7056_s23 + $0x80] sm:$0xff]  }
 0xefd   : > { %v3092_v53 = vpack.c.bf16 %v3090_v44, %v3090_v44  ;;  %v5918_v44 = vld [vmem:[%s7056_s23 + $0xc8] sm:$0xff]  }
 0xeff   : > { %5590 = vmatmul.mubr.msk.bf16.vlgmr.msra.gmra.mrb[48].mxu1 %vm1849_vm9, %v3092_v53  ;;  %v5920_v53 = vld [vmem:[%s7056_s23 + $0xd0] sm:$0xff]  }
 0xf00   : > { %5600 = vmatpush3.bf16.msra.mxu1 %v5900_v52  ;;  %5603 = vmatprep.mubr.msk.bf16.mxu1 %vm6130_vm1, %v6129_v8  ;;  %v5919_v52 = vld [vmem:[%s7056_s23 + $0x88] sm:$0xff]  }
 0xf01   : > { %5601 = vmatprep.subr.bf16.mxu1 %v6129_v8 }
 0xf04   : > { %5602 = vmatpush3.bf16.msra.mxu1 %v5901_v58  ;;  %v5925_v58 = vld [vmem:[%s7056_s23 + $0xa0] sm:$0xff]  }
 0xf05   : > { %3417 = vmatprep.subr.bf16.mxu1 %v5906_v30 }
 0xf0f   : > { %v3087_v46 = vpop.xlane.xlu0 %3086 }
 0xf10   : > { %5988 = vrcp.f32 %v3087_v46  ;;  %v5921_v46 = vld [vmem:[%s7056_s23 + $0x90] sm:$0xff]  }
 0xf1a   : > { %v5989_v54 = vpop.eup %5988 }
 0xf1b   : > { %v3091_v55 = vmul.f32 %v5989_v54, %v5985_v61  ;;  %v5922_v54 = vld [vmem:[%s7056_s23 + $0xd8] sm:$0xff]  }
 0xf1d   : > { %v3093_v56 = vpack.c.bf16 %v3091_v55, %v3091_v55  ;;  %v5923_v55 = vld [vmem:[%s7056_s23 + $0x98] sm:$0xff]  }
 0xf1f   : > { %5596 = vmatmul.mubr.msk.bf16.vlgmr.msra.gmra.mrb[48].mxu0 %vm1849_vm9, %v3093_v56  ;;  %v5924_v56 = vld [vmem:[%s7056_s23 + $0xe0] sm:$0xff]  }
 0xf20   : > { %5611 = vmatprep.mubr.msk.bf16.mxu0 %vm6130_vm1, %v6129_v8  ;;  %5608 = vmatpush3.bf16.msra.mxu0 %v5902_v60  ;;  %v5926_v60 = vld [vmem:[%s7056_s23 + $0xe8] sm:$0xff]  }
 0xf21   : > { %5609 = vmatprep.subr.bf16.mxu0 %v6129_v8 }
 0xf24   : > { %5610 = vmatpush3.bf16.msra.mxu0 %v5903_v62  ;;  %v5927_v62 = vld [vmem:[%s7056_s23 + $0xa8] sm:$0xff]  }
 0xf25   : > { %5261 = vmatprep.subr.bf16.mxu0 %v5916_v49 }
 0xfd2   : > { %v3136_v63 = vpop.f32.mrb[48].mxu1 }
 0xfd3   : > { %v3199_v0 = vpack.c.bf16 %v3136_v63, %v3136_v63  ;;  %v5591_v21 = vpop.f32.mrb[49].mxu1  ;;  %v5928_v63 = vld [vmem:[%s7056_s23 + $0xf0] sm:$0xff]  }
 0xfd4   : > { %v3139_v1 = vpop.f32.mrb[50].mxu1  ;;  %v5930_v21 = vld [vmem:[%s7056_s23 + $0xf8] sm:$0xff]  }
 0xfd5   : > { %v5592_v2 = vpop.f32.mrb[51].mxu1  ;;  %5604 = vmatmul.mubr.msk.bf16.vlgmr.msra.gmra.mrb[52].mxu1 %vm1756_vm7, %v3199_v0  ;;  %v5929_v0 = vld [vmem:[%s7056_s23 + $0xb0] sm:$0xff]   ;;  %v5931_v1 = vld [vmem:[%s7056_s23 + $0xb8] sm:$0xff]  }
 0xfd6   : > { %3449 = vmatprep.mubr.bf16.mxu1 %v6127_v3  ;;  %3418 = vmatpush1.bf16.msra.mxu1 %v5904_v31  ;;  %v5044_v2 = vld [vmem:[%s7057_s16 + $0x2] sm:$0x3] }
 0xfd7   : > { %3419 = vmatprep.subr.bf16.mxu1 %v5909_v32 }
 0xff2   : > { %v3182_v5 = vpop.f32.mrb[48].mxu0 }
 0xff3   : > { %v3262_v16 = vpack.c.bf16 %v3182_v5, %v3182_v5  ;;  %v5597_v6 = vpop.f32.mrb[49].mxu0  ;;  %v3367_v5 = vrot.slane %v5044_v2, %v6493_v59 }
 0xff4   : > { %v3185_v51 = vpop.f32.mrb[50].mxu0 }
 0xff5   : > { %v5598_v7 = vpop.f32.mrb[51].mxu0  ;;  %5612 = vmatmul.mubr.msk.bf16.vlgmr.msra.gmra.mrb[52].mxu0 %vm1756_vm7, %v3262_v16  ;;  %v3371_v16 = vrot.slane %v5044_v2, %v6560_v40 }
 0xff6   : > { %5262 = vmatpush3.bf16.msra.mxu0 %v5917_v50 }
 0xff7   : > { %5263 = vmatprep.subr.bf16.mxu0 %v5918_v44 }
 0xffa   : > { %5264 = vmatpush3.bf16.msra.mxu0 %v5919_v52 }
 0xffb   : > { %5265 = vmatprep.subr.bf16.mxu0 %v5920_v53 }
 0xffe   : > { %5266 = vmatpush3.bf16.msra.mxu0 %v5921_v46 }
 0xfff   : > { %5267 = vmatprep.subr.bf16.mxu0 %v5922_v54 }
0x1002   : > { %5268 = vmatpush3.bf16.msra.mxu0 %v5923_v55 }
0x1003   : > { %5269 = vmatprep.subr.bf16.mxu0 %v5924_v56 }
0x1006   : > { %5270 = vmatpush3.bf16.msra.mxu0 %v5925_v58 }
0x1007   : > { %5271 = vmatprep.subr.bf16.mxu0 %v5926_v60 }
0x100a   : > { %5272 = vmatpush3.bf16.msra.mxu0 %v5927_v62 }
0x100b   : > { %5273 = vmatprep.subr.bf16.mxu0 %v5928_v63 }
0x100e   : > { %5274 = vmatpush3.bf16.msra.mxu0 %v5929_v0 }
0x100f   : > { %5275 = vmatprep.subr.bf16.mxu0 %v5930_v21 }
0x1012   : > { %5276 = vmatpush3.bf16.msra.mxu0 %v5931_v1 }
0x1013   : > { %5661 = vmatprep.subr.bf16.mxu0 %v6128_v4 }
0x10a8   : > { %v3249_v9 = vpop.f32.mrb[52].mxu1 }
0x10a9   : > { %v5605_v10 = vpop.f32.mrb[53].mxu1  ;;  %v3261_v14 = vadd.f32 %v5028_v13, %v3249_v9 }
0x10aa   : > { %v3252_v11 = vpop.f32.mrb[54].mxu1 }
0x10ab   : > { %v5606_v12 = vpop.f32.mrb[55].mxu1 }
0x10c8   : > { %v3312_v17 = vpop.f32.mrb[52].mxu0 }
0x10c9   : > { %v3318_v18 = vadd.f32 %v3312_v17, %v3261_v14  ;;  %v5613_v19 = vpop.f32.mrb[53].mxu0 }
0x10ca   : > { %v3315_v20 = vpop.f32.mrb[54].mxu0 }
0x10cb   : > { %v5614_v22 = vpop.f32.mrb[55].mxu0  ;;  %v3319_v23 = vadd.f32 %v3318_v18, %v6588_v15  ;;  %v5907_v15 = vld [vmem:[%s6217_s20 + $0x50] ss:$8 sps:$4 sm:$0xff]  }
0x10cc   : > { %3420 = vmatpush1.bf16.msra.mxu1 %v5907_v15 }
0x10cd   : > { %v3324_v24 = vsel %vm1236_vm6, %v3319_v23, 0.0  ;;  %3421 = vmatprep.subr.bf16.mxu1 %v5912_v33 }
0x10ce   : > { %3325 = vadd.xlane.f32.xlu1 %v3324_v24 }
0x10d0   : > { %3422 = vmatpush1.bf16.msra.mxu1 %v5910_v34 }
0x10d1   : > { %3423 = vmatprep.subr.bf16.mxu1 %v5915_v36 }
0x10d4   : > { %3424 = vmatpush1.bf16.msra.mxu1 %v5913_v35 }
0x10d5   : > { %5615 = vmatprep.subr.bf16.mxu1 %v6129_v8 }
0x115b   : > { %v3326_v25 = vpop.xlane.xlu1 %3325 }
0x115c   : > { %v3327_v26 = vmul.f32 0.015625, %v3326_v25 }
0x115e   : > { %v3328_v27 = vsub.f32 %v3319_v23, %v3327_v26 }
0x1160   : > { %v3329_v28 = vmul.f32 %v3328_v27, %v3328_v27 }
0x1162   : > { %v3330_v29 = vsel %vm1236_vm6, %v3329_v28, 0.0 }
0x1163   : > { %3331 = vadd.xlane.f32.xlu0 %v3330_v29 }
0x11f0   : > { %v3332_v37 = vpop.xlane.xlu0 %3331 }
0x11f1   : > { %v3333_v38 = vmul.f32 0.015625, %v3332_v37 }
0x11f3   : > { %v3334_v39 = vadd.f32 1e-12, %v3333_v38 }
0x11f5   : > { %5990 = vrsqrt.f32 %v3334_v39 }
0x11ff   : > { %v5991_v41 = vpop.eup %5990 }
0x1200   : > { %v3336_v43 = vmul.f32 %v5991_v41, %v3328_v27 }
0x1202   : > { %v3343_v47 = vmul.f32 %v5034_v42, %v3336_v43 }
0x1204   : > { %v6698_v61 = vadd.f32 %v5035_v45, %v3343_v47 }
0x1206   : > { %v3351_v48 = vpack.c.bf16 %v6698_v61, %v6698_v61 }
0x1208   : > { %5053 = vmatmul.mubr.msk.bf16.vlgmr.msra.gmra.mrb[56].mxu1 %vm1236_vm6, %v3351_v48 }
0x1209   : > { %5617 = vmatprep.mubr.msk.bf16.mxu1 %vm6130_vm1, %v6129_v8 }
0x12db   : > { %v3451_v6 = vpop.f32.mrb[56].mxu1 }
0x12dc   : > { %v3452_v51 = vadd.f32 %v3451_v6, %v3367_v5  ;;  %v3453_v7 = vpop.f32.mrb[57].mxu1 }
0x12dd   : > { %v3454_v9 = vadd.f32 %v3453_v7, %v3371_v16  ;;  %v3455_v10 = vpop.f32.mrb[58].mxu1 }
0x12de   : > { %v3460_v11 = vmul.f32 0.70710677, %v3452_v51  ;;  %v3456_v12 = vpop.f32.mrb[59].mxu1  ;;  %v3458_v62 = vmul.f32 0.5, %v3452_v51  ;;  %v5087_v10 = vld [vmem:[%s7058_s3 + $0x1] ss:$0 sm:$0xff]  ;;  %s1053_s3 = scalar_lea.vmem %s7061_s6, %s6365_s2 }
0x12df   : > { %v3461_v13 = vmul.f32 0.70710677, %v3454_v9  ;;  %v3459_v21 = vmul.f32 0.5, %v3454_v9  ;;  %s7066_s6 = sld [smem:[#allocation23_spill]]  ;;  %s7067_s2 = sld [smem:[#allocation25_spill]] }
0x12e0   : > { %v3462_v14 = vand.u32 2147483647, %v3460_v11  ;;  %vm3502_vm12 = vcmp.ge.f32.partialorder %v3460_v11, 0.0 }
0x12e1   : > { %v3463_v17 = vand.u32 2147483647, %v3461_v13  ;;  %vm3503_vm13 = vcmp.ge.f32.partialorder %v3461_v13, 0.0 }
0x12e2   : > { %v3464_v18 = vmul.f32 0.3275911, %v3462_v14  ;;  %v3490_v23 = vmul.f32 %v3462_v14, %v3462_v14 }
0x12e3   : > { %v3465_v19 = vmul.f32 0.3275911, %v3463_v17  ;;  %v3491_v24 = vmul.f32 %v3463_v17, %v3463_v17 }
0x12e4   : > { %v3466_v20 = vadd.f32 1.0, %v3464_v18  ;;  %v3492_v26 = vsub.f32 0.0, %v3490_v23 }
0x12e5   : > { %v3467_v22 = vadd.f32 1.0, %v3465_v19  ;;  %v3493_v29 = vsub.f32 0.0, %v3491_v24  ;;  %v6733_v24 = vld [vmem:[%s1053_s3] sm:$0x1]  ;;  %s7065_s3 = sld [smem:[#allocation21_spill]] }
0x12e6   : > { %5992 = vrcp.f32 %v3466_v20  ;;  %v3494_v32 = vmul.f32 1.442695, %v3492_v26  ;;  %v3733_v26 = vpack.c.bf16 %v6733_v24, %v6733_v24 }
0x12e7   : > { %5994 = vrcp.f32 %v3467_v22  ;;  %v3496_v34 = vmul.f32 1.442695, %v3493_v29  ;;  %v5934_v29 = vld [vmem:[%s7063_s13 + $0x10] sm:$0xff]  }
0x12e8   : > { %5996 = vpow2.f32 %v3494_v32 }
0x12e9   : > { %5998 = vpow2.f32 %v3496_v34  ;;  %v5106_v34 = vld [vmem:[%s7059_s5 + $0x1] ss:$0 sm:$0xff] }
0x12f0   : > { %v5993_v25 = vpop.eup %5992 }
0x12f1   : > { %v5995_v27 = vpop.eup %5994  ;;  %v3472_v28 = vmul.f32 1.0614054, %v5993_v25 }
0x12f2   : > { %v3473_v30 = vmul.f32 1.0614054, %v5995_v27  ;;  %v5997_v50 = vpop.eup %5996 }
0x12f3   : > { %v3474_v31 = vadd.f32 -1.4531521, %v3472_v28  ;;  %v5999_v52 = vpop.eup %5998  ;;  %v5933_v28 = vld [vmem:[%s7063_s13 + $0x8] sm:$0xff]  }
0x12f4   : > { %v3475_v15 = vadd.f32 -1.4531521, %v3473_v30  ;;  %v5935_v30 = vld [vmem:[%s7063_s13 + $0x18] sm:$0xff]  }
0x12f5   : > { %v3476_v33 = vmul.f32 %v5993_v25, %v3474_v31 }
0x12f6   : > { %v3477_v35 = vmul.f32 %v5995_v27, %v3475_v15 }
0x12f7   : > { %v3478_v36 = vadd.f32 1.4214138, %v3476_v33 }
0x12f8   : > { %v3479_v37 = vadd.f32 1.4214138, %v3477_v35 }
0x12f9   : > { %v3480_v38 = vmul.f32 %v5993_v25, %v3478_v36  ;;  %v5107_v36 = vld [vmem:[%s7060_s8 + $0x1] ss:$0 sm:$0xff] }
0x12fa   : > { %v3481_v39 = vmul.f32 %v5995_v27, %v3479_v37 }
0x12fb   : > { %v3482_v41 = vadd.f32 -0.28449672, %v3480_v38 }
0x12fc   : > { %v3483_v42 = vadd.f32 -0.28449672, %v3481_v39 }
0x12fd   : > { %v3484_v43 = vmul.f32 %v5993_v25, %v3482_v41 }
0x12fe   : > { %v3485_v45 = vmul.f32 %v5995_v27, %v3483_v42 }
0x12ff   : > { %v3486_v47 = vadd.f32 0.2548296, %v3484_v43 }
0x1300   : > { %v3487_v48 = vadd.f32 0.2548296, %v3485_v45 }
0x1301   : > { %v3488_v49 = vmul.f32 %v5993_v25, %v3486_v47  ;;  %v3734_v25 = vld [vmem:[%s7062_s9] sm:$0x1]  ;;  %s7064_s9 = sld [smem:[#allocation22_spill]] }
0x1302   : > { %v3489_v44 = vmul.f32 %v5995_v27, %v3487_v48  ;;  %v5932_v27 = vld [vmem:[%s7063_s13] sm:$0xff]  }
0x1303   : > { %v3498_v53 = vmul.f32 %v5997_v50, %v3488_v49 }
0x1304   : > { %v3499_v46 = vmul.f32 %v5999_v52, %v3489_v44 }
0x1305   : > { %v3500_v54 = vsub.f32 1.0, %v3498_v53 }
0x1306   : > { %v3501_v55 = vsub.f32 1.0, %v3499_v46 }
0x1307   : > { %v3504_v56 = vsub.f32 0.0, %v3500_v54  ;;  %v3852_v45 = vld [vmem:[%s7064_s9] sm:$0xff]  ;;  %v3853_v47 = vld [vmem:[%s7064_s9 + $0x8] sm:$0xff]  ;;  %v3854_v49 = vld [vmem:[%s7064_s9 + $0x10] sm:$0xff] }
0x1308   : > { %v3505_v58 = vsub.f32 0.0, %v3501_v55  ;;  %v5662_v48 = vpack.c.bf16 %v3853_v47, %v3852_v45  ;;  %v3855_v50 = vld [vmem:[%s7064_s9 + $0x18] sm:$0xff]  ;;  %v3856_v52 = vld [vmem:[%s7064_s9 + $0x20] sm:$0xff]  ;;  %v3857_v53 = vld [vmem:[%s7064_s9 + $0x28] sm:$0xff] }
0x1309   : > { %v3506_v60 = vsel %vm3502_vm12, %v3500_v54, %v3504_v56  ;;  %v5665_v44 = vpack.c.bf16 %v3855_v50, %v3854_v49  ;;  %v5668_v46 = vpack.c.bf16 %v3857_v53, %v3856_v52  ;;  %v3858_v54 = vld [vmem:[%s7064_s9 + $0x30] sm:$0xff] }
0x130a   : > { %v3508_v63 = vadd.f32 1.0, %v3506_v60  ;;  %v3507_v0 = vsel %vm3503_vm13, %v3501_v55, %v3505_v58  ;;  %v3859_v55 = vld [vmem:[%s7064_s9 + $0x38] sm:$0xff]  ;;  %v3849_v60 = vld [vmem:[%s7065_s3] sm:$0x1]  ;;  %s7068_s3 = sld [smem:[#allocation24_spill]] }
0x130b   : > { %v3509_v1 = vadd.f32 1.0, %v3507_v0  ;;  %v5671_v56 = vpack.c.bf16 %v3859_v55, %v3858_v54 }
0x130c   : > { %v3510_v2 = vmul.f32 %v3508_v63, %v3458_v62 }
0x130d   : > { %v3511_v5 = vmul.f32 %v3509_v1, %v3459_v21 }
0x130e   : > { %v3512_v6 = vpack.c.bf16 %v3510_v2, %v3510_v2 }
0x130f   : > { %v3513_v16 = vpack.c.bf16 %v3511_v5, %v3511_v5  ;;  %v3860_v5 = vld [vmem:[%s7066_s6] sm:$0x1]  ;;  %s7069_s6 = sld [smem:[#allocation26_spill]] }
0x1310   : > { %v5936_v47 = vld [vmem:[%s7068_s3] ss:$16 sps:$4 sm:$0xff]   ;;  %v5944_v50 = vld [vmem:[%s7068_s3 + $0x24] ss:$16 sps:$4 sm:$0xff]   ;;  %v5945_v53 = vld [vmem:[%s7068_s3 + $0x28] ss:$16 sps:$4 sm:$0xff]  }
0x1311   : > { %3683 = vmatprep.mubr.bf16.mxu0 %v3513_v16  ;;  %v5942_v52 = vld [vmem:[%s7068_s3 + $0x20] ss:$16 sps:$4 sm:$0xff]   ;;  %v5951_v55 = vld [vmem:[%s7068_s3 + $0x48] ss:$16 sps:$4 sm:$0xff]  }
0x1312   : > { %3684 = vmatmul.mubr.bf16.vlgmr.msra.gmra.mrb[56].mxu0 %v3512_v6  ;;  %v5948_v54 = vld [vmem:[%s7068_s3 + $0x40] ss:$16 sps:$4 sm:$0xff]  }
0x1313   : > { %5649 = vmatprep.mubr.msk.f32.mxu0 %vm6130_vm1, %v6129_v8  ;;  %5663 = vmatpush3.bf16.msra.mxu0 %v5662_v48  ;;  %v5939_v48 = vld [vmem:[%s7068_s3 + $0x8] ss:$16 sps:$4 sm:$0xff]  }
0x1314   : > { %5664 = vmatprep.subr.bf16.mxu0 %v6128_v4 }
0x1317   : > { %5666 = vmatpush3.bf16.msra.mxu0 %v5665_v44  ;;  %v5947_v44 = vld [vmem:[%s7068_s3 + $0x2c] ss:$16 sps:$4 sm:$0xff]  }
0x1318   : > { %5667 = vmatprep.subr.bf16.mxu0 %v6128_v4 }
0x131b   : > { %5669 = vmatpush3.bf16.msra.mxu0 %v5668_v46  ;;  %v5953_v46 = vld [vmem:[%s7068_s3 + $0x4c] ss:$16 sps:$4 sm:$0xff]  }
0x131c   : > { %5670 = vmatprep.subr.bf16.mxu0 %v6128_v4 }
0x131f   : > { %5672 = vmatpush3.bf16.msra.mxu0 %v5671_v56  ;;  %v5956_v56 = vld [vmem:[%s7068_s3 + $0x64] ss:$16 sps:$4 sm:$0xff]  }
0x13e5   : > { %v5277_v7 = vpop.f32.mrb[56].mxu0 }
0x13e6   : > { %v5278_v11 = vpop.f32.mrb[57].mxu0 }
0x13e7   : > { %v5279_v51 = vadd.f32 %v5278_v11, %v5277_v7  ;;  %v5280_v12 = vpop.f32.mrb[58].mxu0 }
0x13e8   : > { %v5281_v13 = vpop.f32.mrb[59].mxu0 }
0x13e9   : > { %v3686_v9 = vadd.f32 %v5279_v51, %v5087_v10 }
0x13eb   : > { %v3691_v14 = vadd.f32 %v3686_v9, %v6698_v61  ;;  %v3740_v61 = vsel %vm3738_vm14, %v3734_v25, 0 }
0x13ec   : > { %5616 = vmatpush3.bf16.msra.mxu1 %v3740_v61  ;;  %v6131_v61 = vmov 1  }
0x13ed   : > { %v3696_v17 = vsel %vm1236_vm6, %v3691_v14, 0.0  ;;  %5621 = vmatprep.subr.bf16.mxu1 %v6129_v8  ;;  %5818 = vset.pattern.permute.xlu1 %v6131_v61 }
0x13ee   : > { %3697 = vadd.xlane.f32.xlu1 %v3696_v17 }
0x13ef   : > { %5618 = vmatmul.mubr.msk.bf16.vlgmr.msra.gmra.mrb[60].mxu1 %vm1156_vm4, %v3733_v26  ;;  %v5115_v26 = vld.sshfl [vmem:[%s7067_s2] sm:$0x33 pattern:$0x75316420]  ;;  %s7070_s2 = sld [smem:[#allocation27_spill]] }
0x13f0   : > { %5629 = vmatprep.mubr.msk.bf16.mxu1 %vm6130_vm1, %v6129_v8  ;;  %5622 = vmatpush3.bf16.msra.mxu1 %v5932_v27  ;;  %v6132_v27 = vmov 1966171168  }
0x13f1   : > { %5623 = vmatprep.subr.bf16.mxu1 %v6129_v8 }
0x13f4   : > { %5624 = vmatpush3.bf16.msra.mxu1 %v5933_v28  ;;  %v3997_v28 = vunpack.c.l.s4 %v6132_v27 }
0x13f5   : > { %5625 = vmatprep.subr.bf16.mxu1 %v6129_v8 }
0x13f8   : > { %5626 = vmatpush3.bf16.msra.mxu1 %v5934_v29  ;;  %v3995_v29 = vcombine.high %v5115_v26, %v5115_v26 }
0x13f9   : > { %5627 = vmatprep.subr.bf16.mxu1 %v6129_v8 }
0x13fc   : > { %5628 = vmatpush3.bf16.msra.mxu1 %v5935_v30  ;;  %v3998_v30 = vunpack.c.0.s8 %v3997_v28 }
0x147b   : > { %v3698_v18 = vpop.xlane.xlu1 %3697 }
0x147c   : > { %v3699_v19 = vmul.f32 0.015625, %v3698_v18 }
0x147e   : > { %v3700_v20 = vsub.f32 %v3691_v14, %v3699_v19 }
0x1480   : > { %v3701_v22 = vmul.f32 %v3700_v20, %v3700_v20 }
0x1482   : > { %v3702_v23 = vsel %vm1236_vm6, %v3701_v22, 0.0 }
0x1483   : > { %3703 = vadd.xlane.f32.xlu0 %v3702_v23 }
0x14c2   : > { %v3776_v39 = vpop.f32.mrb[60].mxu1 }
0x14c3   : > { %v5619_v41 = vpop.f32.mrb[61].mxu1 }
0x14c4   : > { %v3779_v42 = vpop.f32.mrb[62].mxu1  ;;  %v5938_v41 = vld [vmem:[%s7068_s3 + $0x4] ss:$16 sps:$4 sm:$0xff]  }
0x14c5   : > { %v5620_v43 = vpop.f32.mrb[63].mxu1  ;;  %v5941_v42 = vld [vmem:[%s7068_s3 + $0xc] ss:$16 sps:$4 sm:$0xff]  }
0x1510   : > { %v3704_v31 = vpop.xlane.xlu0 %3703 }
0x1511   : > { %v3705_v32 = vmul.f32 0.015625, %v3704_v31  ;;  %v4001_v31 = vsub.s32 %v3998_v30, %v6490_v57 }
0x1513   : > { %v3706_v15 = vadd.f32 1e-12, %v3705_v32  ;;  %v4009_v32 = vrot.slane %v3995_v29, %v4001_v31 }
0x1515   : > { %6000 = vrsqrt.f32 %v3706_v15  ;;  %v4002_v15 = vrot.slane %v5115_v26, %v4001_v31  ;;  %5116 = vmatprep.subr.msk.bf16.mxu1 %vm3738_vm14, %v4009_v32 }
0x151f   : > { %v6001_v33 = vpop.eup %6000 }
0x1520   : > { %v3708_v35 = vmul.f32 %v6001_v33, %v3700_v20  ;;  %v4016_v33 = vsel %vm3738_vm14, %v4002_v15, 0 }
0x1522   : > { %v3715_v37 = vmul.f32 %v5106_v34, %v3708_v35  ;;  %v4011_v34 = vcombine.high %v4009_v32, %v4009_v32 }
0x1524   : > { %v6752_v38 = vadd.f32 %v5107_v36, %v3715_v37  ;;  %5118 = vmatprep.subr.msk.bf16.mxu0 %vm3738_vm14, %v4011_v34  ;;  %v4010_v37 = vcombine.high %v4002_v15, %v4002_v15 }
0x1526   : > { %v3724_v8 = vpack.c.bf16 %v6752_v38, %v6752_v38 }
0x1528   : > { %5630 = vmatmul.mubr.msk.bf16.vlgmr.msra.gmra.mrb[64].mxu1 %vm1236_vm6, %v3724_v8 }
0x1529   : > { %4059 = vmatprep.mubr.bf16.mxu1 %v6127_v3  ;;  %4028 = vmatpush1.bf16.msra.mxu1 %v4016_v33 }
0x152a   : > { %4192 = vmatprep.subr.bf16.mxu1 %v5938_v41 }
0x15fb   : > { %v3843_v58 = vpop.f32.mrb[64].mxu1 }
0x15fc   : > { %v3844_v62 = vadd.f32 %v3843_v58, %v3776_v39  ;;  %v5631_v63 = vpop.f32.mrb[65].mxu1  ;;  %v4022_v39 = vsel %vm3738_vm14, %v4010_v37, 0  ;;  %v5959_v58 = vld [vmem:[%s7068_s3 + $0x6c] ss:$16 sps:$4 sm:$0xff]  }
0x15fd   : > { %v3846_v0 = vpop.f32.mrb[66].mxu1  ;;  %v5957_v63 = vld [vmem:[%s7068_s3 + $0x68] ss:$16 sps:$4 sm:$0xff]  }
0x15fe   : > { %v3850_v21 = vadd.f32 %v3849_v60, %v3844_v62  ;;  %v5632_v1 = vpop.f32.mrb[67].mxu1  ;;  %v5954_v62 = vld [vmem:[%s7068_s3 + $0x60] ss:$16 sps:$4 sm:$0xff]  }
0x1600   : > { %6002 = vtanh.f32 %v3850_v21 }
0x160a   : > { %v6003_v2 = vpop.eup %6002 }
0x160b   : > { %5650 = vmatmul.mubr.msk.f32.vlgmr.msra.gmra.mrb[2].mxu0 %vm1236_vm6, %v6003_v2 }
0x160c   : > { %4100 = vmatprep.mubr.bf16.mxu0 %v6127_v3  ;;  %4069 = vmatpush1.bf16.msra.mxu0 %v4022_v39 }
0x160d   : > { %4233 = vmatprep.subr.bf16.mxu0 %v5941_v42 }
0x16de   : > { %v3930_v16 = vpop.f32.mrb[2].mxu0 }
0x16df   : > { %v3931_v6 = vadd.f32 %v3930_v16, %v3860_v5  ;;  %v5651_v7 = vpop.f32.mrb[3].mxu0 }
0x16e1   : > { %v3935_v4 = vsel %vm3934_vm15, %v3931_v6, -inf }
0x16e2   : > { %3936 = vmax.xlane.f32.xlu1 %v3935_v4 }
0x176f   : > { %v3937_v10 = vpop.xlane.xlu1 %3936 }
0x1770   : > { %v3938_v11 = vsub.f32 %v3931_v6, %v3937_v10  ;;  %v4274_v10 = vld [vmem:[%s7069_s6] sm:$0xf]  ;;  %s1038_s6 = sand.u32 1, %s6084_s10  }
0x1771   : > { %s4703_s9 = scalar_lea.sflag [#allocation3], %s1038_s6 }
0x1772   : > { %v3939_v51 = vmul.f32 1.442695, %v3938_v11  ;;  %v6812_v11 = vsub.s32 3, %v6490_v57 }
0x1774   : > { %6004 = vpow2.f32 %v3939_v51  ;;  %v4279_v51 = vrot.slane %v4274_v10, %v6493_v59 }
0x177e   : > { %v6005_v12 = vpop.eup %6004 }
0x177f   : > { %v3941_v13 = vsel %vm3934_vm15, %v6005_v12, 0.0 }
0x1780   : > { %3942 = vadd.xlane.f32.xlu0 %v3941_v13 }
0x180d   : > { %v3943_v9 = vpop.xlane.xlu0 %3942 }
0x180e   : > { %6006 = vrcp.f32 %v3943_v9 }
0x1818   : > { %v6007_v14 = vpop.eup %6006 }
0x1819   : > { %v3945_v17 = vmul.f32 %v6007_v14, %v6005_v12  ;;  %v4283_v14 = vrot.slane %v4274_v10, %v6560_v40 }
0x181b   : > { %v3946_v18 = vsel %vm3934_vm15, %v3945_v17, -inf }
0x181c   : > { %3947 = vmax.xlane.f32.xlu1 %v3946_v18 }
0x18a9   : > { %v3948_v19 = vpop.xlane.xlu1 %3947 }
0x18aa   : > { %v3949_v20 = vsub.f32 %v3945_v17, %v3948_v19  ;;  %v4291_v17 = vrot.slane %v4274_v10, %v6812_v11 }
0x18ac   : > { %v3950_v22 = vmul.f32 1.442695, %v3949_v20 }
0x18ae   : > { %6008 = vpow2.f32 %v3950_v22 }
0x18b8   : > { %v6009_v23 = vpop.eup %6008 }
0x18b9   : > { %v3952_v25 = vsel %vm3934_vm15, %v6009_v23, 0.0 }
0x18ba   : > { %3953 = vadd.xlane.f32.xlu0 %v3952_v25 }
0x1947   : > { %v3954_v35 = vpop.xlane.xlu0 %3953 }
0x1948   : > { %6010 = vrcp.f32 %v3954_v35 }
0x1952   : > { %v6011_v36 = vpop.eup %6010 }
0x1953   : > { %v3956_v8 = vmul.f32 %v6011_v36, %v6009_v23 }
0x1955   : > { %3959 = vperm.xlu0 %5817, %v3956_v8   ;;  %3964 = vperm.xlu1 %5818, %v3956_v8  }
0x1959   : > { %5819 = vset.pattern.permute.xlu0 %v6131_v61 }
0x19d4   : > { %v3965_v43 = vpop.permute.xlu1 %3964  ;;  %v3960_v60 = vpop.permute.xlu0 %3959 }
0x19d5   : > { %v3967_v45 = vmul.f32 %v3965_v43, %v6733_v24  ;;  %v5950_v24 = vld [vmem:[%s7068_s3 + $0x44] ss:$16 sps:$4 sm:$0xff]   ;;  %v3962_v0 = vmul.f32 %v3960_v60, %v6752_v38  ;;  %v6808_v38 = vsub.s32 2, %v6490_v57  ;;  %s1039_s3 = scalar_lea.vmem [#allocation2], %s1038_s6 }
0x19d6   : > { %s4715_s5 = sshll.u32 %s1039_s3, 4  ;;  %s6966_s5 = int_to_ptr.vmem [resolvable:$true] %s4715_s5 }
0x19d7   : > { %v3985_v49 = vpack.c.bf16 %v3967_v45, %v3967_v45  ;;  %v4287_v12 = vrot.slane %v4274_v10, %v6808_v38 }
0x19d9   : > { %5117 = vmatmul.mubr.msk.bf16.vlgmr.msra.gmra.mrb[68].mxu1 %vm1156_vm4, %v3985_v49  ;;  %5119 = vmatmul.mubr.msk.bf16.vlgmr.msra.gmra.mrb[60].mxu0 %vm1156_vm4, %v3985_v49  ;;  %vm4700_vm4 = vcmask 16384  }
0x19da   : > { %4193 = vmatpush1.bf16.msra.mxu1 %v5936_v47  ;;  %4234 = vmatpush1.bf16.msra.mxu0 %v5939_v48 }
0x19db   : > { %4194 = vmatprep.subr.bf16.mxu1 %v5944_v50  ;;  %4235 = vmatprep.subr.bf16.mxu0 %v5947_v44 }
0x19dc   : > { %4224 = vmatprep.mubr.bf16.mxu1 %v6127_v3  ;;  %4265 = vmatprep.mubr.bf16.mxu0 %v6127_v3  ;;  %v3968_v3 = vpack.c.bf16 %v3962_v0, %v3962_v0 }
0x19de   : > { %4195 = vmatpush1.bf16.msra.mxu1 %v5942_v52  ;;  %4236 = vmatpush1.bf16.msra.mxu0 %v5945_v53 }
0x19df   : > { %4196 = vmatprep.subr.bf16.mxu1 %v5950_v24  ;;  %4237 = vmatprep.subr.bf16.mxu0 %v5953_v46 }
0x19e2   : > { %4197 = vmatpush1.bf16.msra.mxu1 %v5948_v54  ;;  %4238 = vmatpush1.bf16.msra.mxu0 %v5951_v55 }
0x19e3   : > { %4198 = vmatprep.subr.bf16.mxu1 %v5956_v56  ;;  %4239 = vmatprep.subr.bf16.mxu0 %v5959_v58 }
0x19e6   : > { %4199 = vmatpush1.bf16.msra.mxu1 %v5954_v62  ;;  %4240 = vmatpush1.bf16.msra.mxu0 %v5957_v63 }
0x19e9   : > { %5136 = vmatmul.mubr.msk.bf16.vlgmr.msra.gmra.mrb[72].mxu1 %vm1236_vm6, %v3968_v3  ;;  %5137 = vmatmul.mubr.msk.bf16.vlgmr.msra.gmra.mrb[64].mxu0 %vm1236_vm6, %v3968_v3 }
0x1aac   : > { %v4061_v21 = vpop.f32.mrb[68].mxu1  ;;  %v4102_v1 = vpop.f32.mrb[60].mxu0 }
0x1aad   : > { %v4063_v2 = vpop.f32.mrb[69].mxu1  ;;  %v4104_v5 = vpop.f32.mrb[61].mxu0 }
0x1aae   : > { %v4065_v16 = vpop.f32.mrb[70].mxu1  ;;  %v4106_v6 = vpop.f32.mrb[62].mxu0 }
0x1aaf   : > { %v4066_v7 = vpop.f32.mrb[71].mxu1  ;;  %v4107_v4 = vpop.f32.mrb[63].mxu0 }
0x1abc   : > { %v4226_v13 = vpop.f32.mrb[72].mxu1  ;;  %v4267_v9 = vpop.f32.mrb[64].mxu0 }
0x1abd   : > { %v4227_v18 = vadd.f32 %v4226_v13, %v4061_v21  ;;  %v4268_v19 = vadd.f32 %v4267_v9, %v4102_v1  ;;  %v4228_v20 = vpop.f32.mrb[73].mxu1  ;;  %v4269_v22 = vpop.f32.mrb[65].mxu0 }
0x1abe   : > { %v4229_v23 = vadd.f32 %v4228_v20, %v4063_v2  ;;  %v4270_v25 = vadd.f32 %v4269_v22, %v4104_v5  ;;  %v4230_v61 = vpop.f32.mrb[74].mxu1  ;;  %v4271_v26 = vpop.f32.mrb[66].mxu0 }
0x1abf   : > { %v6818_v57 = vadd.f32 %v4279_v51, %v4227_v18  ;;  %v6820_v27 = vadd.f32 %v4287_v12, %v4268_v19  ;;  %v4231_v28 = vpop.f32.mrb[75].mxu1  ;;  %v4272_v29 = vpop.f32.mrb[67].mxu0 }
0x1ac0   : > { %v6822_v30 = vadd.f32 %v4283_v14, %v4229_v23  ;;  %v6824_v31 = vadd.f32 %v4291_v17, %v4270_v25 }
0x1ac1   : > { %v6827_v32 = vmul.f32 0.70710677, %v6818_v57  ;;  %v6830_v15 = vmul.f32 0.70710677, %v6820_v27 }
0x1ac2   : > { %v6833_v33 = vmul.f32 0.70710677, %v6822_v30  ;;  %v6836_v34 = vmul.f32 0.70710677, %v6824_v31 }
0x1ac3   : > { %v4308_v35 = vand.u32 2147483647, %v6827_v32  ;;  %v4310_v36 = vand.u32 2147483647, %v6830_v15  ;;  %vm4388_vm0 = vcmp.ge.f32.partialorder %v6827_v32, 0.0  ;;  %vm4390_vm1 = vcmp.ge.f32.partialorder %v6830_v15, 0.0 }
0x1ac4   : > { %v4309_v37 = vand.u32 2147483647, %v6833_v33  ;;  %v4311_v8 = vand.u32 2147483647, %v6836_v34  ;;  %vm4389_vm2 = vcmp.ge.f32.partialorder %v6833_v33, 0.0  ;;  %v4302_v32 = vmul.f32 0.5, %v6820_v27 }
0x1ac5   : > { %v4312_v39 = vmul.f32 0.3275911, %v4308_v35  ;;  %v4314_v41 = vmul.f32 0.3275911, %v4310_v36  ;;  %v4364_v50 = vmul.f32 %v4308_v35, %v4308_v35  ;;  %v4366_v44 = vmul.f32 %v4310_v36, %v4310_v36 }
0x1ac6   : > { %v4313_v42 = vmul.f32 0.3275911, %v4309_v37  ;;  %v4315_v47 = vmul.f32 0.3275911, %v4311_v8  ;;  %v4365_v24 = vmul.f32 %v4309_v37, %v4309_v37  ;;  %v4367_v56 = vmul.f32 %v4311_v8, %v4311_v8 }
0x1ac7   : > { %v4316_v43 = vadd.f32 1.0, %v4312_v39  ;;  %v4318_v45 = vadd.f32 1.0, %v4314_v41  ;;  %v4368_v53 = vsub.f32 0.0, %v4364_v50  ;;  %v4370_v55 = vsub.f32 0.0, %v4366_v44 }
0x1ac8   : > { %v4317_v48 = vadd.f32 1.0, %v4313_v42  ;;  %v4319_v49 = vadd.f32 1.0, %v4315_v47  ;;  %v4369_v0 = vsub.f32 0.0, %v4365_v24  ;;  %v4371_v16 = vsub.f32 0.0, %v4367_v56 }
0x1ac9   : > { %6012 = vrcp.f32 %v4316_v43  ;;  %v4372_v63 = vmul.f32 1.442695, %v4368_v53  ;;  %v4376_v1 = vmul.f32 1.442695, %v4370_v55  ;;  %vm4391_vm3 = vcmp.ge.f32.partialorder %v6836_v34, 0.0 }
0x1aca   : > { %6014 = vrcp.f32 %v4318_v45  ;;  %v4374_v51 = vmul.f32 1.442695, %v4369_v0  ;;  %v4378_v17 = vmul.f32 1.442695, %v4371_v16 }
0x1acb   : > { %6016 = vrcp.f32 %v4317_v48 }
0x1acc   : > { %6018 = vrcp.f32 %v4319_v49 }
0x1acd   : > { %6020 = vpow2.f32 %v4372_v63 }
0x1ace   : > { %6022 = vpow2.f32 %v4376_v1 }
0x1acf   : > { %6024 = vpow2.f32 %v4374_v51 }
0x1ad0   : > { %6026 = vpow2.f32 %v4378_v17 }
0x1ad3   : > { %v6013_v52 = vpop.eup %6012 }
0x1ad4   : > { %v6015_v46 = vpop.eup %6014  ;;  %v4328_v54 = vmul.f32 1.0614054, %v6013_v52 }
0x1ad5   : > { %v4330_v58 = vmul.f32 1.0614054, %v6015_v46  ;;  %v6017_v62 = vpop.eup %6016 }
0x1ad6   : > { %v4332_v60 = vadd.f32 -1.4531521, %v4328_v54  ;;  %v4329_v2 = vmul.f32 1.0614054, %v6017_v62  ;;  %v6019_v5 = vpop.eup %6018 }
0x1ad7   : > { %v4334_v3 = vadd.f32 -1.4531521, %v4330_v58  ;;  %v4331_v10 = vmul.f32 1.0614054, %v6019_v5  ;;  %v6021_v42 = vpop.eup %6020 }
0x1ad8   : > { %v4336_v21 = vmul.f32 %v6013_v52, %v4332_v60  ;;  %v4333_v4 = vadd.f32 -1.4531521, %v4329_v2  ;;  %v6023_v45 = vpop.eup %6022 }
0x1ad9   : > { %v4338_v6 = vmul.f32 %v6015_v46, %v4334_v3  ;;  %v4335_v14 = vadd.f32 -1.4531521, %v4331_v10  ;;  %v6025_v54 = vpop.eup %6024  ;;  %v4301_v10 = vmul.f32 0.5, %v6822_v30 }
0x1ada   : > { %v4340_v7 = vadd.f32 1.4214138, %v4336_v21  ;;  %v4337_v9 = vmul.f32 %v6017_v62, %v4333_v4  ;;  %v6027_v63 = vpop.eup %6026  ;;  %v4300_v21 = vmul.f32 0.5, %v6818_v57  ;;  %v4303_v57 = vmul.f32 0.5, %v6824_v31 }
0x1adb   : > { %v4342_v12 = vadd.f32 1.4214138, %v4338_v6  ;;  %v4339_v22 = vmul.f32 %v6019_v5, %v4335_v14 }
0x1adc   : > { %v4344_v13 = vmul.f32 %v6013_v52, %v4340_v7  ;;  %v4341_v20 = vadd.f32 1.4214138, %v4337_v9 }
0x1add   : > { %v4346_v18 = vmul.f32 %v6015_v46, %v4342_v12  ;;  %v4343_v26 = vadd.f32 1.4214138, %v4339_v22  ;;  %v4543_v22 = vld [vmem:[%s7046_s12 + $0x180] sm:$0xff] }
0x1ade   : > { %v4348_v19 = vadd.f32 -0.28449672, %v4344_v13  ;;  %v4345_v61 = vmul.f32 %v6017_v62, %v4341_v20  ;;  %v4512_v20 = vld [vmem:[%s7046_s12 + $0x88] sm:$0xff] }
0x1adf   : > { %v4350_v23 = vadd.f32 -0.28449672, %v4346_v18  ;;  %v4347_v36 = vmul.f32 %v6019_v5, %v4343_v26  ;;  %v4496_v26 = vld [vmem:[%s7046_s12 + $0x8] sm:$0xff] }
0x1ae0   : > { %v4352_v25 = vmul.f32 %v6013_v52, %v4348_v19  ;;  %v4349_v35 = vadd.f32 -0.28449672, %v4345_v61  ;;  %v4511_v19 = vld [vmem:[%s7046_s12 + $0x80] sm:$0xff] }
0x1ae1   : > { %v4354_v28 = vmul.f32 %v6015_v46, %v4350_v23  ;;  %v4351_v41 = vadd.f32 -0.28449672, %v4347_v36  ;;  %v5673_v23 = vpack.c.bf16 %v4512_v20, %v4511_v19  ;;  %v4495_v61 = vld [vmem:[%s7046_s12] sm:$0xff]  ;;  %v4528_v36 = vld [vmem:[%s7046_s12 + $0x108] sm:$0xff] }
0x1ae2   : > { %v4356_v29 = vadd.f32 0.2548296, %v4352_v25  ;;  %v4353_v39 = vmul.f32 %v6017_v62, %v4349_v35  ;;  %v4544_v25 = vld [vmem:[%s7046_s12 + $0x188] sm:$0xff]  ;;  %v4527_v35 = vld [vmem:[%s7046_s12 + $0x100] sm:$0xff] }
0x1ae3   : > { %v4358_v37 = vadd.f32 0.2548296, %v4354_v28  ;;  %v4355_v49 = vmul.f32 %v6019_v5, %v4351_v41  ;;  %v5705_v28 = vpack.c.bf16 %v4544_v25, %v4543_v22  ;;  %5674 = vmatprep.subr.bf16.mxu1 %v5673_v23  ;;  %v4545_v41 = vld [vmem:[%s7046_s12 + $0x190] sm:$0xff]  ;;  %v4534_v23 = vld [vmem:[%s7046_s12 + $0x138] sm:$0xff] }
0x1ae4   : > { %v4360_v8 = vmul.f32 %v6013_v52, %v4356_v29  ;;  %v4357_v48 = vadd.f32 0.2548296, %v4353_v39  ;;  %v5675_v29 = vpack.c.bf16 %v4496_v26, %v4495_v61  ;;  %v4514_v39 = vld [vmem:[%s7046_s12 + $0x98] sm:$0xff]  ;;  %v4533_v22 = vld [vmem:[%s7046_s12 + $0x130] sm:$0xff]  ;;  %v4519_v61 = vld [vmem:[%s7046_s12 + $0xc0] sm:$0xff] }
0x1ae5   : > { %v4362_v43 = vmul.f32 %v6015_v46, %v4358_v37  ;;  %v4359_v24 = vadd.f32 0.2548296, %v4355_v49  ;;  %v4513_v37 = vld [vmem:[%s7046_s12 + $0x90] sm:$0xff]  ;;  %5706 = vmatprep.subr.bf16.mxu0 %v5705_v28  ;;  %v5719_v25 = vpack.c.bf16 %v4534_v23, %v4533_v22  ;;  %v4520_v26 = vld [vmem:[%s7046_s12 + $0xc8] sm:$0xff]  ;;  %v4551_v28 = vld [vmem:[%s7046_s12 + $0x1c0] sm:$0xff] }
0x1ae6   : > { %v4380_v47 = vmul.f32 %v6021_v42, %v4360_v8  ;;  %v4361_v53 = vmul.f32 %v6017_v62, %v4357_v48  ;;  %v5707_v8 = vpack.c.bf16 %v4528_v36, %v4527_v35  ;;  %v4546_v42 = vld [vmem:[%s7046_s12 + $0x198] sm:$0xff]  ;;  %5676 = vmatpush3.bf16.msra.mxu1 %v5675_v29  ;;  %v4529_v49 = vld [vmem:[%s7046_s12 + $0x110] sm:$0xff]  ;;  %v5689_v29 = vpack.c.bf16 %v4520_v26, %v4519_v61  ;;  %v4552_v35 = vld [vmem:[%s7046_s12 + $0x1c8] sm:$0xff] }
0x1ae7   : > { %v4382_v50 = vmul.f32 %v6023_v45, %v4362_v43  ;;  %v4363_v60 = vmul.f32 %v6019_v5, %v4359_v24  ;;  %v5677_v43 = vpack.c.bf16 %v4514_v39, %v4513_v37  ;;  %v5709_v45 = vpack.c.bf16 %v4546_v42, %v4545_v41  ;;  %v4498_v48 = vld [vmem:[%s7046_s12 + $0x18] sm:$0xff]  ;;  %v4516_v24 = vld [vmem:[%s7046_s12 + $0xa8] sm:$0xff]  ;;  %v4503_v36 = vld [vmem:[%s7046_s12 + $0x40] sm:$0xff] }
0x1ae8   : > { %v4384_v44 = vsub.f32 1.0, %v4380_v47  ;;  %v4381_v58 = vmul.f32 %v6025_v54, %v4361_v53  ;;  %v4497_v47 = vld [vmem:[%s7046_s12 + $0x10] sm:$0xff]  ;;  %5708 = vmatpush3.bf16.msra.mxu0 %v5707_v8  ;;  %v4515_v53 = vld [vmem:[%s7046_s12 + $0xa0] sm:$0xff]  ;;  %v4504_v37 = vld [vmem:[%s7046_s12 + $0x48] sm:$0xff]  ;;  %v5721_v8 = vpack.c.bf16 %v4552_v35, %v4551_v28 }
0x1ae9   : > { %v4386_v55 = vsub.f32 1.0, %v4382_v50  ;;  %v4383_v3 = vmul.f32 %v6027_v63, %v4363_v60  ;;  %v5679_v50 = vpack.c.bf16 %v4498_v48, %v4497_v47  ;;  %5678 = vmatprep.subr.bf16.mxu1 %v5677_v43  ;;  %5710 = vmatprep.subr.bf16.mxu0 %v5709_v45  ;;  %v4499_v60 = vld [vmem:[%s7046_s12 + $0x20] sm:$0xff]  ;;  %v5691_v39 = vpack.c.bf16 %v4504_v37, %v4503_v36  ;;  %v4536_v42 = vld [vmem:[%s7046_s12 + $0x148] sm:$0xff]  ;;  %v4521_v43 = vld [vmem:[%s7046_s12 + $0xd0] sm:$0xff] }
0x1aea   : > { %v4392_v56 = vsub.f32 0.0, %v4384_v44  ;;  %v4385_v46 = vsub.f32 1.0, %v4381_v58  ;;  %v4548_v58 = vld [vmem:[%s7046_s12 + $0x1a8] sm:$0xff]  ;;  %v4535_v41 = vld [vmem:[%s7046_s12 + $0x140] sm:$0xff]  ;;  %v4522_v47 = vld [vmem:[%s7046_s12 + $0xd8] sm:$0xff] }
0x1aeb   : > { %v4394_v52 = vsub.f32 0.0, %v4386_v55  ;;  %v4387_v16 = vsub.f32 1.0, %v4383_v3  ;;  %5680 = vmatpush3.bf16.msra.mxu1 %v5679_v50  ;;  %v5723_v45 = vpack.c.bf16 %v4536_v42, %v4535_v41  ;;  %v4553_v48 = vld [vmem:[%s7046_s12 + $0x1d0] sm:$0xff]  ;;  %v5693_v50 = vpack.c.bf16 %v4522_v47, %v4521_v43 }
0x1aec   : > { %v4396_v0 = vsel %vm4388_vm0, %v4384_v44, %v4392_v56  ;;  %v4393_v62 = vsub.f32 0.0, %v4385_v46  ;;  %v4530_v44 = vld [vmem:[%s7046_s12 + $0x118] sm:$0xff]  ;;  %v4547_v56 = vld [vmem:[%s7046_s12 + $0x1a0] sm:$0xff] }
0x1aed   : > { %v4400_v1 = vadd.f32 1.0, %v4396_v0  ;;  %v4398_v2 = vsel %vm4390_vm1, %v4386_v55, %v4394_v52  ;;  %v4395_v4 = vsub.f32 0.0, %v4387_v16  ;;  %v5711_v54 = vpack.c.bf16 %v4530_v44, %v4529_v49  ;;  %v4500_v52 = vld [vmem:[%s7046_s12 + $0x28] sm:$0xff]  ;;  %v4531_v0 = vld [vmem:[%s7046_s12 + $0x120] sm:$0xff]  ;;  %v4554_v49 = vld [vmem:[%s7046_s12 + $0x1d8] sm:$0xff] }
0x1aee   : > { %v4402_v5 = vadd.f32 1.0, %v4398_v2  ;;  %v4397_v7 = vsel %vm4389_vm2, %v4385_v46, %v4393_v62  ;;  %v5681_v55 = vpack.c.bf16 %v4516_v24, %v4515_v53  ;;  %v5713_v63 = vpack.c.bf16 %v4548_v58, %v4547_v56  ;;  %v4532_v46 = vld [vmem:[%s7046_s12 + $0x128] sm:$0xff]  ;;  %v4505_v53 = vld [vmem:[%s7046_s12 + $0x50] sm:$0xff]  ;;  %v4506_v24 = vld [vmem:[%s7046_s12 + $0x58] sm:$0xff] }
0x1aef   : > { %v6845_v6 = vmul.f32 %v4400_v1, %v4300_v21  ;;  %v4401_v15 = vadd.f32 1.0, %v4397_v7  ;;  %v4399_v51 = vsel %vm4391_vm3, %v4387_v16, %v4395_v4  ;;  %v5683_v3 = vpack.c.bf16 %v4500_v52, %v4499_v60  ;;  %5712 = vmatpush3.bf16.msra.mxu0 %v5711_v54  ;;  %v4537_v54 = vld [vmem:[%s7046_s12 + $0x150] sm:$0xff]  ;;  %v4538_v56 = vld [vmem:[%s7046_s12 + $0x158] sm:$0xff]  ;;  %v4523_v58 = vld [vmem:[%s7046_s12 + $0xe0] sm:$0xff] }
0x1af0   : > { %v4403_v33 = vadd.f32 1.0, %v4399_v51  ;;  %v4406_v13 = vmul.f32 %v4402_v5, %v4302_v32  ;;  %5682 = vmatprep.subr.bf16.mxu1 %v5681_v55  ;;  %v5715_v21 = vpack.c.bf16 %v4532_v46, %v4531_v0  ;;  %5714 = vmatprep.subr.bf16.mxu0 %v5713_v63  ;;  %v5725_v44 = vpack.c.bf16 %v4554_v49, %v4553_v48  ;;  %v4524_v60 = vld [vmem:[%s7046_s12 + $0xe8] sm:$0xff]  ;;  %v4555_v0 = vld [vmem:[%s7046_s12 + $0x1e0] sm:$0xff] }
0x1af1   : > { %v6852_v12 = vmul.f32 %v4401_v15, %v4301_v10  ;;  %v4410_v27 = vsel %vm3738_vm14, %v6845_v6, 0.0  ;;  %5684 = vmatpush3.bf16.msra.mxu1 %v5683_v3  ;;  %v5695_v55 = vpack.c.bf16 %v4506_v24, %v4505_v53  ;;  %v5727_v63 = vpack.c.bf16 %v4538_v56, %v4537_v54  ;;  %v4556_v46 = vld [vmem:[%s7046_s12 + $0x1e8] sm:$0xff]  ;;  %v4507_v3 = vld [vmem:[%s7046_s12 + $0x60] sm:$0xff] }
0x1af2   : > { %v4407_v30 = vmul.f32 %v4403_v33, %v4303_v57  ;;  %v4413_v31 = vsel %vm3738_vm14, %v4406_v13, 0.0  ;;  %v5697_v52 = vpack.c.bf16 %v4524_v60, %v4523_v58 }
0x1af3   : > { %v4411_v9 = vsel %vm3738_vm14, %v6852_v12, 0.0  ;;  %5716 = vmatpush3.bf16.msra.mxu0 %v5715_v21  ;;  %v5729_v21 = vpack.c.bf16 %v4556_v46, %v4555_v0 }
0x1af4   : > { %v4412_v34 = vadd.f32 %v4411_v9, %v4410_v27  ;;  %v4415_v17 = vsel %vm3738_vm14, %v4407_v30, 0.0  ;;  %v4518_v9 = vld [vmem:[%s7046_s12 + $0xb8] sm:$0xff] }
0x1af6   : > { %v4414_v14 = vadd.f32 %v4413_v31, %v4412_v34  ;;  %v4549_v34 = vld [vmem:[%s7046_s12 + $0x1b0] sm:$0xff] }
0x1af8   : > { %v4416_v18 = vadd.f32 %v4415_v17, %v4414_v14  ;;  %v4550_v14 = vld [vmem:[%s7046_s12 + $0x1b8] sm:$0xff]  ;;  %v4501_v17 = vld [vmem:[%s7046_s12 + $0x30] sm:$0xff] }
0x1af9   : > { %v5717_v19 = vpack.c.bf16 %v4550_v14, %v4549_v34 }
0x1afa   : > { %4417 = vadd.xlane.f32.xlu1 %v4416_v18  ;;  %v4502_v18 = vld [vmem:[%s7046_s12 + $0x38] sm:$0xff] }
0x1afb   : > { %v5687_v20 = vpack.c.bf16 %v4502_v18, %v4501_v17  ;;  %5718 = vmatprep.subr.bf16.mxu0 %v5717_v19  ;;  %v4408_v19 = vld [vmem:[%s7070_s2] sm:$0xf]  ;;  %s5138_s2 = sshll.u32 %s6330_s0, 4  ;;  %s6133_s0 = smov [#allocation2]  }
0x1afc   : > { %5720 = vmatpush3.bf16.msra.mxu0 %v5719_v25  ;;  %v4453_v22 = vrot.slane %v4408_v19, %v6560_v40  ;;  %v4461_v23 = vrot.slane %v4408_v19, %v6812_v11  ;;  %v4449_v25 = vrot.slane %v4408_v19, %v6493_v59  ;;  %v4457_v61 = vrot.slane %v4408_v19, %v6808_v38  ;;  %s6964_s8 = scalar_lea.hbm %s6307_s4, %s5138_s2  ;;  %s6034_s13 = sshll.u32 %s6133_s0, 4  ;;  %s6035_s13 = int_to_ptr.vmem [resolvable:$false] %s6034_s13 }
0x1afd   : > { %5722 = vmatprep.subr.bf16.mxu0 %v5721_v8  ;;  %s6036_s14 = scalar_lea.vmem %s6035_s13, 32  ;;  %p6037_p0 = scmp.lt.s32.totalorder %s6966_s5, %s6035_s13 }
0x1b00   : > { %5724 = vmatpush3.bf16.msra.mxu0 %v5723_v45 }
0x1b01   : > { %5726 = vmatprep.subr.bf16.mxu0 %v5725_v44 }
0x1b04   : > { %5728 = vmatpush3.bf16.msra.mxu0 %v5727_v63 }
0x1b05   : > { %5730 = vmatprep.subr.bf16.mxu0 %v5729_v21 }
0x1b87   : > { %v4418_v1 = vpop.xlane.xlu1 %4417 }
0x1b88   : > { %v4420_v2 = vmul.f32 0.001953125, %v4418_v1  ;;  %v4508_v1 = vld [vmem:[%s7046_s12 + $0x68] sm:$0xff] }
0x1b8a   : > { %v6885_v62 = vsub.f32 %v6845_v6, %v4420_v2  ;;  %v6888_v16 = vsub.f32 %v6852_v12, %v4420_v2  ;;  %v6890_v5 = vsub.f32 %v4406_v13, %v4420_v2  ;;  %v6892_v7 = vsub.f32 %v4407_v30, %v4420_v2  ;;  %v4517_v30 = vld [vmem:[%s7046_s12 + $0xb0] sm:$0xff]  ;;  %v4539_v2 = vld [vmem:[%s7046_s12 + $0x160] sm:$0xff] }
0x1b8b   : > { %v5685_v31 = vpack.c.bf16 %v4518_v9, %v4517_v30  ;;  %v4541_v30 = vld [vmem:[%s7046_s12 + $0x170] sm:$0xff]  ;;  %v4542_v9 = vld [vmem:[%s7046_s12 + $0x178] sm:$0xff] }
0x1b8c   : > { %v4425_v4 = vmul.f32 %v6885_v62, %v6885_v62  ;;  %v4426_v32 = vmul.f32 %v6888_v16, %v6888_v16  ;;  %v4427_v6 = vmul.f32 %v6890_v5, %v6890_v5  ;;  %v4428_v10 = vmul.f32 %v6892_v7, %v6892_v7 }
0x1b8d   : > { %5686 = vmatprep.subr.bf16.mxu1 %v5685_v31  ;;  %v5735_v31 = vpack.c.bf16 %v4542_v9, %v4541_v30 }
0x1b8e   : > { %v4429_v15 = vsel %vm3738_vm14, %v4425_v4, 0.0  ;;  %v4430_v57 = vsel %vm3738_vm14, %v4426_v32, 0.0  ;;  %v4432_v12 = vsel %vm3738_vm14, %v4427_v6, 0.0  ;;  %v4434_v13 = vsel %vm3738_vm14, %v4428_v10, 0.0  ;;  %5688 = vmatpush3.bf16.msra.mxu1 %v5687_v20  ;;  %v4540_v4 = vld [vmem:[%s7046_s12 + $0x168] sm:$0xff]  ;;  %v4525_v32 = vld [vmem:[%s7046_s12 + $0xf0] sm:$0xff] }
0x1b8f   : > { %v4431_v51 = vadd.f32 %v4430_v57, %v4429_v15  ;;  %5690 = vmatprep.subr.bf16.mxu1 %v5689_v29  ;;  %v4526_v6 = vld [vmem:[%s7046_s12 + $0xf8] sm:$0xff]  ;;  %v4557_v10 = vld [vmem:[%s7046_s12 + $0x1f0] sm:$0xff]  ;;  %v5699_v15 = vpack.c.bf16 %v4508_v1, %v4507_v3  ;;  %v4409_v20 = vld [vmem:[%s6292_s17] sm:$0xf] }
0x1b90   : > { %v4558_v57 = vld [vmem:[%s7046_s12 + $0x1f8] sm:$0xff]  ;;  %v4478_v28 = vrot.slane %v4409_v20, %v6560_v40  ;;  %v4486_v29 = vrot.slane %v4409_v20, %v6812_v11  ;;  %v4474_v35 = vrot.slane %v4409_v20, %v6493_v59  ;;  %v4482_v36 = vrot.slane %v4409_v20, %v6808_v38 }
0x1b91   : > { %v4433_v33 = vadd.f32 %v4432_v12, %v4431_v51  ;;  %v5731_v51 = vpack.c.bf16 %v4540_v4, %v4539_v2  ;;  %v5701_v12 = vpack.c.bf16 %v4526_v6, %v4525_v32 }
0x1b92   : > { %5692 = vmatpush3.bf16.msra.mxu1 %v5691_v39 }
0x1b93   : > { %v4435_v27 = vadd.f32 %v4434_v13, %v4433_v33  ;;  %5694 = vmatprep.subr.bf16.mxu1 %v5693_v50  ;;  %v4509_v33 = vld [vmem:[%s7046_s12 + $0x70] sm:$0xff]  ;;  %v4510_v13 = vld [vmem:[%s7046_s12 + $0x78] sm:$0xff]  ;;  %5732 = vmatpush3.bf16.msra.mxu0 %v5731_v51  ;;  %s6030_s12 = scalar_lea.vmem %s6966_s5, 16 }
0x1b94   : > { %v5703_v34 = vpack.c.bf16 %v4510_v13, %v4509_v33  ;;  %p6031_p11 = scmp.ne.s32.totalorder %s6966_s5, %s6030_s12  ;;  %p6038_p1 = scmp.lt.s32.totalorder %s6036_s14, %s6030_s12 }
0x1b95   : > { %4436 = vadd.xlane.f32.xlu0 %v4435_v27  ;;  %v5733_v27 = vpack.c.bf16 %v4558_v57, %v4557_v10 }
0x1b96   : > { %5696 = vmatpush3.bf16.msra.mxu1 %v5695_v55  ;;  %p6032_p12 = pnand %p6031_p11, %p6347_p5  ;;  %p6039_p2 = por %p6038_p1, %p6037_p0 }
0x1b97   : > { %5698 = vmatprep.subr.bf16.mxu1 %v5697_v52  ;;  %5734 = vmatprep.subr.bf16.mxu0 %v5733_v27 }
0x1b98   : > { %5736 = vmatpush3.bf16.msra.mxu0 %v5735_v31  ;;  %p6033_p13 = pneg %p6032_p12 }
0x1b9a   : > { %5700 = vmatpush3.bf16.msra.mxu1 %v5699_v15  ;;  %p6040_p3 = pnand %p6039_p2, %p6033_p13 }
0x1b9b   : > { %5702 = vmatprep.subr.bf16.mxu1 %v5701_v12 }
0x1b9e   : > { %5704 = vmatpush3.bf16.msra.mxu1 %v5703_v34 }
0x1c22   : > { %v4437_v14 = vpop.xlane.xlu0 %4436 }
0x1c23   : > { %v4438_v17 = vmul.f32 0.001953125, %v4437_v14 }
0x1c25   : > { %v4439_v18 = vadd.f32 1e-05, %v4438_v17 }
0x1c27   : > { %6028 = vrsqrt.f32 %v4439_v18 }
0x1c31   : > { %v6029_v26 = vpop.eup %6028 }
0x1c32   : > { %v4442_v37 = vmul.f32 %v6029_v26, %v6888_v16  ;;  %v4444_v8 = vmul.f32 %v6029_v26, %v6892_v7  ;;  %v4441_v39 = vmul.f32 %v6029_v26, %v6885_v62  ;;  %v4443_v41 = vmul.f32 %v6029_v26, %v6890_v5  ;;  %v4559_v16 = vld [vmem:[%s6302_s27] sm:$0x1] }
0x1c34   : > { %v4467_v42 = vmul.f32 %v4453_v22, %v4442_v37  ;;  %v4469_v43 = vmul.f32 %v4461_v23, %v4444_v8  ;;  %v4466_v45 = vmul.f32 %v4449_v25, %v4441_v39  ;;  %v4468_v40 = vmul.f32 %v4457_v61, %v4443_v41 }
0x1c36   : > { %v4492_v47 = vadd.f32 %v4478_v28, %v4467_v42  ;;  %v4494_v11 = vadd.f32 %v4486_v29, %v4469_v43  ;;  %v4491_v59 = vadd.f32 %v4474_v35, %v4466_v45  ;;  %v4493_v48 = vadd.f32 %v4482_v36, %v4468_v40 }
0x1c38   : > { %4624 = vmatprep.mubr.f32.mxu1 %v4492_v47  ;;  %4694 = vmatprep.mubr.f32.mxu0 %v4494_v11 }
0x1c39   : > { %4625 = vmatmul.mubr.f32.vlgmr.msra.gmra.mrb[2].mxu1 %v4491_v59  ;;  %4695 = vmatmul.mubr.f32.vlgmr.msra.gmra.mrb[68].mxu0 %v4493_v48 }
0x1d0c   : > { %v5331_v38 = vpop.f32.mrb[2].mxu1  ;;  %v5366_v62 = vpop.f32.mrb[68].mxu0 }
0x1d0d   : > { %v5332_v5 = vpop.f32.mrb[3].mxu1  ;;  %v5367_v7 = vpop.f32.mrb[69].mxu0 }
0x1d0e   : > { %v5333_v49 = vadd.f32 %v5332_v5, %v5331_v38  ;;  %v5368_v50 = vadd.f32 %v5367_v7, %v5366_v62 }
0x1d10   : > { %v4627_v44 = vadd.f32 %v5333_v49, %v4559_v16 }
0x1d12   : > { %v4697_v53 = vadd.f32 %v5368_v50, %v4627_v44 }
0x1d14   : > { %4701 = vst.msk [vmem:[%s1039_s3] sm:$0x1] %vm4700_vm4, %v4697_v53 }
0x1d15   : > { %6043 = shalt.err (!%p6040_p3)
}
0x1d16   : > { %s6044_s3 = scalar_lea.hbm %s6964_s8, 16  ;;  %s6048_s6 = scalar_lea.hbm %s6307_s4, 32 }
0x1d17   : > { %p6045_p4 = scmp.ne.s32.totalorder %s6964_s8, %s6044_s3  ;;  %p6049_p9 = scmp.lt.u32.totalorder %s6964_s8, %s6307_s4 }
0x1d18   : > { %p6050_p10 = scmp.lt.u32.totalorder %s6048_s6, %s6044_s3  ;;  %p6052_p12 = scmp.lt.u32.totalorder %s6044_s3, %s6964_s8 }
0x1d19   : > { %p6046_p7 = pnand %p6045_p4, %p6347_p5 }
0x1d1a   : > { %p6051_p11 = por %p6050_p10, %p6049_p9 }
0x1d1b   : > { %p6047_p8 = pneg %p6046_p7 }
0x1d1c   : > { %p6053_p0 = por %p6052_p12, %p6051_p11 }
0x1d1e   : > { %p6054_p13 = pnand %p6053_p0, %p6047_p8 }
0x1d20   : > { %6057 = shalt.err (!%p6054_p13)
}
0x1d21   : > { %5739 = dma.vmem_to_hbm [thread:$0]  (%p6347_p5), %s6966_s5, 16, %s6964_s8, %s4703_s9  }
0x1d22 PF: > { %p5745_p1 = scmp.ge.s32.totalorder %s6092_s15, 2  ;;  %s4727_s13 = sand.u32 1, %s6080_s7  }
0x1d23   : > { %s4728_s14 = scalar_lea.sflag [#allocation3], %s4727_s13 }
0x1d24   : > { %p5742_p2 = pnand %p5745_p1, %p6351_p6 }
0x1d26   : > { %6075 = dma.done.wait (!%p5742_p2), %s4728_s14, 16  }
0x1d27   : > { %6077 = vsyncadd (!%p5742_p2), %s4728_s14, 4294967280  ;;  %p77_p3 = scmp.ge.s32.totalorder %s6334_s18, 4   ;;  %s7071_s7 = smov %s6084_s10 }
0x1d28   : > { %s7072_s10 = smov %s6088_s11  ;;  %s7073_s11 = smov %s6345_s26 }
0x1d29   : > { %s7074_s15 = smov %s6334_s18  ;;  %79 = sbr.rel (!%p77_p3) target bundleno = 66 (0x42), region = 241 }
0x1d30   :  { %4732 = vsyncpa [#allocation3], 1 }
0x1d31   :  { %4734 = vsyncpa [#allocation3 + $0x1], 1 }

</bundles_post_ra>
